<compile_context>
chip_gen: v5e
topology: v5e:2x2
jax: 0.10.0
libtpu: 0.0.40
codegen_flags: <defaults>
</compile_context>

<pallas_src>
import math
import numpy as np
import jax
import jax.numpy as jnp
from jax.experimental import pallas as pl
from jax.experimental.pallas import tpu as pltpu

CONSTANT = 1e-05

# ----------------- module config (FilterbankFeatures defaults) ---------------
SAMPLE_RATE = 8000
WINDOW_SIZE = 0.02
WINDOW_STRIDE = 0.01
WIN_LENGTH = int(SAMPLE_RATE * WINDOW_SIZE)          # 160
HOP_LENGTH = int(SAMPLE_RATE * WINDOW_STRIDE)        # 80
N_FFT = 2 ** math.ceil(math.log2(WIN_LENGTH))        # 256
F_HALF = N_FFT // 2                                  # 128 bins (Nyquist dropped)
NFILT = 64
NFILT_PAD = 128                                      # lane-dense feature dim
PREEMPH = 0.97
DITHER = CONSTANT
LOG_EPS = 2.0 ** (-24)
PAD_TO = 16
ROW_TILE = 512                                       # frames per grid step

# framing decomposition: one 256-sample frame spans 4 hop rows (3 full + 16)
N_SEG = N_FFT // HOP_LENGTH                          # 3
REM = N_FFT - N_SEG * HOP_LENGTH                     # 16
NUM_W = N_SEG + 1                                    # 4 shifted matmuls
TAIL_ROWS = 8                                        # >= N_SEG, sublane-aligned

assert ROW_TILE % 128 == 0 and ROW_TILE % TAIL_ROWS == 0
assert TAIL_ROWS >= N_SEG and 0 < REM <= HOP_LENGTH


# ----------------- deterministic parameter construction ----------------------
def _mel_filterbank(sr, n_fft, n_mels, fmin, fmax):
    # librosa.filters.mel defaults: slaney mel scale + slaney normalization
    def hz_to_mel(f):
        f = np.asarray(f, dtype=np.float64)
        f_sp = 200.0 / 3.0
        min_log_hz = 1000.0
        min_log_mel = min_log_hz / f_sp
        logstep = np.log(6.4) / 27.0
        lin = f / f_sp
        logreg = min_log_mel + np.log(np.maximum(f, min_log_hz) / min_log_hz) / logstep
        return np.where(f >= min_log_hz, logreg, lin)

    def mel_to_hz(m):
        m = np.asarray(m, dtype=np.float64)
        f_sp = 200.0 / 3.0
        min_log_hz = 1000.0
        min_log_mel = min_log_hz / f_sp
        logstep = np.log(6.4) / 27.0
        lin = f_sp * m
        logreg = min_log_hz * np.exp(logstep * (m - min_log_mel))
        return np.where(m >= min_log_mel, logreg, lin)

    n_freq = 1 + n_fft // 2
    fftfreqs = np.linspace(0.0, sr / 2.0, n_freq)
    mel_pts = np.linspace(hz_to_mel(fmin), hz_to_mel(fmax), n_mels + 2)
    mel_f = mel_to_hz(mel_pts)
    fdiff = np.diff(mel_f)
    ramps = mel_f[:, None] - fftfreqs[None, :]
    lower = -ramps[:-2] / fdiff[:-1, None]
    upper = ramps[2:] / fdiff[1:, None]
    weights = np.maximum(0.0, np.minimum(lower, upper))
    enorm = 2.0 / (mel_f[2:n_mels + 2] - mel_f[:n_mels])
    weights = weights * enorm[:, None]
    return weights.astype(np.float32)                 # (n_mels, n_freq)


def _build_constants():
    # torch.hann_window(WIN_LENGTH, periodic=False), centered / zero-padded to
    # n_fft (torch.stft behaviour for win_length < n_fft), folded into the DFT
    # weights: (frame * w) @ C == frame @ (diag(w) @ C) -> no in-kernel window mul.
    k = np.arange(WIN_LENGTH, dtype=np.float64)
    win = 0.5 - 0.5 * np.cos(2.0 * np.pi * k / (WIN_LENGTH - 1))
    window = np.zeros(N_FFT, dtype=np.float64)
    pad_l = (N_FFT - WIN_LENGTH) // 2
    window[pad_l:pad_l + WIN_LENGTH] = win

    n = np.arange(N_FFT, dtype=np.float64)[:, None]
    f = np.arange(F_HALF, dtype=np.float64)[None, :]          # Nyquist bin dropped
    ang = 2.0 * np.pi * f * n / N_FFT
    csw = np.concatenate([np.cos(ang), np.sin(ang)], axis=1) * window[:, None]  # (256, 256)

    # Split into NUM_W hop-sized slabs for the shifted-matmul framing:
    #   frame[t, s*80 + c] = xp_rows[t + s, c]  (c < 80 for s < 3, c < 16 for s == 3)
    w4 = np.zeros((NUM_W, HOP_LENGTH, 2 * F_HALF), dtype=np.float64)
    for s in range(N_SEG):
        w4[s] = csw[s * HOP_LENGTH:(s + 1) * HOP_LENGTH]
    w4[N_SEG, :REM] = csw[N_SEG * HOP_LENGTH:]

    fb = _mel_filterbank(SAMPLE_RATE, N_FFT, NFILT, 0.0, SAMPLE_RATE / 2.0)  # (64, 129)
    # Dropping the Nyquist bin is (numerically) exact: its slaney weight is ~0
    # when fmax = sr/2.  Assert before shrinking the contraction.
    assert np.max(np.abs(fb[:, F_HALF])) < 1e-10, "Nyquist mel weight must be ~0"
    fbt = np.zeros((F_HALF, NFILT_PAD), dtype=np.float32)
    fbt[:, :NFILT] = fb[:, :F_HALF].T                          # (128, 128), lane-dense

    return jnp.asarray(w4.astype(np.float32)), jnp.asarray(fbt)


W4, FBT = _build_constants()


# -------- Pallas kernel 1: in-kernel framing -> windowed DFT power -> mel -> log
#          + transposed lane-dense store + seq-masked partial stats ------------
def logmel_kernel(seq_ref, main_ref, tail_ref, w_ref, fbt_ref, out_ref, stat_ref):
    b = pl.program_id(0)
    j = pl.program_id(1)

    # hop-row view of the signal for this chunk (+ overlap rows from the next)
    x_ext = jnp.concatenate([main_ref[0], tail_ref[0]], axis=0)   # (RT+8, 80)

    # windowed DFT via NUM_W shifted MXU matmuls (window folded into w_ref)
    y = jnp.dot(x_ext[0:ROW_TILE], w_ref[0], preferred_element_type=jnp.float32)
    for s in range(1, NUM_W):
        y = y + jnp.dot(x_ext[s:s + ROW_TILE], w_ref[s],
                        preferred_element_type=jnp.float32)       # (RT, 256) = [re|im]

    re = y[:, :F_HALF]
    im = y[:, F_HALF:]
    pw = re * re + im * im                                        # power spectrum
    mel = jnp.dot(pw, fbt_ref[...], preferred_element_type=jnp.float32)  # (RT, 128)
    logm = jnp.log(mel + LOG_EPS)

    # lane-dense transposed store: (128 features, ROW_TILE frames)
    out_ref[0] = logm.T

    # seq-masked per-chunk partial sums for per-feature mean / std
    t = j * ROW_TILE + jax.lax.broadcasted_iota(jnp.int32, (ROW_TILE, 1), 0)
    xm = jnp.where(t < seq_ref[b], logm, 0.0)
    s1 = jnp.sum(xm, axis=0, keepdims=True)                       # (1, 128)
    s2 = jnp.sum(xm * xm, axis=0, keepdims=True)                  # (1, 128)
    stat_ref[0, 0] = jnp.concatenate([s1, s2], axis=0)            # (2, 128)


def logmel_pallas(xp_rows, seq_len, n_chunks):
    B = xp_rows.shape[0]
    t_cap = n_chunks * ROW_TILE
    return pl.pallas_call(
        logmel_kernel,
        out_shape=(
            jax.ShapeDtypeStruct((B, NFILT_PAD, t_cap), jnp.float32),
            jax.ShapeDtypeStruct((B, n_chunks, 2, NFILT_PAD), jnp.float32),
        ),
        grid_spec=pltpu.PrefetchScalarGridSpec(
            num_scalar_prefetch=1,
            grid=(B, n_chunks),
            in_specs=[
                # main hop rows of this chunk: rows [j*RT, (j+1)*RT)
                pl.BlockSpec((1, ROW_TILE, HOP_LENGTH),
                             lambda b, j, seq: (b, j, 0)),
                # overlap rows from the next chunk: rows [(j+1)*RT, (j+1)*RT+8)
                pl.BlockSpec((1, TAIL_ROWS, HOP_LENGTH),
                             lambda b, j, seq: (b, (j + 1) * (ROW_TILE // TAIL_ROWS), 0)),
                pl.BlockSpec((NUM_W, HOP_LENGTH, 2 * F_HALF),
                             lambda b, j, seq: (0, 0, 0)),
                pl.BlockSpec((F_HALF, NFILT_PAD), lambda b, j, seq: (0, 0)),
            ],
            out_specs=[
                pl.BlockSpec((1, NFILT_PAD, ROW_TILE), lambda b, j, seq: (b, 0, j)),
                pl.BlockSpec((1, 1, 2, NFILT_PAD), lambda b, j, seq: (b, j, 0, 0)),
            ],
        ),
        compiler_params=pltpu.CompilerParams(
            dimension_semantics=("parallel", "parallel")),
    )(seq_len, xp_rows, xp_rows, W4, FBT)


# ---- Pallas kernel 2: streamed per-feature normalize + time mask ------------
def norm_mask_kernel(seq_ref, x_ref, mean_ref, istd_ref, o_ref):
    b = pl.program_id(0)
    j = pl.program_id(1)
    x = x_ref[0]                                      # (128, RT)
    mean = mean_ref[0]                                # (128, 1)
    istd = istd_ref[0]                                # (128, 1)
    t = j * ROW_TILE + jax.lax.broadcasted_iota(jnp.int32, (1, ROW_TILE), 1)
    mask = t < seq_ref[b]                             # (1, RT)
    y = jnp.where(mask, (x - mean) * istd, 0.0)       # (128, RT)
    o_ref[0] = y[:NFILT, :]                           # (64, RT), lane-dense store


def norm_mask_pallas(logmel, mean, inv_std, seq_len):
    B, _, t_cap = logmel.shape
    n_chunks = t_cap // ROW_TILE
    return pl.pallas_call(
        norm_mask_kernel,
        out_shape=jax.ShapeDtypeStruct((B, NFILT, t_cap), jnp.float32),
        grid_spec=pltpu.PrefetchScalarGridSpec(
            num_scalar_prefetch=1,
            grid=(B, n_chunks),
            in_specs=[
                pl.BlockSpec((1, NFILT_PAD, ROW_TILE), lambda b, j, seq: (b, 0, j)),
                pl.BlockSpec((1, NFILT_PAD, 1), lambda b, j, seq: (b, 0, 0)),
                pl.BlockSpec((1, NFILT_PAD, 1), lambda b, j, seq: (b, 0, 0)),
            ],
            out_specs=pl.BlockSpec((1, NFILT, ROW_TILE), lambda b, j, seq: (b, 0, j)),
        ),
        compiler_params=pltpu.CompilerParams(
            dimension_semantics=("parallel", "parallel")),
    )(seq_len, logmel, mean, inv_std)


# ----------------- forward (glue in plain JAX, hot path in Pallas) -----------
def filterbank_features_forward(x, seq_len_samples, key):
    B, L = x.shape
    # get_seq_len
    seq_len = jnp.ceil(seq_len_samples.astype(jnp.float32) / HOP_LENGTH).astype(jnp.int32)

    # dither + pre-emphasis + reflect pad (cheap fused XLA elementwise, see TODO)
    x = x + DITHER * jax.random.normal(key, x.shape, dtype=x.dtype)
    x = jnp.concatenate([x[:, :1], x[:, 1:] - PREEMPH * x[:, :-1]], axis=1)
    xp = jnp.pad(x, ((0, 0), (N_FFT // 2, N_FFT // 2)), mode="reflect")

    # frame bookkeeping (torch.stft center=True frame count)
    n_frames = 1 + L // HOP_LENGTH
    n_chunks = -(-n_frames // ROW_TILE)
    t_cap = n_chunks * ROW_TILE

    # hop-row view of the signal: zero-pad so every chunk's (RT + tail) rows
    # exist, then a free (contiguous) reshape -> (B, rows, 80).  No gather.
    m_rows = t_cap + TAIL_ROWS
    xp = jnp.pad(xp, ((0, 0), (0, m_rows * HOP_LENGTH - xp.shape[1])))
    xp_rows = xp.reshape(B, m_rows, HOP_LENGTH)

    # kernel 1: in-kernel framing + windowed DFT power + mel + log,
    # transposed lane-dense output (B,128,t_cap) + masked partial stats.
    logmel, stats = logmel_pallas(xp_rows, seq_len, n_chunks)

    # tiny per-(batch, feature) stats -> mean / inv_std (plain JAX, negligible)
    sums = jnp.sum(stats, axis=1)                                       # (B, 2, 128)
    nf = jnp.maximum(seq_len.astype(jnp.float32), 1.0)[:, None]         # (B, 1)
    mean = sums[:, 0, :] / nf                                           # (B, 128)
    # torch unbiased std; var clamped >= 0 (one-pass formula) and n-1 >= 1
    var = (sums[:, 1, :] - nf * mean * mean) / jnp.maximum(nf - 1.0, 1.0)
    inv_std = 1.0 / (jnp.sqrt(jnp.maximum(var, 0.0)) + CONSTANT)
    mean = mean[:, :, None]                                             # (B, 128, 1)
    inv_std = inv_std[:, :, None]

    # kernel 2: streamed normalize + time mask, lane-dense (B, 64, t_cap)
    out = norm_mask_pallas(logmel, mean, inv_std, seq_len)

    # module output length: n_frames padded to a multiple of pad_to (eval: 16)
    pad_amt = n_frames % PAD_TO
    t_out = n_frames + ((PAD_TO - pad_amt) if pad_amt != 0 else 0)
    return out[:, :, :t_out]


if __name__ == "__main__":
    key = jax.random.PRNGKey(0)
    k_sig, k_dither = jax.random.split(key)

    B, L = 2, 800                                     # 0.1 s at 8 kHz -> 11 frames
    x = jax.random.normal(k_sig, (B, L), dtype=jnp.float32)
    seq_len_samples = jnp.array([800, 640], dtype=jnp.int32)

    out = filterbank_features_forward(x, seq_len_samples, k_dither)
    out = jax.block_until_ready(out)
    assert out.shape == (B, NFILT, 16), out.shape
    assert bool(jnp.all(jnp.isfinite(out)))
    print("KERNEL_OK")
</pallas_src>

<mosaic_0001>
module attributes {stable_mosaic.version = 11 : i64} {
  func.func @logmel_kernel(%arg0: i32, %arg1: i32, %arg2: memref<2xi32, #tpu.memory_space<smem>>, %arg3: memref<1x512x80xf32, #tpu.memory_space<vmem>>, %arg4: memref<1x8x80xf32, #tpu.memory_space<vmem>>, %arg5: memref<4x80x256xf32, #tpu.memory_space<vmem>>, %arg6: memref<128x128xf32, #tpu.memory_space<vmem>>, %arg7: memref<1x128x512xf32, #tpu.memory_space<vmem>>, %arg8: memref<1x1x2x128xf32, #tpu.memory_space<vmem>>) attributes {dimension_semantics = [#tpu.dimension_semantics<parallel>, #tpu.dimension_semantics<parallel>], iteration_bounds = array<i64: 2, 1>, scalar_prefetch = 1 : i64, scratch_operands = 0 : i64, tpu.core_type = #tpu.core_type<tc>, window_params = [{transform_indices = @transform_0, window_bounds = array<i64: 1, 512, 80>}, {transform_indices = @transform_1, window_bounds = array<i64: 1, 8, 80>}, {pipeline_mode = #tpu.pipeline_mode<synchronous>, transform_indices = @transform_2, window_bounds = array<i64: 4, 80, 256>}, {pipeline_mode = #tpu.pipeline_mode<synchronous>, transform_indices = @transform_3, window_bounds = array<i64: 128, 128>}, {transform_indices = @transform_4, window_bounds = array<i64: 1, 128, 512>}, {transform_indices = @transform_5, window_bounds = array<i64: 1, 1, 2, 128>}]} {
    %c0 = arith.constant 0 : index
    %c0_0 = arith.constant 0 : index
    %c0_1 = arith.constant 0 : index
    %0 = vector.load %arg3[%c0, %c0_0, %c0_1] : memref<1x512x80xf32, #tpu.memory_space<vmem>>, vector<1x512x80xf32>
    %1 = vector.shape_cast %0 : vector<1x512x80xf32> to vector<512x80xf32>
    %c0_2 = arith.constant 0 : index
    %c0_3 = arith.constant 0 : index
    %c0_4 = arith.constant 0 : index
    %2 = vector.load %arg4[%c0_2, %c0_3, %c0_4] : memref<1x8x80xf32, #tpu.memory_space<vmem>>, vector<1x8x80xf32>
    %3 = vector.shape_cast %2 : vector<1x8x80xf32> to vector<8x80xf32>
    %4 = tpu.concatenate %1, %3 in 0 : vector<512x80xf32>, vector<8x80xf32> -> vector<520x80xf32>
    %5 = vector.extract_strided_slice %4 {offsets = [0, 0], sizes = [512, 80], strides = [1, 1]} : vector<520x80xf32> to vector<512x80xf32>
    %c0_5 = arith.constant 0 : index
    %c0_6 = arith.constant 0 : index
    %c0_7 = arith.constant 0 : index
    %6 = vector.load %arg5[%c0_5, %c0_6, %c0_7] : memref<4x80x256xf32, #tpu.memory_space<vmem>>, vector<1x80x256xf32>
    %7 = vector.shape_cast %6 : vector<1x80x256xf32> to vector<80x256xf32>
    %cst = arith.constant dense<0.000000e+00> : vector<512x256xf32>
    %8 = tpu.matmul %5, %7, %cst {dimension_numbers = #tpu.dot_dimension_numbers<[1], [0], [0], [1], [0, 0, 1, 1], [], []>} : vector<512x80xf32>, vector<80x256xf32>, vector<512x256xf32> -> vector<512x256xf32>
    %9 = vector.extract_strided_slice %4 {offsets = [1, 0], sizes = [512, 80], strides = [1, 1]} : vector<520x80xf32> to vector<512x80xf32>
    %c1 = arith.constant 1 : index
    %c0_8 = arith.constant 0 : index
    %c0_9 = arith.constant 0 : index
    %10 = vector.load %arg5[%c1, %c0_8, %c0_9] : memref<4x80x256xf32, #tpu.memory_space<vmem>>, vector<1x80x256xf32>
    %11 = vector.shape_cast %10 : vector<1x80x256xf32> to vector<80x256xf32>
    %cst_10 = arith.constant dense<0.000000e+00> : vector<512x256xf32>
    %12 = tpu.matmul %9, %11, %cst_10 {dimension_numbers = #tpu.dot_dimension_numbers<[1], [0], [0], [1], [0, 0, 1, 1], [], []>} : vector<512x80xf32>, vector<80x256xf32>, vector<512x256xf32> -> vector<512x256xf32>
    %13 = arith.addf %8, %12 : vector<512x256xf32>
    %14 = vector.extract_strided_slice %4 {offsets = [2, 0], sizes = [512, 80], strides = [1, 1]} : vector<520x80xf32> to vector<512x80xf32>
    %c2 = arith.constant 2 : index
    %c0_11 = arith.constant 0 : index
    %c0_12 = arith.constant 0 : index
    %15 = vector.load %arg5[%c2, %c0_11, %c0_12] : memref<4x80x256xf32, #tpu.memory_space<vmem>>, vector<1x80x256xf32>
    %16 = vector.shape_cast %15 : vector<1x80x256xf32> to vector<80x256xf32>
    %cst_13 = arith.constant dense<0.000000e+00> : vector<512x256xf32>
    %17 = tpu.matmul %14, %16, %cst_13 {dimension_numbers = #tpu.dot_dimension_numbers<[1], [0], [0], [1], [0, 0, 1, 1], [], []>} : vector<512x80xf32>, vector<80x256xf32>, vector<512x256xf32> -> vector<512x256xf32>
    %18 = arith.addf %13, %17 : vector<512x256xf32>
    %19 = vector.extract_strided_slice %4 {offsets = [3, 0], sizes = [512, 80], strides = [1, 1]} : vector<520x80xf32> to vector<512x80xf32>
    %c3 = arith.constant 3 : index
    %c0_14 = arith.constant 0 : index
    %c0_15 = arith.constant 0 : index
    %20 = vector.load %arg5[%c3, %c0_14, %c0_15] : memref<4x80x256xf32, #tpu.memory_space<vmem>>, vector<1x80x256xf32>
    %21 = vector.shape_cast %20 : vector<1x80x256xf32> to vector<80x256xf32>
    %cst_16 = arith.constant dense<0.000000e+00> : vector<512x256xf32>
    %22 = tpu.matmul %19, %21, %cst_16 {dimension_numbers = #tpu.dot_dimension_numbers<[1], [0], [0], [1], [0, 0, 1, 1], [], []>} : vector<512x80xf32>, vector<80x256xf32>, vector<512x256xf32> -> vector<512x256xf32>
    %23 = arith.addf %18, %22 : vector<512x256xf32>
    %24 = vector.extract_strided_slice %23 {offsets = [0, 0], sizes = [512, 128], strides = [1, 1]} : vector<512x256xf32> to vector<512x128xf32>
    %25 = vector.extract_strided_slice %23 {offsets = [0, 128], sizes = [512, 128], strides = [1, 1]} : vector<512x256xf32> to vector<512x128xf32>
    %26 = arith.mulf %24, %24 : vector<512x128xf32>
    %27 = arith.mulf %25, %25 : vector<512x128xf32>
    %28 = arith.addf %26, %27 : vector<512x128xf32>
    %c0_17 = arith.constant 0 : index
    %c0_18 = arith.constant 0 : index
    %29 = vector.load %arg6[%c0_17, %c0_18] : memref<128x128xf32, #tpu.memory_space<vmem>>, vector<128x128xf32>
    %cst_19 = arith.constant dense<0.000000e+00> : vector<512x128xf32>
    %30 = tpu.matmul %28, %29, %cst_19 {dimension_numbers = #tpu.dot_dimension_numbers<[1], [0], [0], [1], [0, 0, 1, 1], [], []>} : vector<512x128xf32>, vector<128x128xf32>, vector<512x128xf32> -> vector<512x128xf32>
    %cst_20 = arith.constant 5.96046448E-8 : f32
    %31 = vector.broadcast %cst_20 : f32 to vector<512x128xf32>
    %32 = arith.addf %30, %31 : vector<512x128xf32>
    %33 = math.log %32 : vector<512x128xf32>
    %34 = tpu.transpose %33, [1, 0] : vector<512x128xf32> -> vector<128x512xf32>
    %c0_21 = arith.constant 0 : index
    %c0_22 = arith.constant 0 : index
    %c0_23 = arith.constant 0 : index
    %35 = vector.load %arg7[%c0_21, %c0_22, %c0_23] : memref<1x128x512xf32, #tpu.memory_space<vmem>>, vector<1x128x512xf32>
    %36 = vector.shape_cast %35 : vector<1x128x512xf32> to vector<128x512xf32>
    %37 = vector.shape_cast %34 : vector<128x512xf32> to vector<1x128x512xf32>
    tpu.vector_store %arg7[%c0_21, %c0_22, %c0_23], %37 {strides = array<i32>} : memref<1x128x512xf32, #tpu.memory_space<vmem>>, vector<1x128x512xf32>,
    %c512_i32 = arith.constant 512 : i32
    %38 = arith.muli %arg1, %c512_i32 : i32
    %39 = tpu.iota {dimensions = array<i32: 0>} : vector<512x1xi32>
    %40 = vector.broadcast %38 : i32 to vector<512x1xi32>
    %41 = arith.addi %40, %39 : vector<512x1xi32>
    %42 = arith.index_cast %arg0 : i32 to index
    %43 = memref.load %arg2[%42] : memref<2xi32, #tpu.memory_space<smem>>
    %44 = vector.broadcast %43 : i32 to vector<512x1xi32>
    %45 = arith.cmpi slt, %41, %44 : vector<512x1xi32>
    %cst_24 = arith.constant 0.000000e+00 : f32
    %46 = vector.shape_cast %45 : vector<512x1xi1> to vector<512x1xi1>
    %47 = vector.broadcast %46 : vector<512x1xi1> to vector<512x128xi1>
    %48 = vector.broadcast %cst_24 : f32 to vector<512x128xf32>
    %49 = arith.select %47, %33, %48 : vector<512x128xi1>, vector<512x128xf32>
    %cst_25 = arith.constant dense<0.000000e+00> : vector<128xf32>
    %50 = vector.multi_reduction <add>, %49, %cst_25 [0] : vector<512x128xf32> to vector<128xf32>
    %51 = vector.shape_cast %50 : vector<128xf32> to vector<1x128xf32>
    %52 = arith.mulf %49, %49 : vector<512x128xf32>
    %cst_26 = arith.constant dense<0.000000e+00> : vector<128xf32>
    %53 = vector.multi_reduction <add>, %52, %cst_26 [0] : vector<512x128xf32> to vector<128xf32>
    %54 = vector.shape_cast %53 : vector<128xf32> to vector<1x128xf32>
    %55 = tpu.concatenate %51, %54 in 0 : vector<1x128xf32>, vector<1x128xf32> -> vector<2x128xf32>
    %c0_27 = arith.constant 0 : index
    %c0_28 = arith.constant 0 : index
    %c0_29 = arith.constant 0 : index
    %c0_30 = arith.constant 0 : index
    %56 = vector.load %arg8[%c0_27, %c0_28, %c0_29, %c0_30] : memref<1x1x2x128xf32, #tpu.memory_space<vmem>>, vector<1x1x2x128xf32>
    %57 = vector.shape_cast %56 : vector<1x1x2x128xf32> to vector<2x128xf32>
    %58 = vector.shape_cast %55 : vector<2x128xf32> to vector<1x1x2x128xf32>
    tpu.vector_store %arg8[%c0_27, %c0_28, %c0_29, %c0_30], %58 {strides = array<i32>} : memref<1x1x2x128xf32, #tpu.memory_space<vmem>>, vector<1x1x2x128xf32>,
    return
  }
  func.func @transform_0(%arg0: i32, %arg1: i32, %arg2: memref<2xi32, #tpu.memory_space<smem>>) -> (i32, i32, i32) {
    %c0_i32 = arith.constant 0 : i32
    %c0_i32_0 = arith.constant 0 : i32
    return %arg0, %arg1, %c0_i32 : i32, i32, i32
  }
  func.func @transform_1(%arg0: i32, %arg1: i32, %arg2: memref<2xi32, #tpu.memory_space<smem>>) -> (i32, i32, i32) {
    %c1_i32 = arith.constant 1 : i32
    %0 = arith.addi %arg1, %c1_i32 : i32
    %c64_i32 = arith.constant 64 : i32
    %1 = arith.muli %0, %c64_i32 : i32
    %c0_i32 = arith.constant 0 : i32
    %c0_i32_0 = arith.constant 0 : i32
    return %arg0, %1, %c0_i32 : i32, i32, i32
  }
  func.func @transform_2(%arg0: i32, %arg1: i32, %arg2: memref<2xi32, #tpu.memory_space<smem>>) -> (i32, i32, i32) {
    %c0_i32 = arith.constant 0 : i32
    %c0_i32_0 = arith.constant 0 : i32
    %c0_i32_1 = arith.constant 0 : i32
    %c0_i32_2 = arith.constant 0 : i32
    return %c0_i32, %c0_i32_0, %c0_i32_1 : i32, i32, i32
  }
  func.func @transform_3(%arg0: i32, %arg1: i32, %arg2: memref<2xi32, #tpu.memory_space<smem>>) -> (i32, i32) {
    %c0_i32 = arith.constant 0 : i32
    %c0_i32_0 = arith.constant 0 : i32
    %c0_i32_1 = arith.constant 0 : i32
    return %c0_i32, %c0_i32_0 : i32, i32
  }
  func.func @transform_4(%arg0: i32, %arg1: i32, %arg2: memref<2xi32, #tpu.memory_space<smem>>) -> (i32, i32, i32) {
    %c0_i32 = arith.constant 0 : i32
    %c0_i32_0 = arith.constant 0 : i32
    return %arg0, %c0_i32, %arg1 : i32, i32, i32
  }
  func.func @transform_5(%arg0: i32, %arg1: i32, %arg2: memref<2xi32, #tpu.memory_space<smem>>) -> (i32, i32, i32, i32) {
    %c0_i32 = arith.constant 0 : i32
    %c0_i32_0 = arith.constant 0 : i32
    %c0_i32_1 = arith.constant 0 : i32
    return %arg0, %arg1, %c0_i32, %c0_i32_0 : i32, i32, i32, i32
  }
}

</mosaic_0001>

<bundles_post_ra>
// kernel: tpu_custom_call.1
= control target key start
LH: loop header
LB: loop body
LE: loop exit
PB: predicated region body
PF: predicated region fallthrough
CT: control target
= control target key end

     0   :  { %s5928_s24 = smov [#allocation3]   ;;  %s8835_s0 = inlined_call_operand.vmem [shape: s32[2], index: 0, kind: input, shape index: {}]   ;;  %s8836_s1 = inlined_call_operand.vmem [shape: f32[2,520,80], index: 1, kind: input, shape index: {}]   ;;  %s8837_s2 = inlined_call_operand.vmem [shape: f32[2,520,80], index: 2, kind: input, shape index: {}]   ;;  %s8838_s3 = inlined_call_operand.vmem [shape: f32[4,80,256], index: 3, kind: input, shape index: {}]   ;;  %s8839_s4 = inlined_call_operand.vmem [shape: f32[128,128], index: 4, kind: input, shape index: {}]   ;;  %s8840_s5 = inlined_call_operand.hbm [shape: f32[2,128,512], index: 5, kind: output, shape index: {0}]   ;;  %s8841_s6 = inlined_call_operand.hbm [shape: f32[2,1,2,128], index: 6, kind: output, shape index: {1}]  }
   0x1   :  { %s13_s23 = sshll.u32 %s8835_s0, 4  ;;  %s14_s23 = int_to_ptr.vmem [resolvable:$true] %s13_s23 }
   0x2   :  { %16 = dma.vmem_to_smem %s14_s23, 16, %s5928_s24, [#allocation2] }
   0x3   :  { %5894 = dma.done.wait [#allocation2], 16 }
   0x4   :  { %5895 = vsyncadd [#allocation2], 4294967280 }
   0x5   :  { %19 = sfence }
   0x6   :  { %20 = vsyncpa [#allocation5], 0 }
   0x7   :  { %22 = vsyncpa [#allocation5 + $0x1], 0 }
   0x8   :  { %23 = vsyncpa [#allocation7], 0 }
   0x9   :  { %25 = vsyncpa [#allocation7 + $0x1], 0  ;;  %s5969_s25 = smov 0   ;;  %s5971_s26 = smov 0  }
   0xa   :  { %s5973_s27 = smov 0   ;;  %s5975_s28 = smov 0  }
   0xb   :  { %s5977_s29 = smov 0   ;;  %s5979_s0 = smov 0  }
   0xc LB: > { %s4885_s30 = sadd.s32 4294967295, %s5926_s0   ;;  %s4886_s7 = sadd.s32 4294967294, %s5926_s0   ;;  %s5926_s0 = sphi %s5979_s0, %s31_s0   ;;  %s5922_s29 = sphi %s5977_s29, %s9407_s29   ;;  %s5918_s28 = sphi %s5975_s28, %s9406_s28   ;;  %s5914_s27 = sphi %s5973_s27, %s9405_s27   ;;  %s5910_s26 = sphi %s5971_s26, %s9404_s26   ;;  %s5906_s25 = sphi %s5969_s25, %s9403_s25  }
   0xd   : > { %s43_s8 = sadd.s32 1, %s5922_s29  ;;  %s154_s9 = sadd.s32 1, %s5914_s27 }
   0xe   : > { %p45_p0 = scmp.ge.s32.totalorder %s43_s8, 2  ;;  %p164_p1 = scmp.ne.s32.totalorder %s5914_s27, %s5910_s26 }
   0xf   : > { %p165_p2 = scmp.eq.s32.totalorder %s4885_s30, 1  ;;  %p170_p3 = scmp.ne.s32.totalorder %s5910_s26, %s5906_s25 }
  0x10   : > { %s9409_s8 = smov (%p45_p0, %s43_s8), 0  ;;  %p171_p5 = scmp.eq.s32.totalorder %s4886_s7, 1 }
  0x11   : > { %p6009_p4 = por %p165_p2, %p164_p1  ;;  %s149_s11 = ssub.s32 %s5922_s29, %s9409_s8 }
  0x12   : > { %p4889_p6 = scmp.ge.s32.totalorder %s5926_s0, 1  ;;  %p152_p7 = scmp.eq.s32.totalorder %s149_s11, 0 }
  0x13   : > { %p6016_p8 = por %p171_p5, %p170_p3  ;;  %p259_p9 = scmp.lt.s32.totalorder %s5926_s0, 3 }
  0x14   : > { %s6022_s13 = scalar_select %p152_p7, %s5914_s27, %s154_s9  }
  0x15   : > { %p260_p10 = pnand %p4889_p6, %p259_p9 }
  0x17   : > { %263 = sbr.rel (%p260_p10) target bundleno = 1637 (0x665), region = 36 }
  0x1c   : > { %v4912_v0 = vld [vmem:[%s8838_s3 + $0x130] sm:$0xff]  ;;  %v4910_v1 = vld [vmem:[%s8838_s3 + $0x120] sm:$0xff]  ;;  %p315_p11 = scmp.lt.s32.totalorder %s5918_s28, 1  ;;  %vm512_vm0 = vcmask 1046528   ;;  %vm642_vm1 = vcmask 654336   ;;  %v425_v31 = vld [vmem:[%s8838_s3 + $0x98] sm:$0xff] }
  0x1d   : > { %5476 = vmatpush.msra.mxu1 %v4912_v0  ;;  %5477 = vmatpush.msra.mxu2 %v4912_v0  ;;  %v4908_v2 = vld [vmem:[%s8838_s3 + $0x110] sm:$0xff]  ;;  %v4906_v3 = vld [vmem:[%s8838_s3 + $0x100] sm:$0xff]  ;;  %v4913_v34 = vld [vmem:[%s8838_s3 + $0x138] sm:$0xff]  ;;  %vm1756_vm2 = vcmask 1045504   ;;  %vm2581_vm3 = vcmask 1044480   ;;  %s5470_s16 = sshll.u32 %s5918_s28, 1 }
  0x1e   : > { %5478 = vmatpush.msra.mxu3 %v4912_v0  ;;  %777 = vmatpush.msra.mxu0 %v4912_v0  ;;  %s6035_s20 = scalar_select %p315_p11, %s5918_s28, 1  ;;  %v4904_v4 = vld [vmem:[%s8838_s3 + $0xf0] sm:$0xff]  ;;  %v4902_v5 = vld [vmem:[%s8838_s3 + $0xe0] sm:$0xff]  ;;  %v423_v40 = vld [vmem:[%s8838_s3 + $0x88] sm:$0xff] }
  0x1f   : > { %5479 = vmatpush.msra.mxu1 %v4910_v1  ;;  %5480 = vmatpush.msra.mxu2 %v4910_v1  ;;  %v4900_v6 = vld [vmem:[%s8838_s3 + $0xd0] sm:$0xff]  ;;  %v4898_v13 = vld [vmem:[%s8838_s3 + $0xc0] sm:$0xff]  ;;  %v4911_v42 = vld [vmem:[%s8838_s3 + $0x128] sm:$0xff]  ;;  %s4752_s18 = scalar_lea.hbm %s8841_s6, %s5470_s16 }
  0x20   : > { %5481 = vmatpush.msra.mxu3 %v4910_v1  ;;  %778 = vmatpush.msra.mxu0 %v4910_v1  ;;  %s5506_s23 = smul.u32 520, %s6035_s20  ;;  %v4896_v14 = vld [vmem:[%s8838_s3 + $0xb0] sm:$0xff]  ;;  %v4894_v23 = vld [vmem:[%s8838_s3 + $0xa0] sm:$0xff]  ;;  %v421_v44 = vld [vmem:[%s8838_s3 + $0x78] sm:$0xff]  ;;  %s4756_s21 = sshll.u32 %s4752_s18, 4  ;;  %s4757_s21 = int_to_ptr.hbm [resolvable:$true] %s4756_s21 }
  0x21   : > { %5482 = vmatpush.msra.mxu1 %v4908_v2  ;;  %5483 = vmatpush.msra.mxu2 %v4908_v2  ;;  %v424_v29 = vld [vmem:[%s8838_s3 + $0x90] sm:$0xff]  ;;  %v422_v37 = vld [vmem:[%s8838_s3 + $0x80] sm:$0xff]  ;;  %v4909_v45 = vld [vmem:[%s8838_s3 + $0x118] sm:$0xff]  ;;  %s5828_s24 = sshra.s32 %s4757_s21, 4  ;;  %s5829_s24 = int_to_ptr.hbm [resolvable:$true] %s5828_s24 }
  0x22   : > { %5484 = vmatpush.msra.mxu3 %v4908_v2  ;;  %779 = vmatpush.msra.mxu0 %v4908_v2  ;;  %s6049_s11 = scalar_lea.vmem %s8836_s1, %s5506_s23  ;;  %v420_v43 = vld [vmem:[%s8838_s3 + $0x70] sm:$0xff]  ;;  %v418_v48 = vld [vmem:[%s8838_s3 + $0x60] sm:$0xff]  ;;  %v419_v54 = vld [vmem:[%s8838_s3 + $0x68] sm:$0xff]  ;;  %s5474_s7 = sadd.s32 512, %s5506_s23 }
  0x23   : > { %5485 = vmatpush.msra.mxu1 %v4906_v3  ;;  %5486 = vmatpush.msra.mxu2 %v4906_v3  ;;  %v6058_v7 = vld [vmem:[%s6049_s11 + $0x80] sm:$0xff]  ;;  %v6061_v8 = vld [vmem:[%s6049_s11 + $0x88] sm:$0xff]  ;;  %v359_v30 = vld [vmem:[%s6049_s11 + $0x90] sm:$0xff]  ;;  %s6654_s17 = scalar_lea.vmem %s8837_s2, %s5474_s7  ;;  %s4253_s7 = sld [smem:[#allocation3 + %s5918_s28]] }
  0x24   : > { %5487 = vmatpush.msra.mxu3 %v4906_v3  ;;  %780 = vmatpush.msra.mxu0 %v4906_v3  ;;  %v6064_v9 = vld [vmem:[%s6049_s11 + $0x100] sm:$0xff]  ;;  %v6067_v10 = vld [vmem:[%s6049_s11 + $0x108] sm:$0xff]  ;;  %v8842_v15 = vrot.slane %v6058_v7, 1  ;;  %v546_v16 = vrot.slane %v6061_v8, 1  ;;  %v375_v32 = vld [vmem:[%s6049_s11 + $0x110] sm:$0xff]  ;;  %v548_v36 = vrot.slane %v359_v30, 1  ;;  %p5835_p1 = scmp.lt.s32.totalorder %s5829_s24, %s8841_s6 }
  0x25   : > { %5488 = vmatpush.msra.mxu1 %v4904_v4  ;;  %5489 = vmatpush.msra.mxu2 %v4904_v4  ;;  %v6070_v11 = vld [vmem:[%s6049_s11 + $0x180] sm:$0xff]  ;;  %v6073_v12 = vld [vmem:[%s6049_s11 + $0x188] sm:$0xff]  ;;  %v8844_v17 = vrot.slane %v6064_v9, 1  ;;  %v578_v18 = vrot.slane %v6067_v10, 1  ;;  %v391_v33 = vld [vmem:[%s6049_s11 + $0x190] sm:$0xff]  ;;  %v580_v38 = vrot.slane %v375_v32, 1 }
  0x26   : > { %5490 = vmatpush.msra.mxu3 %v4904_v4  ;;  %781 = vmatpush.msra.mxu0 %v4904_v4  ;;  %v8843_v19 = vrot.slane %v6070_v11, 1  ;;  %v610_v20 = vrot.slane %v6073_v12, 1  ;;  %v6088_v21 = vld [vmem:[%s6049_s11] sm:$0xff]  ;;  %v6091_v22 = vld [vmem:[%s6049_s11 + $0x8] sm:$0xff]  ;;  %v6099_v24 = vsel %vm512_vm0, %v8842_v15, %v546_v16  ;;  %v612_v39 = vrot.slane %v391_v33, 1  ;;  %v6141_v41 = vld [vmem:[%s6049_s11 + $0x10] sm:$0xff] }
  0x27   : > { %5491 = vmatpush.msra.mxu1 %v4902_v5  ;;  %5492 = vmatpush.msra.mxu2 %v4902_v5  ;;  %v513_v25 = vrot.slane %v6088_v21, 1  ;;  %v514_v26 = vrot.slane %v6091_v22, 1  ;;  %v6106_v27 = vsel %vm512_vm0, %v8844_v17, %v578_v18  ;;  %v6158_v46 = vsel %vm512_vm0, %v546_v16, %v548_v36  ;;  %v6171_v51 = vld [vmem:[%s6049_s11 + $0x98] sm:$0xff]  ;;  %v4907_v57 = vld [vmem:[%s8838_s3 + $0x108] sm:$0xff]  ;;  %v6207_v1 = vld [vmem:[%s6049_s11 + $0xa0] sm:$0xff]  ;;  %s5830_s30 = scalar_lea.hbm %s5829_s24, 2 }
  0x28   : > { %5493 = vmatpush.msra.mxu3 %v4902_v5  ;;  %782 = vmatpush.msra.mxu0 %v4902_v5  ;;  %8942 = vst [vmem:[#allocation11_spill] sm:$0xff] %v6106_v27  ;;  %v6111_v28 = vsel %vm512_vm0, %v8843_v19, %v610_v20  ;;  %v516_v47 = vrot.slane %v6141_v41, 1  ;;  %v6165_v49 = vsel %vm512_vm0, %v578_v18, %v580_v38  ;;  %v376_v52 = vld [vmem:[%s6049_s11 + $0x118] sm:$0xff]  ;;  %v550_v56 = vrot.slane %v6171_v51, 1  ;;  %v377_v2 = vld [vmem:[%s6049_s11 + $0x120] sm:$0xff]  ;;  %v4899_v15 = vld [vmem:[%s8838_s3 + $0xc8] sm:$0xff]  ;;  %p5831_p12 = scmp.ne.s32.totalorder %s5829_s24, %s5830_s30 }
  0x29   : > { %5494 = vmatpush.msra.mxu1 %v4900_v6  ;;  %5495 = vmatpush.msra.mxu2 %v4900_v6  ;;  %8943 = vst [vmem:[#allocation12_spill] sm:$0xff] %v6111_v28  ;;  %v6132_v35 = vsel %vm512_vm0, %v513_v25, %v514_v26  ;;  %v6168_v50 = vsel %vm512_vm0, %v610_v20, %v612_v39  ;;  %v392_v53 = vld [vmem:[%s6049_s11 + $0x198] sm:$0xff]  ;;  %v582_v58 = vrot.slane %v376_v52, 1  ;;  %v393_v3 = vld [vmem:[%s6049_s11 + $0x1a0] sm:$0xff]  ;;  %v552_v5 = vrot.slane %v6207_v1, 1  ;;  %v378_v25 = vld [vmem:[%s6049_s11 + $0x128] sm:$0xff] }
  0x2a   : > { %5496 = vmatpush.msra.mxu3 %v4900_v6  ;;  %783 = vmatpush.msra.mxu0 %v4900_v6  ;;  %8944 = vst [vmem:[#allocation13_spill] sm:$0xff] %v6165_v49  ;;  %v6185_v55 = vsel %vm512_vm0, %v514_v26, %v516_v47  ;;  %v614_v59 = vrot.slane %v392_v53, 1  ;;  %v6192_v60 = vld [vmem:[%s6049_s11 + $0x18] sm:$0xff]  ;;  %v6197_v61 = vsel %vm512_vm0, %v548_v36, %v550_v56  ;;  %v416_v6 = vld [vmem:[%s8838_s3 + $0x50] sm:$0xff]  ;;  %v584_v10 = vrot.slane %v377_v2, 1  ;;  %v394_v26 = vld [vmem:[%s6049_s11 + $0x1a8] sm:$0xff]  ;;  %p5832_p13 = pnand %p5831_p12, %p6009_p4 }
  0x2b   : > { %5497 = vmatpush.msra.mxu1 %v4898_v13  ;;  %5498 = vmatpush.msra.mxu2 %v4898_v13  ;;  %8945 = vst [vmem:[#allocation14_spill] sm:$0xff] %v6168_v50  ;;  %v518_v62 = vrot.slane %v6192_v60, 1  ;;  %v6201_v63 = vsel %vm512_vm0, %v580_v38, %v582_v58  ;;  %v417_v8 = vld [vmem:[%s8838_s3 + $0x58] sm:$0xff]  ;;  %v616_v12 = vrot.slane %v393_v3, 1  ;;  %v586_v32 = vrot.slane %v378_v25, 1  ;;  %v4903_v52 = vld [vmem:[%s8838_s3 + $0xe8] sm:$0xff] }
  0x2c   : > { %5499 = vmatpush.msra.mxu3 %v4898_v13  ;;  %784 = vmatpush.msra.mxu0 %v4898_v13  ;;  %8946 = vst [vmem:[#allocation15_spill] sm:$0xff] %v6201_v63  ;;  %v6204_v0 = vsel %vm512_vm0, %v612_v39, %v614_v59  ;;  %v6228_v13 = vld [vmem:[%s6049_s11 + $0x20] sm:$0xff]  ;;  %v6237_v18 = vsel %vm512_vm0, %v582_v58, %v584_v10  ;;  %v618_v33 = vrot.slane %v394_v26, 1  ;;  %v6315_v2 = vld [vmem:[%s6049_s11 + $0xb8] sm:$0xff]  ;;  %v6408_v17 = vld [vmem:[%s6049_s11 + $0x48] sm:$0xff]  ;;  %p5833_p0 = pneg %p5832_p13 }
  0x2d   : > { %5500 = vmatpush.msra.mxu1 %v4896_v14  ;;  %5501 = vmatpush.msra.mxu2 %v4896_v14  ;;  %8947 = vst [vmem:[#allocation16_spill] sm:$0xff] %v6204_v0  ;;  %v6218_v4 = vsel %vm512_vm0, %v516_v47, %v518_v62  ;;  %v520_v16 = vrot.slane %v6228_v13, 1  ;;  %v6240_v20 = vsel %vm512_vm0, %v614_v59, %v616_v12  ;;  %v414_v47 = vld [vmem:[%s8838_s3 + $0x40] sm:$0xff]  ;;  %v380_v3 = vld [vmem:[%s6049_s11 + $0x138] sm:$0xff] }
  0x2e   : > { %5502 = vmatpush.msra.mxu3 %v4896_v14  ;;  %785 = vmatpush.msra.mxu0 %v4896_v14  ;;  %v6233_v14 = vsel %vm512_vm0, %v550_v56, %v552_v5  ;;  %8948 = vst [vmem:[#allocation17_spill] sm:$0xff] %v6237_v18  ;;  %v6270_v38 = vsel %vm512_vm0, %v584_v10, %v586_v32  ;;  %v6300_v56 = vld [vmem:[%s6049_s11 + $0x30] sm:$0xff]  ;;  %v6336_v26 = vld [vmem:[%s6049_s11 + $0x38] sm:$0xff] }
  0x2f   : > { %5503 = vmatpush.msra.mxu1 %v4894_v23  ;;  %5504 = vmatpush.msra.mxu2 %v4894_v23  ;;  %8949 = vst [vmem:[#allocation18_spill] sm:$0xff] %v6240_v20  ;;  %v6273_v39 = vsel %vm512_vm0, %v616_v12, %v618_v33  ;;  %v524_v58 = vrot.slane %v6300_v56, 1  ;;  %v412_v10 = vld [vmem:[%s8838_s3 + $0x30] sm:$0xff]  ;;  %v413_v12 = vld [vmem:[%s8838_s3 + $0x38] sm:$0xff] }
  0x30   : > { %5505 = vmatpush.msra.mxu3 %v4894_v23  ;;  %4930 = vmatmul.msk.f32.vlgmr.msra.gmra.mxu1 %vm642_vm1, %v6099_v24  ;;  %8950 = vst [vmem:[#allocation19_spill] sm:$0xff] %v6270_v38 }
  0x31   : > { %4946 = vmatmul.msk.f32.vlgmr.msra.gmra.mxu2 %vm642_vm1, %v6106_v27  ;;  %4962 = vmatmul.msk.f32.vlgmr.msra.gmra.mxu3 %vm642_vm1, %v6111_v28  ;;  %8951 = vst [vmem:[#allocation20_spill] sm:$0xff] %v6273_v39 }
  0x32   : > { %1323 = vmatpush.msrb.mxu2 %v424_v29  ;;  %1532 = vmatpush.msrb.mxu3 %v425_v31  ;;  %v6254_v29 = vsel %vm512_vm0, %v518_v62, %v520_v16  ;;  %v4905_v31 = vld [vmem:[%s8838_s3 + $0xf8] sm:$0xff] }
  0x33   : > { %986 = vmatpush.msrb.mxu1 %v4913_v34  ;;  %786 = vmatpush.msra.mxu0 %v4894_v23  ;;  %v6243_v23 = vld [vmem:[%s6049_s11 + $0xa8] sm:$0xff] }
  0x34   : > { %4914 = vmatmul.msk.f32.vlgmr.msra.gmra.mxu0 %vm642_vm1, %v6132_v35  ;;  %1324 = vmatpush.msrb.mxu2 %v422_v37  ;;  %v554_v30 = vrot.slane %v6243_v23, 1  ;;  %v6261_v34 = vld [vmem:[%s6049_s11 + $0x28] sm:$0xff] }
  0x35   : > { %1533 = vmatpush.msrb.mxu3 %v423_v40  ;;  %987 = vmatpush.msrb.mxu1 %v4911_v42  ;;  %v522_v37 = vrot.slane %v6261_v34, 1  ;;  %v6276_v40 = vld [vmem:[%s6049_s11 + $0xb0] sm:$0xff] }
  0x36   : > { %1325 = vmatpush.msrb.mxu2 %v420_v43  ;;  %v6266_v36 = vsel %vm512_vm0, %v552_v5, %v554_v30  ;;  %v379_v42 = vld [vmem:[%s6049_s11 + $0x130] sm:$0xff]  ;;  %v396_v5 = vld [vmem:[%s6049_s11 + $0x1b8] sm:$0xff] }
  0x37   : > { %1534 = vmatpush.msrb.mxu3 %v421_v44  ;;  %988 = vmatpush.msrb.mxu1 %v4909_v45  ;;  %v395_v43 = vld [vmem:[%s6049_s11 + $0x1b0] sm:$0xff]  ;;  %v6287_v44 = vsel %vm512_vm0, %v520_v16, %v522_v37  ;;  %v556_v45 = vrot.slane %v6276_v40, 1  ;;  %v588_v53 = vrot.slane %v379_v42, 1  ;;  %v590_v16 = vrot.slane %v380_v3, 1  ;;  %v381_v42 = vld [vmem:[%s6049_s11 + $0x140] sm:$0xff] }
  0x38   : > { %4931 = vmatmul.msk.f32.gmra.mxu1 %vm642_vm1, %v6158_v46  ;;  %1326 = vmatpush.msrb.mxu2 %v418_v48  ;;  %v415_v48 = vld [vmem:[%s8838_s3 + $0x48] sm:$0xff]  ;;  %v622_v25 = vrot.slane %v396_v5, 1 }
  0x39   : > { %4947 = vmatmul.msk.f32.gmra.mxu2 %vm642_vm1, %v6165_v49  ;;  %4963 = vmatmul.msk.f32.gmra.mxu3 %vm642_vm1, %v6168_v50  ;;  %v6309_v59 = vsel %vm512_vm0, %v586_v32, %v588_v53  ;;  %v6345_v32 = vsel %vm512_vm0, %v588_v53, %v590_v16 }
  0x3a   : > { %1535 = vmatpush.msrb.mxu3 %v419_v54  ;;  %989 = vmatpush.msrb.mxu1 %v4907_v57  ;;  %v620_v54 = vrot.slane %v395_v43, 1  ;;  %v6305_v57 = vsel %vm512_vm0, %v554_v30, %v556_v45  ;;  %8952 = vst [vmem:[#allocation21_spill] sm:$0xff] %v6309_v59  ;;  %v397_v43 = vld [vmem:[%s6049_s11 + $0x1c0] sm:$0xff] }
  0x3b   : > { %1327 = vmatpush.msrb.mxu2 %v416_v6  ;;  %v6326_v6 = vsel %vm512_vm0, %v522_v37, %v524_v58  ;;  %8954 = vst [vmem:[#allocation23_spill] sm:$0xff] %v6345_v32  ;;  %v6351_v37 = vld [vmem:[%s6049_s11 + $0xc0] sm:$0xff]  ;;  %v624_v53 = vrot.slane %v397_v43, 1  ;;  %v398_v43 = vld [vmem:[%s6049_s11 + $0x1c8] sm:$0xff] }
  0x3c   : > { %4915 = vmatmul.msk.f32.gmra.mxu0 %vm642_vm1, %v6185_v55  ;;  %1536 = vmatpush.msrb.mxu3 %v417_v8  ;;  %v6312_v62 = vsel %vm512_vm0, %v618_v33, %v620_v54  ;;  %v558_v8 = vrot.slane %v6315_v2, 1  ;;  %v6348_v33 = vsel %vm512_vm0, %v620_v54, %v622_v25  ;;  %v6369_v54 = vld [vmem:[%s6049_s11 + $0x40] sm:$0xff] }
  0x3d   : > { %990 = vmatpush.msrb.mxu1 %v4905_v31  ;;  %1328 = vmatpush.msrb.mxu2 %v414_v47  ;;  %8953 = vst [vmem:[#allocation22_spill] sm:$0xff] %v6312_v62  ;;  %v526_v31 = vrot.slane %v6336_v26, 1  ;;  %v560_v47 = vrot.slane %v6351_v37, 1 }
  0x3e   : > { %1537 = vmatpush.msrb.mxu3 %v415_v48  ;;  %v6341_v30 = vsel %vm512_vm0, %v556_v45, %v558_v8  ;;  %8955 = vst [vmem:[#allocation24_spill] sm:$0xff] %v6348_v33  ;;  %v4901_v48 = vld [vmem:[%s8838_s3 + $0xd8] sm:$0xff] }
  0x3f   : > { %991 = vmatpush.msrb.mxu1 %v4903_v52  ;;  %1329 = vmatpush.msrb.mxu2 %v412_v10  ;;  %v6362_v45 = vsel %vm512_vm0, %v524_v58, %v526_v31  ;;  %v592_v52 = vrot.slane %v381_v42, 1  ;;  %v6374_v3 = vsel %vm512_vm0, %v558_v8, %v560_v47  ;;  %v528_v58 = vrot.slane %v6369_v54, 1  ;;  %v382_v42 = vld [vmem:[%s6049_s11 + $0x148] sm:$0xff] }
  0x40   : > { %4932 = vmatmul.msk.f32.gmra.mxu1 %vm642_vm1, %v6197_v61  ;;  %1538 = vmatpush.msrb.mxu3 %v413_v12  ;;  %v6381_v10 = vsel %vm512_vm0, %v622_v25, %v624_v53  ;;  %v6384_v12 = vld [vmem:[%s6049_s11 + $0xc8] sm:$0xff]  ;;  %v410_v25 = vld [vmem:[%s8838_s3 + $0x20] sm:$0xff]  ;;  %v594_v19 = vrot.slane %v382_v42, 1 }
  0x41   : > { %4948 = vmatmul.msk.f32.gmra.mxu2 %vm642_vm1, %v6201_v63  ;;  %4964 = vmatmul.msk.f32.gmra.mxu3 %vm642_vm1, %v6204_v0  ;;  %v6378_v5 = vsel %vm512_vm0, %v590_v16, %v592_v52  ;;  %8957 = vst [vmem:[#allocation26_spill] sm:$0xff] %v6381_v10  ;;  %v6395_v8 = vsel %vm512_vm0, %v526_v31, %v528_v58  ;;  %v562_v16 = vrot.slane %v6384_v12, 1  ;;  %v626_v31 = vrot.slane %v398_v43, 1  ;;  %v6423_v43 = vld [vmem:[%s6049_s11 + $0xd0] sm:$0xff] }
  0x42   : > { %992 = vmatpush.msrb.mxu1 %v4901_v48  ;;  %8956 = vst [vmem:[#allocation25_spill] sm:$0xff] %v6378_v5  ;;  %v411_v48 = vld [vmem:[%s8838_s3 + $0x28] sm:$0xff]  ;;  %1330 = vmatpush.msrb.mxu2 %v410_v25  ;;  %v383_v25 = vld [vmem:[%s6049_s11 + $0x150] sm:$0xff] }
  0x43   : > { %1539 = vmatpush.msrb.mxu3 %v411_v48  ;;  %v6420_v42 = vsel %vm512_vm0, %v624_v53, %v626_v31  ;;  %8960 = vst [vmem:[#allocation29_spill] sm:$0xff] %v6423_v43  ;;  %v399_v48 = vld [vmem:[%s6049_s11 + $0x1d0] sm:$0xff]  ;;  %v409_v53 = vld [vmem:[%s8838_s3 + $0x18] sm:$0xff] }
  0x44   : > { %4916 = vmatmul.msk.f32.gmra.mxu0 %vm642_vm1, %v6218_v4  ;;  %993 = vmatpush.msrb.mxu1 %v4899_v15  ;;  %8959 = vst [vmem:[#allocation28_spill] sm:$0xff] %v6420_v42  ;;  %v6444_v0 = vld [vmem:[%s6049_s11 + $0x50] sm:$0xff] }
  0x45   : > { %1540 = vmatpush.msrb.mxu3 %v409_v53 }
  0x48   : > { %4933 = vmatmul.msk.f32.gmra.mxu1 %vm642_vm1, %v6233_v14 }
  0x49   : > { %4949 = vmatmul.msk.f32.gmra.mxu2 %vm642_vm1, %v6237_v18  ;;  %4965 = vmatmul.msk.f32.gmra.mxu3 %vm642_vm1, %v6240_v20  ;;  %v628_v20 = vrot.slane %v399_v48, 1  ;;  %v384_v48 = vld [vmem:[%s6049_s11 + $0x158] sm:$0xff]  ;;  %v5186_v18 = vld [vmem:[%s8838_s3 + $0x1c0] sm:$0xff] }
  0x4a   : > { %v598_v53 = vrot.slane %v384_v48, 1  ;;  %v6492_v48 = vld [vmem:[%s6049_s11 + $0xe0] sm:$0xff] }
  0x4b   : > { %v6456_v28 = vsel %vm512_vm0, %v626_v31, %v628_v20  ;;  %v4897_v31 = vld [vmem:[%s8838_s3 + $0xb8] sm:$0xff]  ;;  %8968 = vst [vmem:[#allocation37_spill] sm:$0xff] %v6492_v48 }
  0x4c   : > { %4917 = vmatmul.msk.f32.gmra.mxu0 %vm642_vm1, %v6254_v29  ;;  %8963 = vst [vmem:[#allocation32_spill] sm:$0xff] %v6456_v28  ;;  %994 = vmatpush.msrb.mxu1 %v4897_v31  ;;  %v407_v31 = vld [vmem:[%s8838_s3 + $0x8] sm:$0xff] }
  0x4d   : > { %1541 = vmatpush.msrb.mxu3 %v407_v31  ;;  %v386_v31 = vld [vmem:[%s6049_s11 + $0x168] sm:$0xff] }
  0x50   : > { %4934 = vmatmul.msk.f32.gmra.mxu1 %vm642_vm1, %v6266_v36 }
  0x51   : > { %4950 = vmatmul.msk.f32.gmra.mxu2 %vm642_vm1, %v6270_v38  ;;  %4966 = vmatmul.msk.f32.gmra.mxu3 %vm642_vm1, %v6273_v39  ;;  %v596_v39 = vrot.slane %v383_v25, 1  ;;  %v6459_v25 = vld [vmem:[%s6049_s11 + $0xd8] sm:$0xff]  ;;  %v6516_v38 = vld [vmem:[%s6049_s11 + $0x60] sm:$0xff] }
  0x52   : > { %8964 = vst [vmem:[#allocation33_spill] sm:$0xff] %v6459_v25  ;;  %v536_v49 = vrot.slane %v6516_v38, 1 }
  0x53   : > { %v6453_v50 = vsel %vm512_vm0, %v594_v19, %v596_v39 }
  0x54   : > { %4918 = vmatmul.msk.f32.gmra.mxu0 %vm642_vm1, %v6287_v44  ;;  %8962 = vst [vmem:[#allocation31_spill] sm:$0xff] %v6453_v50 }
  0x58   : > { %4935 = vmatmul.msk.f32.gmra.mxu1 %vm642_vm1, %v6305_v57 }
  0x59   : > { %4951 = vmatmul.msk.f32.gmra.mxu2 %vm642_vm1, %v6309_v59  ;;  %4967 = vmatmul.msk.f32.gmra.mxu3 %vm642_vm1, %v6312_v62  ;;  %v6417_v62 = vsel %vm512_vm0, %v592_v52, %v594_v19  ;;  %v408_v52 = vld [vmem:[%s8838_s3 + $0x10] sm:$0xff]  ;;  %v401_v59 = vld [vmem:[%s6049_s11 + $0x1e0] sm:$0xff] }
  0x5a   : > { %8958 = vst [vmem:[#allocation27_spill] sm:$0xff] %v6417_v62  ;;  %1331 = vmatpush.msrb.mxu2 %v408_v52  ;;  %v400_v52 = vld [vmem:[%s6049_s11 + $0x1d8] sm:$0xff] }
  0x5c   : > { %4919 = vmatmul.msk.f32.gmra.mxu0 %vm642_vm1, %v6326_v6 }
  0x60   : > { %4936 = vmatmul.msk.f32.gmra.mxu1 %vm642_vm1, %v6341_v30 }
  0x61   : > { %4952 = vmatmul.msk.f32.gmra.mxu2 %vm642_vm1, %v6345_v32  ;;  %4968 = vmatmul.msk.f32.gmra.mxu3 %vm642_vm1, %v6348_v33  ;;  %v530_v33 = vrot.slane %v6408_v17, 1 }
  0x63   : > { %v6434_v15 = vsel %vm512_vm0, %v528_v58, %v530_v33 }
  0x64   : > { %4920 = vmatmul.msk.f32.gmra.mxu0 %vm642_vm1, %v6362_v45 }
  0x68   : > { %4937 = vmatmul.msk.f32.gmra.mxu1 %vm642_vm1, %v6374_v3 }
  0x69   : > { %4953 = vmatmul.msk.f32.gmra.mxu2 %vm642_vm1, %v6378_v5  ;;  %4969 = vmatmul.msk.f32.gmra.mxu3 %vm642_vm1, %v6381_v10  ;;  %v6413_v10 = vsel %vm512_vm0, %v560_v47, %v562_v16  ;;  %v564_v47 = vrot.slane %v6423_v43, 1  ;;  %v6477_v5 = vld [vmem:[%s6049_s11 + $0x58] sm:$0xff] }
  0x6a   : > { %v404_v43 = vld [vmem:[%s6049_s11 + $0x1f8] sm:$0xff] }
  0x6b   : > { %v6449_v58 = vsel %vm512_vm0, %v562_v16, %v564_v47  ;;  %v566_v16 = vrot.slane %v6459_v25, 1 }
  0x6c   : > { %4921 = vmatmul.msk.f32.gmra.mxu0 %vm642_vm1, %v6395_v8  ;;  %8961 = vst [vmem:[#allocation30_spill] sm:$0xff] %v6449_v58 }
  0x70   : > { %4938 = vmatmul.msk.f32.gmra.mxu1 %vm642_vm1, %v6413_v10 }
  0x71   : > { %4954 = vmatmul.msk.f32.gmra.mxu2 %vm642_vm1, %v6417_v62  ;;  %4970 = vmatmul.msk.f32.gmra.mxu3 %vm642_vm1, %v6420_v42  ;;  %v532_v42 = vrot.slane %v6444_v0, 1  ;;  %v630_v62 = vrot.slane %v400_v52, 1  ;;  %v385_v52 = vld [vmem:[%s6049_s11 + $0x160] sm:$0xff] }
  0x73   : > { %v6470_v19 = vsel %vm512_vm0, %v530_v33, %v532_v42  ;;  %v534_v33 = vrot.slane %v6477_v5, 1  ;;  %v6489_v32 = vsel %vm512_vm0, %v628_v20, %v630_v62  ;;  %v406_v20 = vld [vmem:[%s8838_s3] sm:$0xff] }
  0x74   : > { %4922 = vmatmul.msk.f32.gmra.mxu0 %vm642_vm1, %v6434_v15  ;;  %8967 = vst [vmem:[#allocation36_spill] sm:$0xff] %v6489_v32  ;;  %1332 = vmatpush.msrb.mxu2 %v406_v20  ;;  %v6534_v20 = vld [vmem:[%s6049_s11 + $0xe8] sm:$0xff] }
  0x75   : > { %8972 = vst [vmem:[#allocation41_spill] sm:$0xff] %v6534_v20 }
  0x78   : > { %4939 = vmatmul.msk.f32.gmra.mxu1 %vm642_vm1, %v6449_v58  ;;  %v388_v58 = vld [vmem:[%s6049_s11 + $0x178] sm:$0xff] }
  0x79   : > { %4955 = vmatmul.msk.f32.gmra.mxu2 %vm642_vm1, %v6453_v50  ;;  %4971 = vmatmul.msk.f32.gmra.mxu3 %vm642_vm1, %v6456_v28  ;;  %v6482_v50 = vsel %vm512_vm0, %v564_v47, %v566_v16  ;;  %v6486_v28 = vsel %vm512_vm0, %v596_v39, %v598_v53  ;;  %v6503_v47 = vsel %vm512_vm0, %v532_v42, %v534_v33  ;;  %v568_v39 = vrot.slane %v6492_v48, 1  ;;  %v387_v48 = vld [vmem:[%s6049_s11 + $0x170] sm:$0xff] }
  0x7a   : > { %8965 = vst [vmem:[#allocation34_spill] sm:$0xff] %v6482_v50  ;;  %v632_v42 = vrot.slane %v401_v59, 1 }
  0x7b   : > { %8966 = vst [vmem:[#allocation35_spill] sm:$0xff] %v6486_v28  ;;  %v6524_v63 = vsel %vm512_vm0, %v566_v16, %v568_v39  ;;  %v570_v16 = vrot.slane %v6534_v20, 1 }
  0x7c   : > { %4923 = vmatmul.msk.f32.gmra.mxu0 %vm642_vm1, %v6470_v19  ;;  %8969 = vst [vmem:[#allocation38_spill] sm:$0xff] %v6524_v63 }
  0x80   : > { %4940 = vmatmul.msk.f32.gmra.mxu1 %vm642_vm1, %v6482_v50  ;;  %v403_v50 = vld [vmem:[%s6049_s11 + $0x1f0] sm:$0xff] }
  0x81   : > { %4956 = vmatmul.msk.f32.gmra.mxu2 %vm642_vm1, %v6486_v28  ;;  %4972 = vmatmul.msk.f32.gmra.mxu3 %vm642_vm1, %v6489_v32  ;;  %v5188_v28 = vld [vmem:[%s8838_s3 + $0x1d0] sm:$0xff]  ;;  %v600_v32 = vrot.slane %v385_v52, 1  ;;  %v6531_v52 = vsel %vm512_vm0, %v630_v62, %v632_v42  ;;  %v4895_v62 = vld [vmem:[%s8838_s3 + $0xa8] sm:$0xff]  ;;  %v636_v25 = vrot.slane %v403_v50, 1  ;;  %v5189_v50 = vld [vmem:[%s8838_s3 + $0x1d8] sm:$0xff] }
  0x82   : > { %2020 = vmatpush.msrb.mxu0 %v5188_v28  ;;  %8971 = vst [vmem:[#allocation40_spill] sm:$0xff] %v6531_v52  ;;  %v402_v28 = vld [vmem:[%s6049_s11 + $0x1e8] sm:$0xff]  ;;  %995 = vmatpush.msrb.mxu1 %v4895_v62 }
  0x83   : > { %v6528_v59 = vsel %vm512_vm0, %v598_v53, %v600_v32  ;;  %v5184_v53 = vld [vmem:[%s8838_s3 + $0x1b0] sm:$0xff]  ;;  %v634_v27 = vrot.slane %v402_v28, 1 }
  0x84   : > { %4924 = vmatmul.msk.f32.gmra.mxu0 %vm642_vm1, %v6503_v47  ;;  %8970 = vst [vmem:[#allocation39_spill] sm:$0xff] %v6528_v59  ;;  %2229 = vmatpush.msra.mxu1 %v5189_v50  ;;  %v6644_v50 = vld [vmem:[%s6049_s11 + $0x78] sm:$0xff] }
  0x85   : > { %2021 = vmatpush.msrb.mxu0 %v5186_v18  ;;  %v6545_v18 = vsel %vm512_vm0, %v534_v33, %v536_v49  ;;  %v5182_v33 = vld [vmem:[%s8838_s3 + $0x1a0] sm:$0xff]  ;;  %v6573_v62 = vsel %vm512_vm0, %v632_v42, %v634_v27 }
  0x86   : > { %8975 = vst [vmem:[#allocation44_spill] sm:$0xff] %v6573_v62 }
  0x87   : > { %2022 = vmatpush.msrb.mxu0 %v5184_v53  ;;  %v6576_v53 = vld [vmem:[%s6049_s11 + $0xf0] sm:$0xff] }
  0x88   : > { %4941 = vmatmul.msk.f32.gmra.mxu1 %vm642_vm1, %v6524_v63  ;;  %v6555_v63 = vld [vmem:[%s6049_s11 + $0x68] sm:$0xff]  ;;  %8976 = vst [vmem:[#allocation45_spill] sm:$0xff] %v6576_v53  ;;  %v572_v42 = vrot.slane %v6576_v53, 1  ;;  %v6624_v53 = vld [vmem:[%s6049_s11 + $0xf8] sm:$0xff] }
  0x89   : > { %4957 = vmatmul.msk.f32.gmra.mxu2 %vm642_vm1, %v6528_v59  ;;  %4973 = vmatmul.msk.f32.gmra.mxu3 %vm642_vm1, %v6531_v52  ;;  %v602_v59 = vrot.slane %v386_v31, 1  ;;  %v6563_v52 = vsel %vm512_vm0, %v568_v39, %v570_v16  ;;  %v538_v20 = vrot.slane %v6555_v63, 1  ;;  %v5180_v31 = vld [vmem:[%s8838_s3 + $0x190] sm:$0xff]  ;;  %v5178_v39 = vld [vmem:[%s8838_s3 + $0x180] sm:$0xff] }
  0x8a   : > { %8973 = vst [vmem:[#allocation42_spill] sm:$0xff] %v6563_v52  ;;  %2023 = vmatpush.msrb.mxu0 %v5182_v33  ;;  %v5336_v33 = vld [vmem:[%s8838_s3 + $0x270] sm:$0xff] }
  0x8b   : > { %v6570_v28 = vsel %vm512_vm0, %v600_v32, %v602_v59  ;;  %v6590_v32 = vsel %vm512_vm0, %v536_v49, %v538_v20  ;;  %2845 = vmatpush.msra.mxu2 %v5336_v33  ;;  %v5176_v49 = vld [vmem:[%s8838_s3 + $0x170] sm:$0xff] }
  0x8c   : > { %4925 = vmatmul.msk.f32.gmra.mxu0 %vm642_vm1, %v6545_v18  ;;  %8974 = vst [vmem:[#allocation43_spill] sm:$0xff] %v6570_v28 }
  0x8d   : > { %2024 = vmatpush.msrb.mxu0 %v5180_v31  ;;  %v5337_v31 = vld [vmem:[%s8838_s3 + $0x278] sm:$0xff] }
  0x8e   : > { %3054 = vmatpush.msra.mxu3 %v5337_v31  ;;  %v6621_v31 = vsel %vm512_vm0, %v634_v27, %v636_v25 }
  0x8f   : > { %2025 = vmatpush.msrb.mxu0 %v5178_v39  ;;  %8979 = vst [vmem:[#allocation48_spill] sm:$0xff] %v6621_v31 }
  0x90   : > { %4942 = vmatmul.msk.f32.gmra.mxu1 %vm642_vm1, %v6563_v52  ;;  %v604_v52 = vrot.slane %v387_v48, 1  ;;  %v5174_v48 = vld [vmem:[%s8838_s3 + $0x160] sm:$0xff] }
  0x91   : > { %4958 = vmatmul.msk.f32.gmra.mxu2 %vm642_vm1, %v6570_v28  ;;  %4974 = vmatmul.msk.f32.gmra.mxu3 %vm642_vm1, %v6573_v62  ;;  %v6600_v28 = vld [vmem:[%s6049_s11 + $0x70] sm:$0xff]  ;;  %v6614_v62 = vsel %vm512_vm0, %v570_v16, %v572_v42 }
  0x92   : > { %8977 = vst [vmem:[#allocation46_spill] sm:$0xff] %v6614_v62  ;;  %v540_v39 = vrot.slane %v6600_v28, 1  ;;  %2026 = vmatpush.msrb.mxu0 %v5176_v49  ;;  %v6618_v33 = vsel %vm512_vm0, %v602_v59, %v604_v52  ;;  %v5172_v16 = vld [vmem:[%s8838_s3 + $0x150] sm:$0xff]  ;;  %v574_v59 = vrot.slane %v6624_v53, 1  ;;  %v606_v49 = vrot.slane %v388_v58, 1 }
  0x93   : > { %8978 = vst [vmem:[#allocation47_spill] sm:$0xff] %v6618_v33 }
  0x94   : > { %4926 = vmatmul.msk.f32.gmra.mxu0 %vm642_vm1, %v6590_v32  ;;  %v6638_v27 = vsel %vm512_vm0, %v538_v20, %v540_v39  ;;  %v6657_v20 = vsel %vm512_vm0, %v572_v42, %v574_v59  ;;  %v6661_v58 = vsel %vm512_vm0, %v604_v52, %v606_v49 }
  0x95   : > { %2027 = vmatpush.msrb.mxu0 %v5174_v48  ;;  %v638_v48 = vrot.slane %v404_v43, 1  ;;  %8980 = vst [vmem:[#allocation49_spill] sm:$0xff] %v6657_v20  ;;  %v542_v43 = vrot.slane %v6644_v50, 1 }
  0x96   : > { %8981 = vst [vmem:[#allocation50_spill] sm:$0xff] %v6661_v58 }
  0x97   : > { %2028 = vmatpush.msrb.mxu0 %v5172_v16  ;;  %v6664_v16 = vsel %vm512_vm0, %v636_v25, %v638_v48  ;;  %v6674_v42 = vsel %vm512_vm0, %v540_v39, %v542_v43  ;;  %v8983_v25 = vrot.slane %v6064_v9, 1  ;;  %v8987_v9 = vrot.slane %v6058_v7, 1 }
  0x98   : > { %4943 = vmatmul.msk.f32.gmra.mxu1 %vm642_vm1, %v6614_v62  ;;  %v5170_v62 = vld [vmem:[%s8838_s3 + $0x140] sm:$0xff]  ;;  %8982 = vst [vmem:[#allocation51_spill] sm:$0xff] %v6664_v16 }
  0x99   : > { %4959 = vmatmul.msk.f32.gmra.mxu2 %vm642_vm1, %v6618_v33  ;;  %4975 = vmatmul.msk.f32.gmra.mxu3 %vm642_vm1, %v6621_v31  ;;  %v405_v31 = vld [vmem:[%s6654_s17] sm:$0xff]  ;;  %v6681_v52 = vsel %vm512_vm0, %v574_v59, %v8983_v25  ;;  %v8984_v33 = vrot.slane %v6070_v11, 1  ;;  %v6700_v39 = vsel %vm512_vm0, %v542_v43, %v8987_v9 }
  0x9a   : > { %2029 = vmatpush.msrb.mxu0 %v5170_v62  ;;  %v640_v62 = vrot.slane %v405_v31, 1  ;;  %v1758_v31 = vrot.slane %v6091_v22, 2 }
  0x9c   : > { %4927 = vmatmul.msk.f32.gmra.mxu0 %vm642_vm1, %v6638_v27 }
  0xa0   : > { %4944 = vmatmul.msk.f32.gmra.mxu1 %vm642_vm1, %v6657_v20  ;;  %v6686_v20 = vsel %vm512_vm0, %v606_v49, %v8984_v33  ;;  %v1757_v33 = vrot.slane %v6088_v21, 2 }
  0xa1   : > { %4960 = vmatmul.msk.f32.gmra.mxu2 %vm642_vm1, %v6661_v58  ;;  %4976 = vmatmul.msk.f32.gmra.mxu3 %vm642_vm1, %v6664_v16  ;;  %8985 = vst [vmem:[#allocation52_spill] sm:$0xff] %v6686_v20  ;;  %v6689_v58 = vsel %vm512_vm0, %v638_v48, %v640_v62 }
  0xa2   : > { %8986 = vst [vmem:[#allocation53_spill] sm:$0xff] %v6689_v58  ;;  %v6717_v59 = vsel %vm1756_vm2, %v1757_v33, %v1758_v31 }
  0xa3   : > { %8988 = vst [vmem:[#allocation54_spill] sm:$0xff] %v6717_v59 }
  0xa4   : > { %4928 = vmatmul.msk.f32.gmra.mxu0 %vm642_vm1, %v6674_v42 }
  0xa8   : > { %4945 = vmatmul.msk.f32.gmra.mxu1 %vm642_vm1, %v6681_v52 }
  0xa9   : > { %4961 = vmatmul.msk.f32.gmra.mxu2 %vm642_vm1, %v6686_v20  ;;  %4977 = vmatmul.msk.f32.gmra.mxu3 %vm642_vm1, %v6689_v58 }
  0xac   : > { %4929 = vmatmul.msk.f32.gmra.mxu0 %vm642_vm1, %v6700_v39 }
  0xad   : > { %v6704_v11 = vpop.f32.mrf.mxu1 }
  0xb0   : > { %4978 = vmatmul.msk.f32.vlgmr.msrb.gmra.mxu1 %vm642_vm1, %v6132_v35  ;;  %v1760_v35 = vrot.slane %v6141_v41, 2 }
  0xb1   : > { %5042 = vmatmul.msk.f32.vlgmr.msrb.gmra.mxu2 %vm642_vm1, %v6088_v21  ;;  %5106 = vmatmul.msk.f32.vlgmr.msrb.gmra.mxu3 %vm642_vm1, %v6088_v21  ;;  %v6714_v7 = vpop.f32.mrf.mxu0 }
  0xb2   : > { %v6737_v62 = vsel %vm1756_vm2, %v1758_v31, %v1760_v35 }
  0xb3   : > { %8991 = vst [vmem:[#allocation57_spill] sm:$0xff] %v6737_v62 }
  0xb4   : > { %v6719_v49 = vpop.f32.mrf.mxu2  ;;  %v6721_v48 = vpop.f32.mrf.mxu3  ;;  %5190 = vmatmul.msk.f32.vlgmr.msrb.gmra.mxu0 %vm642_vm1, %v6717_v59  ;;  %v5187_v59 = vld [vmem:[%s8838_s3 + $0x1c8] sm:$0xff] }
  0xb5   : > { %8989 = vst [vmem:[#allocation55_spill] sm:$0xff] %v6719_v49  ;;  %v6725_v43 = vpop.f32.mrf.mxu1  ;;  %2230 = vmatpush.msra.mxu1 %v5187_v59 }
  0xb6   : > { %8990 = vst [vmem:[#allocation56_spill] sm:$0xff] %v6721_v48 }
  0xb8   : > { %4979 = vmatmul.msk.f32.gmra.mxu1 %vm642_vm1, %v6185_v55  ;;  %v1762_v55 = vrot.slane %v6192_v60, 2 }
  0xb9   : > { %5043 = vmatmul.msk.f32.gmra.mxu2 %vm642_vm1, %v6091_v22  ;;  %5107 = vmatmul.msk.f32.gmra.mxu3 %vm642_vm1, %v6091_v22  ;;  %v6734_v21 = vpop.f32.mrf.mxu0 }
  0xba   : > { %v6757_v31 = vsel %vm1756_vm2, %v1760_v35, %v1762_v55  ;;  %v1764_v35 = vrot.slane %v6228_v13, 2 }
  0xbb   : > { %8994 = vst [vmem:[#allocation60_spill] sm:$0xff] %v6757_v31 }
  0xbc   : > { %v6739_v25 = vpop.f32.mrf.mxu2  ;;  %v6741_v9 = vpop.f32.mrf.mxu3  ;;  %5191 = vmatmul.msk.f32.gmra.mxu0 %vm642_vm1, %v6737_v62 }
  0xbd   : > { %8992 = vst [vmem:[#allocation58_spill] sm:$0xff] %v6739_v25  ;;  %v6745_v33 = vpop.f32.mrf.mxu1 }
  0xbe   : > { %8993 = vst [vmem:[#allocation59_spill] sm:$0xff] %v6741_v9 }
  0xc0   : > { %4980 = vmatmul.msk.f32.gmra.mxu1 %vm642_vm1, %v6218_v4  ;;  %v5334_v4 = vld [vmem:[%s8838_s3 + $0x260] sm:$0xff] }
  0xc1   : > { %5044 = vmatmul.msk.f32.gmra.mxu2 %vm642_vm1, %v6141_v41  ;;  %5108 = vmatmul.msk.f32.gmra.mxu3 %vm642_vm1, %v6141_v41  ;;  %v6754_v22 = vpop.f32.mrf.mxu0  ;;  %v5335_v41 = vld [vmem:[%s8838_s3 + $0x268] sm:$0xff] }
  0xc2   : > { %2846 = vmatpush.msra.mxu2 %v5334_v4  ;;  %3055 = vmatpush.msra.mxu3 %v5335_v41 }
  0xc4   : > { %v6759_v9 = vpop.f32.mrf.mxu2  ;;  %v6761_v48 = vpop.f32.mrf.mxu3  ;;  %5192 = vmatmul.msk.f32.gmra.mxu0 %vm642_vm1, %v6757_v31  ;;  %v6783_v31 = vsel %vm1756_vm2, %v1762_v55, %v1764_v35 }
  0xc5   : > { %8995 = vst [vmem:[#allocation61_spill] sm:$0xff] %v6759_v9  ;;  %v6771_v62 = vpop.f32.mrf.mxu1  ;;  %v5183_v9 = vld [vmem:[%s8838_s3 + $0x1a8] sm:$0xff] }
  0xc6   : > { %8996 = vst [vmem:[#allocation62_spill] sm:$0xff] %v6761_v48 }
  0xc7   : > { %8997 = vst [vmem:[#allocation63_spill] sm:$0xff] %v6783_v31 }
  0xc8   : > { %4981 = vmatmul.msk.f32.gmra.mxu1 %vm642_vm1, %v6254_v29 }
  0xc9   : > { %5045 = vmatmul.msk.f32.gmra.mxu2 %vm642_vm1, %v6192_v60  ;;  %5109 = vmatmul.msk.f32.gmra.mxu3 %vm642_vm1, %v6192_v60  ;;  %v6780_v48 = vpop.f32.mrf.mxu0  ;;  %v1766_v60 = vrot.slane %v6261_v34, 2 }
  0xcb   : > { %v6806_v55 = vsel %vm1756_vm2, %v1764_v35, %v1766_v60 }
  0xcc   : > { %v6788_v4 = vpop.f32.mrf.mxu2  ;;  %v6790_v41 = vpop.f32.mrf.mxu3  ;;  %5193 = vmatmul.msk.f32.gmra.mxu0 %vm642_vm1, %v6783_v31  ;;  %9000 = vst [vmem:[#allocation66_spill] sm:$0xff] %v6806_v55 }
  0xcd   : > { %8998 = vst [vmem:[#allocation64_spill] sm:$0xff] %v6788_v4  ;;  %v6794_v29 = vpop.f32.mrf.mxu1 }
  0xce   : > { %8999 = vst [vmem:[#allocation65_spill] sm:$0xff] %v6790_v41 }
  0xd0   : > { %4982 = vmatmul.msk.f32.gmra.mxu1 %vm642_vm1, %v6287_v44  ;;  %v1768_v44 = vrot.slane %v6300_v56, 2 }
  0xd1   : > { %5046 = vmatmul.msk.f32.gmra.mxu2 %vm642_vm1, %v6228_v13  ;;  %5110 = vmatmul.msk.f32.gmra.mxu3 %vm642_vm1, %v6228_v13  ;;  %v6803_v59 = vpop.f32.mrf.mxu0 }
  0xd2   : > { %v6826_v35 = vsel %vm1756_vm2, %v1766_v60, %v1768_v44 }
  0xd3   : > { %9003 = vst [vmem:[#allocation69_spill] sm:$0xff] %v6826_v35 }
  0xd4   : > { %v6808_v41 = vpop.f32.mrf.mxu2  ;;  %v6810_v31 = vpop.f32.mrf.mxu3  ;;  %5194 = vmatmul.msk.f32.gmra.mxu0 %vm642_vm1, %v6806_v55 }
  0xd5   : > { %9001 = vst [vmem:[#allocation67_spill] sm:$0xff] %v6808_v41  ;;  %v6814_v58 = vpop.f32.mrf.mxu1 }
  0xd6   : > { %9002 = vst [vmem:[#allocation68_spill] sm:$0xff] %v6810_v31 }
  0xd8   : > { %4983 = vmatmul.msk.f32.gmra.mxu1 %vm642_vm1, %v6326_v6  ;;  %v1770_v6 = vrot.slane %v6336_v26, 2 }
  0xd9   : > { %5047 = vmatmul.msk.f32.gmra.mxu2 %vm642_vm1, %v6261_v34  ;;  %5111 = vmatmul.msk.f32.gmra.mxu3 %vm642_vm1, %v6261_v34  ;;  %v6823_v13 = vpop.f32.mrf.mxu0 }
  0xda   : > { %v6846_v60 = vsel %vm1756_vm2, %v1768_v44, %v1770_v6 }
  0xdb   : > { %9006 = vst [vmem:[#allocation72_spill] sm:$0xff] %v6846_v60 }
  0xdc   : > { %v6828_v31 = vpop.f32.mrf.mxu2  ;;  %v6830_v55 = vpop.f32.mrf.mxu3  ;;  %5195 = vmatmul.msk.f32.gmra.mxu0 %vm642_vm1, %v6826_v35 }
  0xdd   : > { %9004 = vst [vmem:[#allocation70_spill] sm:$0xff] %v6828_v31  ;;  %v6834_v16 = vpop.f32.mrf.mxu1 }
  0xde   : > { %9005 = vst [vmem:[#allocation71_spill] sm:$0xff] %v6830_v55 }
  0xe0   : > { %4984 = vmatmul.msk.f32.gmra.mxu1 %vm642_vm1, %v6362_v45  ;;  %v1772_v45 = vrot.slane %v6369_v54, 2 }
  0xe1   : > { %5048 = vmatmul.msk.f32.gmra.mxu2 %vm642_vm1, %v6300_v56  ;;  %5112 = vmatmul.msk.f32.gmra.mxu3 %vm642_vm1, %v6300_v56  ;;  %v6843_v34 = vpop.f32.mrf.mxu0 }
  0xe2   : > { %v6866_v44 = vsel %vm1756_vm2, %v1770_v6, %v1772_v45 }
  0xe3   : > { %9009 = vst [vmem:[#allocation75_spill] sm:$0xff] %v6866_v44 }
  0xe4   : > { %v6848_v55 = vpop.f32.mrf.mxu2  ;;  %v6850_v35 = vpop.f32.mrf.mxu3  ;;  %5196 = vmatmul.msk.f32.gmra.mxu0 %vm642_vm1, %v6846_v60 }
  0xe5   : > { %9007 = vst [vmem:[#allocation73_spill] sm:$0xff] %v6848_v55  ;;  %v6854_v31 = vpop.f32.mrf.mxu1 }
  0xe6   : > { %9008 = vst [vmem:[#allocation74_spill] sm:$0xff] %v6850_v35 }
  0xe8   : > { %4985 = vmatmul.msk.f32.gmra.mxu1 %vm642_vm1, %v6395_v8  ;;  %v1774_v8 = vrot.slane %v6408_v17, 2 }
  0xe9   : > { %5049 = vmatmul.msk.f32.gmra.mxu2 %vm642_vm1, %v6336_v26  ;;  %5113 = vmatmul.msk.f32.gmra.mxu3 %vm642_vm1, %v6336_v26  ;;  %v6863_v56 = vpop.f32.mrf.mxu0 }
  0xea   : > { %v6886_v6 = vsel %vm1756_vm2, %v1772_v45, %v1774_v8  ;;  %v5333_v45 = vld [vmem:[%s8838_s3 + $0x258] sm:$0xff] }
  0xeb   : > { %9012 = vst [vmem:[#allocation78_spill] sm:$0xff] %v6886_v6  ;;  %3056 = vmatpush.msra.mxu3 %v5333_v45 }
  0xec   : > { %v6868_v35 = vpop.f32.mrf.mxu2  ;;  %v6870_v60 = vpop.f32.mrf.mxu3  ;;  %5197 = vmatmul.msk.f32.gmra.mxu0 %vm642_vm1, %v6866_v44 }
  0xed   : > { %9010 = vst [vmem:[#allocation76_spill] sm:$0xff] %v6868_v35  ;;  %v6874_v55 = vpop.f32.mrf.mxu1 }
  0xee   : > { %9011 = vst [vmem:[#allocation77_spill] sm:$0xff] %v6870_v60 }
  0xf0   : > { %4986 = vmatmul.msk.f32.gmra.mxu1 %vm642_vm1, %v6434_v15  ;;  %v1776_v15 = vrot.slane %v6444_v0, 2 }
  0xf1   : > { %5050 = vmatmul.msk.f32.gmra.mxu2 %vm642_vm1, %v6369_v54  ;;  %5114 = vmatmul.msk.f32.gmra.mxu3 %vm642_vm1, %v6369_v54  ;;  %v6883_v26 = vpop.f32.mrf.mxu0  ;;  %v5332_v54 = vld [vmem:[%s8838_s3 + $0x250] sm:$0xff] }
  0xf2   : > { %2847 = vmatpush.msra.mxu2 %v5332_v54 }
  0xf4   : > { %v6888_v60 = vpop.f32.mrf.mxu2  ;;  %v6890_v44 = vpop.f32.mrf.mxu3  ;;  %5198 = vmatmul.msk.f32.gmra.mxu0 %vm642_vm1, %v6886_v6 }
  0xf5   : > { %9013 = vst [vmem:[#allocation79_spill] sm:$0xff] %v6888_v60  ;;  %v6894_v35 = vpop.f32.mrf.mxu1  ;;  %v6912_v60 = vsel %vm1756_vm2, %v1774_v8, %v1776_v15 }
  0xf6   : > { %9014 = vst [vmem:[#allocation80_spill] sm:$0xff] %v6890_v44 }
  0xf7   : > { %9015 = vst [vmem:[#allocation81_spill] sm:$0xff] %v6912_v60 }
  0xf8   : > { %4987 = vmatmul.msk.f32.gmra.mxu1 %vm642_vm1, %v6470_v19  ;;  %v5185_v19 = vld [vmem:[%s8838_s3 + $0x1b8] sm:$0xff] }
  0xf9   : > { %5051 = vmatmul.msk.f32.gmra.mxu2 %vm642_vm1, %v6408_v17  ;;  %5115 = vmatmul.msk.f32.gmra.mxu3 %vm642_vm1, %v6408_v17  ;;  %v6909_v44 = vpop.f32.mrf.mxu0  ;;  %v1778_v17 = vrot.slane %v6477_v5, 2 }
  0xfa   : > { %2231 = vmatpush.msra.mxu1 %v5185_v19 }
  0xfb   : > { %v6935_v45 = vsel %vm1756_vm2, %v1776_v15, %v1778_v17 }
  0xfc   : > { %v6914_v6 = vpop.f32.mrf.mxu2  ;;  %v6916_v41 = vpop.f32.mrf.mxu3  ;;  %5199 = vmatmul.msk.f32.gmra.mxu0 %vm642_vm1, %v6912_v60  ;;  %9018 = vst [vmem:[#allocation84_spill] sm:$0xff] %v6935_v45  ;;  %2232 = vmatpush.msra.mxu1 %v5183_v9 }
  0xfd   : > { %9016 = vst [vmem:[#allocation82_spill] sm:$0xff] %v6914_v6  ;;  %v6923_v54 = vpop.f32.mrf.mxu1 }
  0xfe   : > { %9017 = vst [vmem:[#allocation83_spill] sm:$0xff] %v6916_v41 }
 0x100   : > { %4988 = vmatmul.msk.f32.gmra.mxu1 %vm642_vm1, %v6503_v47  ;;  %v1780_v47 = vrot.slane %v6516_v38, 2 }
 0x101   : > { %5052 = vmatmul.msk.f32.gmra.mxu2 %vm642_vm1, %v6444_v0  ;;  %5116 = vmatmul.msk.f32.gmra.mxu3 %vm642_vm1, %v6444_v0  ;;  %v6932_v8 = vpop.f32.mrf.mxu0 }
 0x102   : > { %v6955_v15 = vsel %vm1756_vm2, %v1778_v17, %v1780_v47 }
 0x103   : > { %9021 = vst [vmem:[#allocation87_spill] sm:$0xff] %v6955_v15 }
 0x104   : > { %v6937_v41 = vpop.f32.mrf.mxu2  ;;  %v6939_v6 = vpop.f32.mrf.mxu3  ;;  %5200 = vmatmul.msk.f32.gmra.mxu0 %vm642_vm1, %v6935_v45 }
 0x105   : > { %9019 = vst [vmem:[#allocation85_spill] sm:$0xff] %v6937_v41  ;;  %v6943_v19 = vpop.f32.mrf.mxu1 }
 0x106   : > { %9020 = vst [vmem:[#allocation86_spill] sm:$0xff] %v6939_v6 }
 0x108   : > { %4989 = vmatmul.msk.f32.gmra.mxu1 %vm642_vm1, %v6545_v18  ;;  %v1782_v18 = vrot.slane %v6555_v63, 2 }
 0x109   : > { %5053 = vmatmul.msk.f32.gmra.mxu2 %vm642_vm1, %v6477_v5  ;;  %5117 = vmatmul.msk.f32.gmra.mxu3 %vm642_vm1, %v6477_v5  ;;  %v6952_v0 = vpop.f32.mrf.mxu0 }
 0x10a   : > { %v6975_v17 = vsel %vm1756_vm2, %v1780_v47, %v1782_v18 }
 0x10b   : > { %9024 = vst [vmem:[#allocation90_spill] sm:$0xff] %v6975_v17 }
 0x10c   : > { %v6957_v6 = vpop.f32.mrf.mxu2  ;;  %v6959_v41 = vpop.f32.mrf.mxu3  ;;  %5201 = vmatmul.msk.f32.gmra.mxu0 %vm642_vm1, %v6955_v15 }
 0x10d   : > { %9022 = vst [vmem:[#allocation88_spill] sm:$0xff] %v6957_v6  ;;  %v6963_v45 = vpop.f32.mrf.mxu1 }
 0x10e   : > { %9023 = vst [vmem:[#allocation89_spill] sm:$0xff] %v6959_v41 }
 0x110   : > { %4990 = vmatmul.msk.f32.gmra.mxu1 %vm642_vm1, %v6590_v32  ;;  %v1784_v32 = vrot.slane %v6600_v28, 2 }
 0x111   : > { %5054 = vmatmul.msk.f32.gmra.mxu2 %vm642_vm1, %v6516_v38  ;;  %5118 = vmatmul.msk.f32.gmra.mxu3 %vm642_vm1, %v6516_v38  ;;  %v6972_v5 = vpop.f32.mrf.mxu0 }
 0x112   : > { %v6995_v47 = vsel %vm1756_vm2, %v1782_v18, %v1784_v32 }
 0x113   : > { %9027 = vst [vmem:[#allocation93_spill] sm:$0xff] %v6995_v47 }
 0x114   : > { %v6977_v41 = vpop.f32.mrf.mxu2  ;;  %v6979_v6 = vpop.f32.mrf.mxu3  ;;  %5202 = vmatmul.msk.f32.gmra.mxu0 %vm642_vm1, %v6975_v17 }
 0x115   : > { %9025 = vst [vmem:[#allocation91_spill] sm:$0xff] %v6977_v41  ;;  %v6983_v15 = vpop.f32.mrf.mxu1 }
 0x116   : > { %9026 = vst [vmem:[#allocation92_spill] sm:$0xff] %v6979_v6  ;;  %v3592_v6 = vld [vmem:[%s8839_s4 + $0x78] sm:$0xff] }
 0x117   : > { %3593 = vmatpush.msra.mxu0 %v3592_v6 }
 0x118   : > { %4991 = vmatmul.msk.f32.gmra.mxu1 %vm642_vm1, %v6638_v27 }
 0x119   : > { %5055 = vmatmul.msk.f32.gmra.mxu2 %vm642_vm1, %v6555_v63  ;;  %5119 = vmatmul.msk.f32.gmra.mxu3 %vm642_vm1, %v6555_v63  ;;  %v6992_v38 = vpop.f32.mrf.mxu0  ;;  %v1786_v63 = vrot.slane %v6644_v50, 2 }
 0x11b   : > { %v7018_v18 = vsel %vm1756_vm2, %v1784_v32, %v1786_v63 }
 0x11c   : > { %v7000_v41 = vpop.f32.mrf.mxu2  ;;  %v7002_v27 = vpop.f32.mrf.mxu3  ;;  %5203 = vmatmul.msk.f32.gmra.mxu0 %vm642_vm1, %v6995_v47  ;;  %9030 = vst [vmem:[#allocation96_spill] sm:$0xff] %v7018_v18 }
 0x11d   : > { %9028 = vst [vmem:[#allocation94_spill] sm:$0xff] %v7000_v41  ;;  %v7006_v17 = vpop.f32.mrf.mxu1 }
 0x11e   : > { %9029 = vst [vmem:[#allocation95_spill] sm:$0xff] %v7002_v27 }
 0x120   : > { %4992 = vmatmul.msk.f32.gmra.mxu1 %vm642_vm1, %v6674_v42  ;;  %v5700_v42 = vld [vmem:[%s6049_s11 + $0x80] sm:$0xff] }
 0x121   : > { %5056 = vmatmul.msk.f32.gmra.mxu2 %vm642_vm1, %v6600_v28  ;;  %5120 = vmatmul.msk.f32.gmra.mxu3 %vm642_vm1, %v6600_v28  ;;  %v7015_v6 = vpop.f32.mrf.mxu0  ;;  %v1788_v60 = vrot.slane %v5700_v42, 2 }
 0x123   : > { %v7038_v32 = vsel %vm1756_vm2, %v1786_v63, %v1788_v60  ;;  %v5701_v63 = vld [vmem:[%s6049_s11 + $0x88] sm:$0xff] }
 0x124   : > { %v7020_v27 = vpop.f32.mrf.mxu2  ;;  %v7022_v41 = vpop.f32.mrf.mxu3  ;;  %5204 = vmatmul.msk.f32.gmra.mxu0 %vm642_vm1, %v7018_v18  ;;  %9034 = vst [vmem:[#allocation100_spill] sm:$0xff] %v7038_v32  ;;  %v1790_v4 = vrot.slane %v5701_v63, 2 }
 0x125   : > { %9031 = vst [vmem:[#allocation97_spill] sm:$0xff] %v7020_v27  ;;  %v7026_v47 = vpop.f32.mrf.mxu1  ;;  %v5331_v27 = vld [vmem:[%s8838_s3 + $0x248] sm:$0xff] }
 0x126   : > { %9032 = vst [vmem:[#allocation98_spill] sm:$0xff] %v7022_v41  ;;  %v5330_v41 = vld [vmem:[%s8838_s3 + $0x240] sm:$0xff]  ;;  %3057 = vmatpush.msra.mxu3 %v5331_v27  ;;  %v7061_v27 = vsel %vm1756_vm2, %v1788_v60, %v1790_v4 }
 0x127   : > { %9033 = vst [vmem:[#allocation99_spill] sm:$0xff] %v7026_v47  ;;  %2848 = vmatpush.msra.mxu2 %v5330_v41 }
 0x128   : > { %4993 = vmatmul.msk.f32.gmra.mxu1 %vm642_vm1, %v6700_v39 }
 0x129   : > { %5057 = vmatmul.msk.f32.gmra.mxu2 %vm642_vm1, %v6644_v50  ;;  %5121 = vmatmul.msk.f32.gmra.mxu3 %vm642_vm1, %v6644_v50  ;;  %v7035_v28 = vpop.f32.mrf.mxu0 }
 0x12c   : > { %v7046_v39 = vpop.f32.mrf.mxu2  ;;  %v7048_v18 = vpop.f32.mrf.mxu3  ;;  %5205 = vmatmul.msk.f32.gmra.mxu0 %vm642_vm1, %v7038_v32 }
 0x12d   : > { %9035 = vst [vmem:[#allocation101_spill] sm:$0xff] %v7046_v39  ;;  %v997_v50 = vpop.f32.mrf.mxu1 }
 0x12e   : > { %9036 = vst [vmem:[#allocation102_spill] sm:$0xff] %v7048_v18 }
 0x130   : > { %4994 = vmatmul.msk.f32.gmra.mxu1 %vm642_vm1, %v6099_v24  ;;  %v5702_v24 = vld [vmem:[%s6049_s11 + $0x90] sm:$0xff] }
 0x131   : > { %5058 = vmatmul.msk.f32.gmra.mxu2 %vm642_vm1, %v5700_v42  ;;  %5122 = vmatmul.msk.f32.gmra.mxu3 %vm642_vm1, %v5700_v42  ;;  %v2031_v41 = vpop.f32.mrf.mxu0  ;;  %v1792_v47 = vrot.slane %v5702_v24, 2 }
 0x133   : > { %v7076_v60 = vsel %vm1756_vm2, %v1790_v4, %v1792_v47 }
 0x134   : > { %v1334_v18 = vpop.f32.mrf.mxu2  ;;  %v1543_v39 = vpop.f32.mrf.mxu3  ;;  %5206 = vmatmul.msk.f32.gmra.mxu0 %vm642_vm1, %v7061_v27 }
 0x135   : > { %v1335_v32 = vadd.f32 %v1334_v18, %v6714_v7  ;;  %v7066_v25 = vadd.f32 %v1543_v39, %v997_v50  ;;  %v1000_v49 = vpop.f32.mrf.mxu1  ;;  %v3591_v7 = vld [vmem:[%s8839_s4 + $0x70] sm:$0xff]  ;;  %v1794_v50 = vrot.slane %v6171_v51, 2 }
 0x136   : > { %3594 = vmatpush.msra.mxu0 %v3591_v7 }
 0x137   : > { %v7069_v20 = vadd.f32 %v2031_v41, %v1335_v32  ;;  %v7094_v41 = vsel %vm1756_vm2, %v1792_v47, %v1794_v50 }
 0x138   : > { %4995 = vmatmul.msk.f32.gmra.mxu1 %vm642_vm1, %v6158_v46 }
 0x139   : > { %5059 = vmatmul.msk.f32.gmra.mxu2 %vm642_vm1, %v5701_v63  ;;  %5123 = vmatmul.msk.f32.gmra.mxu3 %vm642_vm1, %v5701_v63  ;;  %v2034_v9 = vpop.f32.mrf.mxu0 }
 0x13c   : > { %v1337_v18 = vpop.f32.mrf.mxu2  ;;  %v1546_v42 = vpop.f32.mrf.mxu3  ;;  %5207 = vmatmul.msk.f32.gmra.mxu0 %vm642_vm1, %v7076_v60 }
 0x13d   : > { %v1338_v46 = vadd.f32 %v1337_v18, %v6734_v21  ;;  %v7084_v32 = vadd.f32 %v1546_v42, %v1000_v49  ;;  %v1003_v39 = vpop.f32.mrf.mxu1 }
 0x13f   : > { %v7087_v4 = vadd.f32 %v2034_v9, %v1338_v46 }
 0x140   : > { %4996 = vmatmul.msk.f32.gmra.mxu1 %vm642_vm1, %v6197_v61  ;;  %v1796_v61 = vrot.slane %v6207_v1, 2 }
 0x141   : > { %5060 = vmatmul.msk.f32.gmra.mxu2 %vm642_vm1, %v5702_v24  ;;  %5124 = vmatmul.msk.f32.gmra.mxu3 %vm642_vm1, %v5702_v24  ;;  %v2037_v63 = vpop.f32.mrf.mxu0  ;;  %v5703_v24 = vld [vmem:[%s6049_s11 + $0x98] sm:$0xff] }
 0x142   : > { %v7110_v42 = vsel %vm1756_vm2, %v1794_v50, %v1796_v61 }
 0x144   : > { %v1340_v21 = vpop.f32.mrf.mxu2  ;;  %v1549_v49 = vpop.f32.mrf.mxu3  ;;  %5208 = vmatmul.msk.f32.gmra.mxu0 %vm642_vm1, %v7094_v41 }
 0x145   : > { %v1341_v51 = vadd.f32 %v1340_v21, %v6754_v22  ;;  %v7099_v9 = vadd.f32 %v1549_v49, %v1003_v39  ;;  %v1006_v7 = vpop.f32.mrf.mxu1 }
 0x147   : > { %v7102_v18 = vadd.f32 %v2037_v63, %v1341_v51 }
 0x148   : > { %4997 = vmatmul.msk.f32.gmra.mxu1 %vm642_vm1, %v6233_v14  ;;  %v1798_v14 = vrot.slane %v6243_v23, 2 }
 0x149   : > { %5061 = vmatmul.msk.f32.gmra.mxu2 %vm642_vm1, %v5703_v24  ;;  %5125 = vmatmul.msk.f32.gmra.mxu3 %vm642_vm1, %v5703_v24  ;;  %v2040_v47 = vpop.f32.mrf.mxu0 }
 0x14a   : > { %v7127_v51 = vsel %vm1756_vm2, %v1796_v61, %v1798_v14 }
 0x14c   : > { %v1343_v22 = vpop.f32.mrf.mxu2  ;;  %v1552_v46 = vpop.f32.mrf.mxu3  ;;  %5209 = vmatmul.msk.f32.gmra.mxu0 %vm642_vm1, %v7110_v42 }
 0x14d   : > { %v1344_v39 = vadd.f32 %v1343_v22, %v6780_v48  ;;  %v7115_v63 = vadd.f32 %v1552_v46, %v1006_v7  ;;  %v1009_v21 = vpop.f32.mrf.mxu1  ;;  %v1800_v22 = vrot.slane %v6276_v40, 2 }
 0x14f   : > { %v7118_v49 = vadd.f32 %v2040_v47, %v1344_v39  ;;  %v7144_v61 = vsel %vm1756_vm2, %v1798_v14, %v1800_v22  ;;  %v5328_v14 = vld [vmem:[%s8838_s3 + $0x230] sm:$0xff] }
 0x150   : > { %4998 = vmatmul.msk.f32.gmra.mxu1 %vm642_vm1, %v6266_v36  ;;  %2849 = vmatpush.msra.mxu2 %v5328_v14 }
 0x151   : > { %5062 = vmatmul.msk.f32.gmra.mxu2 %vm642_vm1, %v6207_v1  ;;  %5126 = vmatmul.msk.f32.gmra.mxu3 %vm642_vm1, %v6207_v1  ;;  %v2043_v50 = vpop.f32.mrf.mxu0 }
 0x154   : > { %v1346_v48 = vpop.f32.mrf.mxu2  ;;  %v1555_v7 = vpop.f32.mrf.mxu3  ;;  %5210 = vmatmul.msk.f32.gmra.mxu0 %vm642_vm1, %v7127_v51 }
 0x155   : > { %v1347_v24 = vadd.f32 %v1346_v48, %v6803_v59  ;;  %v7132_v47 = vadd.f32 %v1555_v7, %v1009_v21  ;;  %v1012_v36 = vpop.f32.mrf.mxu1  ;;  %v3590_v59 = vld [vmem:[%s8839_s4 + $0x68] sm:$0xff] }
 0x156   : > { %3595 = vmatpush.msra.mxu0 %v3590_v59 }
 0x157   : > { %v7135_v46 = vadd.f32 %v2043_v50, %v1347_v24  ;;  %v5329_v24 = vld [vmem:[%s8838_s3 + $0x238] sm:$0xff] }
 0x158   : > { %4999 = vmatmul.msk.f32.gmra.mxu1 %vm642_vm1, %v6305_v57  ;;  %3058 = vmatpush.msra.mxu3 %v5329_v24 }
 0x159   : > { %5063 = vmatmul.msk.f32.gmra.mxu2 %vm642_vm1, %v6243_v23  ;;  %5127 = vmatmul.msk.f32.gmra.mxu3 %vm642_vm1, %v6243_v23  ;;  %v2046_v1 = vpop.f32.mrf.mxu0  ;;  %v1802_v23 = vrot.slane %v6315_v2, 2 }
 0x15c   : > { %v1349_v39 = vpop.f32.mrf.mxu2  ;;  %v1558_v21 = vpop.f32.mrf.mxu3  ;;  %5211 = vmatmul.msk.f32.gmra.mxu0 %vm642_vm1, %v7144_v61 }
 0x15d   : > { %v1350_v57 = vadd.f32 %v1349_v39, %v6823_v13  ;;  %v7152_v50 = vadd.f32 %v1558_v21, %v1012_v36  ;;  %v1015_v48 = vpop.f32.mrf.mxu1  ;;  %v7170_v36 = vsel %vm1756_vm2, %v1800_v22, %v1802_v23 }
 0x15f   : > { %v7155_v7 = vadd.f32 %v2046_v1, %v1350_v57  ;;  %v5181_v1 = vld [vmem:[%s8838_s3 + $0x198] sm:$0xff]  ;;  %v1804_v57 = vrot.slane %v6351_v37, 2 }
 0x160   : > { %5000 = vmatmul.msk.f32.gmra.mxu1 %vm642_vm1, %v6341_v30 }
 0x161   : > { %5064 = vmatmul.msk.f32.gmra.mxu2 %vm642_vm1, %v6276_v40  ;;  %5128 = vmatmul.msk.f32.gmra.mxu3 %vm642_vm1, %v6276_v40  ;;  %v2049_v13 = vpop.f32.mrf.mxu0  ;;  %v7190_v24 = vsel %vm1756_vm2, %v1802_v23, %v1804_v57 }
 0x162   : > { %2233 = vmatpush.msra.mxu1 %v5181_v1 }
 0x164   : > { %v1352_v59 = vpop.f32.mrf.mxu2  ;;  %v1561_v39 = vpop.f32.mrf.mxu3  ;;  %5212 = vmatmul.msk.f32.gmra.mxu0 %vm642_vm1, %v7170_v36 }
 0x165   : > { %v1353_v30 = vadd.f32 %v1352_v59, %v6843_v34  ;;  %v7178_v21 = vadd.f32 %v1561_v39, %v1015_v48  ;;  %v1018_v40 = vpop.f32.mrf.mxu1  ;;  %v1806_v59 = vrot.slane %v6384_v12, 2 }
 0x167   : > { %v7181_v22 = vadd.f32 %v2049_v13, %v1353_v30  ;;  %v7207_v23 = vsel %vm1756_vm2, %v1804_v57, %v1806_v59 }
 0x168   : > { %5001 = vmatmul.msk.f32.gmra.mxu1 %vm642_vm1, %v6374_v3 }
 0x169   : > { %5065 = vmatmul.msk.f32.gmra.mxu2 %vm642_vm1, %v6315_v2  ;;  %5129 = vmatmul.msk.f32.gmra.mxu3 %vm642_vm1, %v6315_v2  ;;  %v2052_v14 = vpop.f32.mrf.mxu0 }
 0x16c   : > { %v1355_v34 = vpop.f32.mrf.mxu2  ;;  %v1564_v48 = vpop.f32.mrf.mxu3  ;;  %5213 = vmatmul.msk.f32.gmra.mxu0 %vm642_vm1, %v7190_v24 }
 0x16d   : > { %v1356_v13 = vadd.f32 %v1355_v34, %v6863_v56  ;;  %v7195_v1 = vadd.f32 %v1564_v48, %v1018_v40  ;;  %v1021_v3 = vpop.f32.mrf.mxu1  ;;  %v9038_v34 = vld [vmem:[#allocation29_spill] sm:$0xff] }
 0x16e   : > { %v1808_v48 = vrot.slane %v9038_v34, 2 }
 0x16f   : > { %v7198_v39 = vadd.f32 %v2052_v14, %v1356_v13 }
 0x170   : > { %5002 = vmatmul.msk.f32.gmra.mxu1 %vm642_vm1, %v6413_v10  ;;  %v7224_v57 = vsel %vm1756_vm2, %v1806_v59, %v1808_v48  ;;  %v9045_v59 = vld [vmem:[#allocation34_spill] sm:$0xff] }
 0x171   : > { %9037 = vst [vmem:[#allocation103_spill] sm:$0xff] %v7198_v39  ;;  %5066 = vmatmul.msk.f32.gmra.mxu2 %vm642_vm1, %v6351_v37  ;;  %5130 = vmatmul.msk.f32.gmra.mxu3 %vm642_vm1, %v6351_v37  ;;  %v2055_v2 = vpop.f32.mrf.mxu0  ;;  %v9040_v39 = vld [vmem:[#allocation30_spill] sm:$0xff] }
 0x172   : > { %9041 = vst [vmem:[#allocation30_spill] sm:$0xff] %v7224_v57 }
 0x174   : > { %v1358_v56 = vpop.f32.mrf.mxu2  ;;  %v1567_v30 = vpop.f32.mrf.mxu3  ;;  %5214 = vmatmul.msk.f32.gmra.mxu0 %vm642_vm1, %v7207_v23 }
 0x175   : > { %v1359_v40 = vadd.f32 %v1358_v56, %v6883_v26  ;;  %v7212_v14 = vadd.f32 %v1567_v30, %v1021_v3  ;;  %v1024_v10 = vpop.f32.mrf.mxu1  ;;  %v3589_v26 = vld [vmem:[%s8839_s4 + $0x60] sm:$0xff] }
 0x176   : > { %3596 = vmatpush.msra.mxu0 %v3589_v26 }
 0x177   : > { %v7215_v13 = vadd.f32 %v2055_v2, %v1359_v40 }
 0x178   : > { %5003 = vmatmul.msk.f32.gmra.mxu1 %vm642_vm1, %v9040_v39 }
 0x179   : > { %9039 = vst [vmem:[#allocation29_spill] sm:$0xff] %v7215_v13  ;;  %5067 = vmatmul.msk.f32.gmra.mxu2 %vm642_vm1, %v6384_v12  ;;  %5131 = vmatmul.msk.f32.gmra.mxu3 %vm642_vm1, %v6384_v12  ;;  %v2058_v37 = vpop.f32.mrf.mxu0  ;;  %v9043_v12 = vld [vmem:[#allocation33_spill] sm:$0xff] }
 0x17a   : > { %v1810_v40 = vrot.slane %v9043_v12, 2 }
 0x17c   : > { %v1361_v3 = vpop.f32.mrf.mxu2  ;;  %v1570_v2 = vpop.f32.mrf.mxu3  ;;  %5215 = vmatmul.msk.f32.gmra.mxu0 %vm642_vm1, %v7224_v57  ;;  %v7244_v57 = vsel %vm1756_vm2, %v1808_v48, %v1810_v40 }
 0x17d   : > { %v1362_v39 = vadd.f32 %v1361_v3, %v6909_v44  ;;  %v7232_v56 = vadd.f32 %v1570_v2, %v1024_v10  ;;  %v1027_v30 = vpop.f32.mrf.mxu1 }
 0x17f   : > { %9042 = vst [vmem:[#allocation104_spill] sm:$0xff] %v7232_v56  ;;  %v7235_v13 = vadd.f32 %v2058_v37, %v1362_v39  ;;  %v9047_v39 = vld [vmem:[#allocation37_spill] sm:$0xff]  ;;  %v9049_v56 = vld [vmem:[#allocation38_spill] sm:$0xff] }
 0x180   : > { %5004 = vmatmul.msk.f32.gmra.mxu1 %vm642_vm1, %v9045_v59  ;;  %v1812_v59 = vrot.slane %v9047_v39, 2 }
 0x181   : > { %9044 = vst [vmem:[#allocation33_spill] sm:$0xff] %v7235_v13  ;;  %5068 = vmatmul.msk.f32.gmra.mxu2 %vm642_vm1, %v9038_v34  ;;  %5132 = vmatmul.msk.f32.gmra.mxu3 %vm642_vm1, %v9038_v34  ;;  %v2061_v26 = vpop.f32.mrf.mxu0 }
 0x182   : > { %v7261_v48 = vsel %vm1756_vm2, %v1810_v40, %v1812_v59 }
 0x184   : > { %v1364_v44 = vpop.f32.mrf.mxu2  ;;  %v1573_v10 = vpop.f32.mrf.mxu3  ;;  %5216 = vmatmul.msk.f32.gmra.mxu0 %vm642_vm1, %v7244_v57 }
 0x185   : > { %v1365_v37 = vadd.f32 %v1364_v44, %v6932_v8  ;;  %v7249_v3 = vadd.f32 %v1573_v10, %v1027_v30  ;;  %v1030_v2 = vpop.f32.mrf.mxu1  ;;  %v9051_v10 = vld [vmem:[#allocation41_spill] sm:$0xff] }
 0x187   : > { %9046 = vst [vmem:[#allocation34_spill] sm:$0xff] %v7249_v3  ;;  %v7252_v13 = vadd.f32 %v2061_v26, %v1365_v37  ;;  %v1814_v37 = vrot.slane %v9051_v10, 2  ;;  %v9053_v3 = vld [vmem:[#allocation42_spill] sm:$0xff] }
 0x188   : > { %5005 = vmatmul.msk.f32.gmra.mxu1 %vm642_vm1, %v9049_v56 }
 0x189   : > { %9048 = vst [vmem:[#allocation37_spill] sm:$0xff] %v7252_v13  ;;  %5069 = vmatmul.msk.f32.gmra.mxu2 %vm642_vm1, %v9043_v12  ;;  %5133 = vmatmul.msk.f32.gmra.mxu3 %vm642_vm1, %v9043_v12  ;;  %v2064_v34 = vpop.f32.mrf.mxu0  ;;  %v7278_v40 = vsel %vm1756_vm2, %v1812_v59, %v1814_v37 }
 0x18c   : > { %v1367_v8 = vpop.f32.mrf.mxu2  ;;  %v1576_v30 = vpop.f32.mrf.mxu3  ;;  %5217 = vmatmul.msk.f32.gmra.mxu0 %vm642_vm1, %v7261_v48 }
 0x18d   : > { %v1368_v26 = vadd.f32 %v1367_v8, %v6952_v0  ;;  %v7266_v44 = vadd.f32 %v1576_v30, %v1030_v2  ;;  %v1033_v56 = vpop.f32.mrf.mxu1  ;;  %v5326_v0 = vld [vmem:[%s8838_s3 + $0x220] sm:$0xff]  ;;  %v5327_v2 = vld [vmem:[%s8838_s3 + $0x228] sm:$0xff]  ;;  %v9054_v30 = vld [vmem:[#allocation45_spill] sm:$0xff] }
 0x18e   : > { %2850 = vmatpush.msra.mxu2 %v5326_v0  ;;  %3059 = vmatpush.msra.mxu3 %v5327_v2  ;;  %v9055_v0 = vld [vmem:[#allocation46_spill] sm:$0xff] }
 0x18f   : > { %9050 = vst [vmem:[#allocation38_spill] sm:$0xff] %v7266_v44  ;;  %v7269_v13 = vadd.f32 %v2064_v34, %v1368_v26  ;;  %v1816_v26 = vrot.slane %v9054_v30, 2  ;;  %v3588_v2 = vld [vmem:[%s8839_s4 + $0x58] sm:$0xff] }
 0x190   : > { %5006 = vmatmul.msk.f32.gmra.mxu1 %vm642_vm1, %v9053_v3  ;;  %3597 = vmatpush.msra.mxu0 %v3588_v2 }
 0x191   : > { %9052 = vst [vmem:[#allocation41_spill] sm:$0xff] %v7269_v13  ;;  %5070 = vmatmul.msk.f32.gmra.mxu2 %vm642_vm1, %v9047_v39  ;;  %5134 = vmatmul.msk.f32.gmra.mxu3 %vm642_vm1, %v9047_v39  ;;  %v2067_v12 = vpop.f32.mrf.mxu0  ;;  %v5179_v13 = vld [vmem:[%s8838_s3 + $0x188] sm:$0xff] }
 0x192   : > { %2234 = vmatpush.msra.mxu1 %v5179_v13 }
 0x194   : > { %v1370_v3 = vpop.f32.mrf.mxu2  ;;  %v1579_v34 = vpop.f32.mrf.mxu3  ;;  %5218 = vmatmul.msk.f32.gmra.mxu0 %vm642_vm1, %v7278_v40 }
 0x195   : > { %v1371_v39 = vadd.f32 %v1370_v3, %v6972_v5  ;;  %v7289_v8 = vadd.f32 %v1579_v34, %v1033_v56  ;;  %v1036_v59 = vpop.f32.mrf.mxu1  ;;  %v7304_v56 = vsel %vm1756_vm2, %v1814_v37, %v1816_v26 }
 0x197   : > { %v7295_v44 = vadd.f32 %v2067_v12, %v1371_v39  ;;  %v1818_v39 = vrot.slane %v6624_v53, 2 }
 0x198   : > { %5007 = vmatmul.msk.f32.gmra.mxu1 %vm642_vm1, %v9055_v0  ;;  %v9058_v0 = vld [vmem:[#allocation49_spill] sm:$0xff] }
 0x199   : > { %5071 = vmatmul.msk.f32.gmra.mxu2 %vm642_vm1, %v9051_v10  ;;  %5135 = vmatmul.msk.f32.gmra.mxu3 %vm642_vm1, %v9051_v10  ;;  %v2070_v5 = vpop.f32.mrf.mxu0 }
 0x19c   : > { %v1373_v13 = vpop.f32.mrf.mxu2  ;;  %v1582_v12 = vpop.f32.mrf.mxu3  ;;  %5219 = vmatmul.msk.f32.gmra.mxu0 %vm642_vm1, %v7304_v56 }
 0x19d   : > { %v1374_v3 = vadd.f32 %v1373_v13, %v6992_v38  ;;  %v7312_v34 = vadd.f32 %v1582_v12, %v1036_v59  ;;  %v1039_v10 = vpop.f32.mrf.mxu1  ;;  %v7324_v38 = vsel %vm1756_vm2, %v1816_v26, %v1818_v39 }
 0x19f   : > { %9056 = vst [vmem:[#allocation42_spill] sm:$0xff] %v7312_v34  ;;  %v7315_v37 = vadd.f32 %v2070_v5, %v1374_v3 }
 0x1a0   : > { %5008 = vmatmul.msk.f32.gmra.mxu1 %vm642_vm1, %v9058_v0  ;;  %v5704_v0 = vld [vmem:[%s6049_s11 + $0x100] sm:$0xff] }
 0x1a1   : > { %9057 = vst [vmem:[#allocation45_spill] sm:$0xff] %v7315_v37  ;;  %5072 = vmatmul.msk.f32.gmra.mxu2 %vm642_vm1, %v9054_v30  ;;  %5136 = vmatmul.msk.f32.gmra.mxu3 %vm642_vm1, %v9054_v30  ;;  %v2073_v2 = vpop.f32.mrf.mxu0  ;;  %v1820_v37 = vrot.slane %v5704_v0, 2 }
 0x1a4   : > { %v1376_v59 = vpop.f32.mrf.mxu2  ;;  %v1585_v13 = vpop.f32.mrf.mxu3  ;;  %5220 = vmatmul.msk.f32.gmra.mxu0 %vm642_vm1, %v7324_v38 }
 0x1a5   : > { %v1377_v5 = vadd.f32 %v1376_v59, %v7015_v6  ;;  %v7329_v12 = vadd.f32 %v1585_v13, %v1039_v10  ;;  %v1042_v3 = vpop.f32.mrf.mxu1  ;;  %v7341_v6 = vsel %vm1756_vm2, %v1818_v39, %v1820_v37  ;;  %v5705_v13 = vld [vmem:[%s6049_s11 + $0x108] sm:$0xff] }
 0x1a6   : > { %9060 = vst [vmem:[#allocation49_spill] sm:$0xff] %v7341_v6 }
 0x1a7   : > { %v7332_v34 = vadd.f32 %v2073_v2, %v1377_v5  ;;  %v1822_v5 = vrot.slane %v5705_v13, 2 }
 0x1a8   : > { %5009 = vmatmul.msk.f32.gmra.mxu1 %vm642_vm1, %v6681_v52 }
 0x1a9   : > { %9059 = vst [vmem:[#allocation46_spill] sm:$0xff] %v7332_v34  ;;  %5073 = vmatmul.msk.f32.gmra.mxu2 %vm642_vm1, %v6624_v53  ;;  %5137 = vmatmul.msk.f32.gmra.mxu3 %vm642_vm1, %v6624_v53  ;;  %v2076_v30 = vpop.f32.mrf.mxu0  ;;  %v9062_v53 = vld [vmem:[#allocation11_spill] sm:$0xff] }
 0x1ac   : > { %v1379_v26 = vpop.f32.mrf.mxu2  ;;  %v1588_v10 = vpop.f32.mrf.mxu3  ;;  %5221 = vmatmul.msk.f32.gmra.mxu0 %vm642_vm1, %v7341_v6  ;;  %v7356_v6 = vsel %vm1756_vm2, %v1820_v37, %v1822_v5 }
 0x1ad   : > { %v1380_v2 = vadd.f32 %v1379_v26, %v7035_v28  ;;  %v7346_v59 = vadd.f32 %v1588_v10, %v1042_v3  ;;  %v1045_v52 = vpop.f32.mrf.mxu1  ;;  %9063 = vst [vmem:[#allocation11_spill] sm:$0xff] %v7356_v6 }
 0x1af   : > { %v7349_v34 = vadd.f32 %v2076_v30, %v1380_v2  ;;  %v5706_v2 = vld [vmem:[%s6049_s11 + $0x110] sm:$0xff] }
 0x1b0   : > { %5010 = vmatmul.msk.f32.gmra.mxu1 %vm642_vm1, %v9062_v53  ;;  %v1824_v53 = vrot.slane %v5706_v2, 2 }
 0x1b1   : > { %9061 = vst [vmem:[#allocation105_spill] sm:$0xff] %v7349_v34  ;;  %5074 = vmatmul.msk.f32.gmra.mxu2 %vm642_vm1, %v5704_v0  ;;  %5138 = vmatmul.msk.f32.gmra.mxu3 %vm642_vm1, %v5704_v0  ;;  %v2079_v39 = vpop.f32.mrf.mxu0  ;;  %v9065_v0 = vld [vmem:[#allocation13_spill] sm:$0xff] }
 0x1b4   : > { %v1382_v28 = vpop.f32.mrf.mxu2  ;;  %v1591_v3 = vpop.f32.mrf.mxu3  ;;  %5222 = vmatmul.msk.f32.gmra.mxu0 %vm642_vm1, %v7356_v6  ;;  %v7371_v6 = vsel %vm1756_vm2, %v1822_v5, %v1824_v53 }
 0x1b5   : > { %v1383_v26 = vadd.f32 %v1382_v28, %v6704_v11  ;;  %v7361_v30 = vadd.f32 %v1591_v3, %v1045_v52  ;;  %v1048_v10 = vpop.f32.mrf.mxu1  ;;  %9066 = vst [vmem:[#allocation13_spill] sm:$0xff] %v7371_v6  ;;  %v3587_v11 = vld [vmem:[%s8839_s4 + $0x50] sm:$0xff] }
 0x1b6   : > { %3598 = vmatpush.msra.mxu0 %v3587_v11 }
 0x1b7   : > { %v7364_v34 = vadd.f32 %v2079_v39, %v1383_v26  ;;  %v5707_v26 = vld [vmem:[%s6049_s11 + $0x118] sm:$0xff] }
 0x1b8   : > { %5011 = vmatmul.msk.f32.gmra.mxu1 %vm642_vm1, %v9065_v0  ;;  %v1826_v0 = vrot.slane %v5707_v26, 2 }
 0x1b9   : > { %9064 = vst [vmem:[#allocation106_spill] sm:$0xff] %v7364_v34  ;;  %5075 = vmatmul.msk.f32.gmra.mxu2 %vm642_vm1, %v5705_v13  ;;  %5139 = vmatmul.msk.f32.gmra.mxu3 %vm642_vm1, %v5705_v13  ;;  %v2082_v37 = vpop.f32.mrf.mxu0  ;;  %v9068_v34 = vld [vmem:[#allocation15_spill] sm:$0xff] }
 0x1bc   : > { %v1385_v52 = vpop.f32.mrf.mxu2  ;;  %v1594_v28 = vpop.f32.mrf.mxu3  ;;  %5223 = vmatmul.msk.f32.gmra.mxu0 %vm642_vm1, %v7371_v6  ;;  %v7389_v6 = vsel %vm1756_vm2, %v1824_v53, %v1826_v0  ;;  %v5325_v53 = vld [vmem:[%s8838_s3 + $0x218] sm:$0xff] }
 0x1bd   : > { %v1386_v39 = vadd.f32 %v1385_v52, %v6725_v43  ;;  %v7379_v3 = vadd.f32 %v1594_v28, %v1048_v10  ;;  %v1051_v13 = vpop.f32.mrf.mxu1  ;;  %9069 = vst [vmem:[#allocation15_spill] sm:$0xff] %v7389_v6  ;;  %3060 = vmatpush.msra.mxu3 %v5325_v53 }
 0x1bf   : > { %v7382_v5 = vadd.f32 %v2082_v37, %v1386_v39  ;;  %v5708_v39 = vld [vmem:[%s6049_s11 + $0x120] sm:$0xff] }
 0x1c0   : > { %5012 = vmatmul.msk.f32.gmra.mxu1 %vm642_vm1, %v9068_v34  ;;  %v1828_v34 = vrot.slane %v5708_v39, 2 }
 0x1c1   : > { %9067 = vst [vmem:[#allocation107_spill] sm:$0xff] %v7382_v5  ;;  %5076 = vmatmul.msk.f32.gmra.mxu2 %vm642_vm1, %v5706_v2  ;;  %5140 = vmatmul.msk.f32.gmra.mxu3 %vm642_vm1, %v5706_v2  ;;  %v2085_v11 = vpop.f32.mrf.mxu0  ;;  %v5324_v2 = vld [vmem:[%s8838_s3 + $0x210] sm:$0xff] }
 0x1c2   : > { %2851 = vmatpush.msra.mxu2 %v5324_v2 }
 0x1c4   : > { %v1388_v43 = vpop.f32.mrf.mxu2  ;;  %v1597_v10 = vpop.f32.mrf.mxu3  ;;  %5224 = vmatmul.msk.f32.gmra.mxu0 %vm642_vm1, %v7389_v6  ;;  %v9071_v6 = vld [vmem:[#allocation17_spill] sm:$0xff] }
 0x1c5   : > { %v1389_v52 = vadd.f32 %v1388_v43, %v6745_v33  ;;  %v7394_v37 = vadd.f32 %v1597_v10, %v1051_v13  ;;  %v1054_v28 = vpop.f32.mrf.mxu1  ;;  %v7410_v13 = vsel %vm1756_vm2, %v1826_v0, %v1828_v34  ;;  %v5177_v43 = vld [vmem:[%s8838_s3 + $0x178] sm:$0xff] }
 0x1c6   : > { %9072 = vst [vmem:[#allocation17_spill] sm:$0xff] %v7410_v13  ;;  %2235 = vmatpush.msra.mxu1 %v5177_v43 }
 0x1c7   : > { %v7403_v5 = vadd.f32 %v2085_v11, %v1389_v52  ;;  %v5709_v52 = vld [vmem:[%s6049_s11 + $0x128] sm:$0xff] }
 0x1c8   : > { %5013 = vmatmul.msk.f32.gmra.mxu1 %vm642_vm1, %v9071_v6  ;;  %v1830_v53 = vrot.slane %v5709_v52, 2 }
 0x1c9   : > { %9070 = vst [vmem:[#allocation108_spill] sm:$0xff] %v7403_v5  ;;  %5077 = vmatmul.msk.f32.gmra.mxu2 %vm642_vm1, %v5707_v26  ;;  %5141 = vmatmul.msk.f32.gmra.mxu3 %vm642_vm1, %v5707_v26  ;;  %v2088_v33 = vpop.f32.mrf.mxu0  ;;  %v9074_v5 = vld [vmem:[#allocation19_spill] sm:$0xff] }
 0x1cc   : > { %v1391_v10 = vpop.f32.mrf.mxu2  ;;  %v1600_v2 = vpop.f32.mrf.mxu3  ;;  %5225 = vmatmul.msk.f32.gmra.mxu0 %vm642_vm1, %v7410_v13  ;;  %v7428_v13 = vsel %vm1756_vm2, %v1828_v34, %v1830_v53 }
 0x1cd   : > { %v1392_v6 = vadd.f32 %v1391_v10, %v6771_v62  ;;  %v7418_v11 = vadd.f32 %v1600_v2, %v1054_v28  ;;  %v1057_v26 = vpop.f32.mrf.mxu1  ;;  %9075 = vst [vmem:[#allocation19_spill] sm:$0xff] %v7428_v13 }
 0x1cf   : > { %v7421_v0 = vadd.f32 %v2088_v33, %v1392_v6  ;;  %v5710_v6 = vld [vmem:[%s6049_s11 + $0x130] sm:$0xff] }
 0x1d0   : > { %5014 = vmatmul.msk.f32.gmra.mxu1 %vm642_vm1, %v9074_v5  ;;  %v1832_v5 = vrot.slane %v5710_v6, 2 }
 0x1d1   : > { %9073 = vst [vmem:[#allocation109_spill] sm:$0xff] %v7421_v0  ;;  %5078 = vmatmul.msk.f32.gmra.mxu2 %vm642_vm1, %v5708_v39  ;;  %5142 = vmatmul.msk.f32.gmra.mxu3 %vm642_vm1, %v5708_v39  ;;  %v2091_v43 = vpop.f32.mrf.mxu0  ;;  %v9077_v39 = vld [vmem:[#allocation21_spill] sm:$0xff] }
 0x1d4   : > { %v1394_v62 = vpop.f32.mrf.mxu2  ;;  %v1603_v28 = vpop.f32.mrf.mxu3  ;;  %5226 = vmatmul.msk.f32.gmra.mxu0 %vm642_vm1, %v7428_v13  ;;  %v7443_v13 = vsel %vm1756_vm2, %v1830_v53, %v1832_v5 }
 0x1d5   : > { %v1395_v10 = vadd.f32 %v1394_v62, %v6794_v29  ;;  %v7433_v33 = vadd.f32 %v1603_v28, %v1057_v26  ;;  %v1060_v2 = vpop.f32.mrf.mxu1  ;;  %9078 = vst [vmem:[#allocation21_spill] sm:$0xff] %v7443_v13  ;;  %v3586_v29 = vld [vmem:[%s8839_s4 + $0x48] sm:$0xff] }
 0x1d6   : > { %3599 = vmatpush.msra.mxu0 %v3586_v29 }
 0x1d7   : > { %v7436_v0 = vadd.f32 %v2091_v43, %v1395_v10  ;;  %v5711_v10 = vld [vmem:[%s6049_s11 + $0x138] sm:$0xff] }
 0x1d8   : > { %5015 = vmatmul.msk.f32.gmra.mxu1 %vm642_vm1, %v9077_v39  ;;  %v1834_v39 = vrot.slane %v5711_v10, 2 }
 0x1d9   : > { %9076 = vst [vmem:[#allocation110_spill] sm:$0xff] %v7436_v0  ;;  %5079 = vmatmul.msk.f32.gmra.mxu2 %vm642_vm1, %v5709_v52  ;;  %5143 = vmatmul.msk.f32.gmra.mxu3 %vm642_vm1, %v5709_v52  ;;  %v2094_v34 = vpop.f32.mrf.mxu0  ;;  %v9080_v0 = vld [vmem:[#allocation23_spill] sm:$0xff] }
 0x1dc   : > { %v1397_v26 = vpop.f32.mrf.mxu2  ;;  %v1606_v62 = vpop.f32.mrf.mxu3  ;;  %5227 = vmatmul.msk.f32.gmra.mxu0 %vm642_vm1, %v7443_v13  ;;  %v7461_v13 = vsel %vm1756_vm2, %v1832_v5, %v1834_v39 }
 0x1dd   : > { %v1398_v43 = vadd.f32 %v1397_v26, %v6814_v58  ;;  %v7451_v28 = vadd.f32 %v1606_v62, %v1060_v2  ;;  %v1063_v52 = vpop.f32.mrf.mxu1  ;;  %9081 = vst [vmem:[#allocation23_spill] sm:$0xff] %v7461_v13 }
 0x1df   : > { %v7454_v53 = vadd.f32 %v2094_v34, %v1398_v43 }
 0x1e0   : > { %5016 = vmatmul.msk.f32.gmra.mxu1 %vm642_vm1, %v9080_v0  ;;  %v5712_v0 = vld [vmem:[%s6049_s11 + $0x140] sm:$0xff] }
 0x1e1   : > { %9079 = vst [vmem:[#allocation111_spill] sm:$0xff] %v7454_v53  ;;  %5080 = vmatmul.msk.f32.gmra.mxu2 %vm642_vm1, %v5710_v6  ;;  %5144 = vmatmul.msk.f32.gmra.mxu3 %vm642_vm1, %v5710_v6  ;;  %v2097_v29 = vpop.f32.mrf.mxu0  ;;  %v1836_v43 = vrot.slane %v5712_v0, 2  ;;  %v9083_v6 = vld [vmem:[#allocation25_spill] sm:$0xff] }
 0x1e4   : > { %v1400_v58 = vpop.f32.mrf.mxu2  ;;  %v1609_v2 = vpop.f32.mrf.mxu3  ;;  %5228 = vmatmul.msk.f32.gmra.mxu0 %vm642_vm1, %v7461_v13  ;;  %v7476_v13 = vsel %vm1756_vm2, %v1834_v39, %v1836_v43 }
 0x1e5   : > { %v1401_v26 = vadd.f32 %v1400_v58, %v6834_v16  ;;  %v7466_v34 = vadd.f32 %v1609_v2, %v1063_v52  ;;  %v1066_v62 = vpop.f32.mrf.mxu1  ;;  %9084 = vst [vmem:[#allocation25_spill] sm:$0xff] %v7476_v13 }
 0x1e7   : > { %v7469_v53 = vadd.f32 %v2097_v29, %v1401_v26  ;;  %v5713_v26 = vld [vmem:[%s6049_s11 + $0x148] sm:$0xff] }
 0x1e8   : > { %5017 = vmatmul.msk.f32.gmra.mxu1 %vm642_vm1, %v9083_v6  ;;  %v1838_v6 = vrot.slane %v5713_v26, 2 }
 0x1e9   : > { %9082 = vst [vmem:[#allocation112_spill] sm:$0xff] %v7469_v53  ;;  %5081 = vmatmul.msk.f32.gmra.mxu2 %vm642_vm1, %v5711_v10  ;;  %5145 = vmatmul.msk.f32.gmra.mxu3 %vm642_vm1, %v5711_v10  ;;  %v2100_v5 = vpop.f32.mrf.mxu0  ;;  %v9087_v10 = vld [vmem:[#allocation27_spill] sm:$0xff] }
 0x1ec   : > { %v1403_v16 = vpop.f32.mrf.mxu2  ;;  %v1612_v52 = vpop.f32.mrf.mxu3  ;;  %5229 = vmatmul.msk.f32.gmra.mxu0 %vm642_vm1, %v7476_v13  ;;  %v7491_v13 = vsel %vm1756_vm2, %v1836_v43, %v1838_v6  ;;  %v5323_v43 = vld [vmem:[%s8838_s3 + $0x208] sm:$0xff] }
 0x1ed   : > { %v1404_v58 = vadd.f32 %v1403_v16, %v6854_v31  ;;  %v7481_v29 = vadd.f32 %v1612_v52, %v1066_v62  ;;  %v1069_v2 = vpop.f32.mrf.mxu1  ;;  %3061 = vmatpush.msra.mxu3 %v5323_v43 }
 0x1ef   : > { %9085 = vst [vmem:[#allocation113_spill] sm:$0xff] %v7481_v29  ;;  %v7484_v53 = vadd.f32 %v2100_v5, %v1404_v58  ;;  %v5714_v58 = vld [vmem:[%s6049_s11 + $0x150] sm:$0xff]  ;;  %v9089_v29 = vld [vmem:[#allocation31_spill] sm:$0xff] }
 0x1f0   : > { %5018 = vmatmul.msk.f32.gmra.mxu1 %vm642_vm1, %v9087_v10  ;;  %v1840_v10 = vrot.slane %v5714_v58, 2 }
 0x1f1   : > { %9086 = vst [vmem:[#allocation114_spill] sm:$0xff] %v7484_v53  ;;  %5082 = vmatmul.msk.f32.gmra.mxu2 %vm642_vm1, %v5712_v0  ;;  %5146 = vmatmul.msk.f32.gmra.mxu3 %vm642_vm1, %v5712_v0  ;;  %v2103_v39 = vpop.f32.mrf.mxu0  ;;  %v5322_v0 = vld [vmem:[%s8838_s3 + $0x200] sm:$0xff] }
 0x1f2   : > { %2852 = vmatpush.msra.mxu2 %v5322_v0  ;;  %v5715_v0 = vld [vmem:[%s6049_s11 + $0x158] sm:$0xff] }
 0x1f4   : > { %v1406_v31 = vpop.f32.mrf.mxu2  ;;  %v1615_v62 = vpop.f32.mrf.mxu3  ;;  %5230 = vmatmul.msk.f32.gmra.mxu0 %vm642_vm1, %v7491_v13 }
 0x1f5   : > { %v1407_v16 = vadd.f32 %v1406_v31, %v6874_v55  ;;  %v7496_v5 = vadd.f32 %v1615_v62, %v1069_v2  ;;  %v1072_v52 = vpop.f32.mrf.mxu1  ;;  %v7512_v2 = vsel %vm1756_vm2, %v1838_v6, %v1840_v10  ;;  %v1842_v6 = vrot.slane %v5715_v0, 2 }
 0x1f7   : > { %v7499_v53 = vadd.f32 %v2103_v39, %v1407_v16  ;;  %v3585_v39 = vld [vmem:[%s8839_s4 + $0x40] sm:$0xff] }
 0x1f8   : > { %5019 = vmatmul.msk.f32.gmra.mxu1 %vm642_vm1, %v9089_v29  ;;  %3600 = vmatpush.msra.mxu0 %v3585_v39  ;;  %v9092_v39 = vld [vmem:[#allocation35_spill] sm:$0xff] }
 0x1f9   : > { %9088 = vst [vmem:[#allocation27_spill] sm:$0xff] %v7499_v53  ;;  %5083 = vmatmul.msk.f32.gmra.mxu2 %vm642_vm1, %v5713_v26  ;;  %5147 = vmatmul.msk.f32.gmra.mxu3 %vm642_vm1, %v5713_v26  ;;  %v2106_v55 = vpop.f32.mrf.mxu0  ;;  %v5175_v53 = vld [vmem:[%s8838_s3 + $0x168] sm:$0xff] }
 0x1fa   : > { %2236 = vmatpush.msra.mxu1 %v5175_v53 }
 0x1fc   : > { %v1409_v31 = vpop.f32.mrf.mxu2  ;;  %v1618_v62 = vpop.f32.mrf.mxu3  ;;  %5231 = vmatmul.msk.f32.gmra.mxu0 %vm642_vm1, %v7512_v2 }
 0x1fd   : > { %v1410_v29 = vadd.f32 %v1409_v31, %v6894_v35  ;;  %v7520_v16 = vadd.f32 %v1618_v62, %v1072_v52  ;;  %v1075_v26 = vpop.f32.mrf.mxu1  ;;  %v7533_v52 = vsel %vm1756_vm2, %v1840_v10, %v1842_v6 }
 0x1fe   : > { %9093 = vst [vmem:[#allocation35_spill] sm:$0xff] %v7533_v52 }
 0x1ff   : > { %9090 = vst [vmem:[#allocation31_spill] sm:$0xff] %v7520_v16  ;;  %v7526_v43 = vadd.f32 %v2106_v55, %v1410_v29 }
 0x200   : > { %5020 = vmatmul.msk.f32.gmra.mxu1 %vm642_vm1, %v9092_v39  ;;  %v5716_v39 = vld [vmem:[%s6049_s11 + $0x160] sm:$0xff] }
 0x201   : > { %9091 = vst [vmem:[#allocation115_spill] sm:$0xff] %v7526_v43  ;;  %5084 = vmatmul.msk.f32.gmra.mxu2 %vm642_vm1, %v5714_v58  ;;  %5148 = vmatmul.msk.f32.gmra.mxu3 %vm642_vm1, %v5714_v58  ;;  %v2109_v35 = vpop.f32.mrf.mxu0  ;;  %v1844_v43 = vrot.slane %v5716_v39, 2  ;;  %v9095_v58 = vld [vmem:[#allocation39_spill] sm:$0xff] }
 0x204   : > { %v1412_v31 = vpop.f32.mrf.mxu2  ;;  %v1621_v62 = vpop.f32.mrf.mxu3  ;;  %5232 = vmatmul.msk.f32.gmra.mxu0 %vm642_vm1, %v7533_v52  ;;  %v7548_v52 = vsel %vm1756_vm2, %v1842_v6, %v1844_v43 }
 0x205   : > { %v1413_v53 = vadd.f32 %v1412_v31, %v6923_v54  ;;  %v7538_v55 = vadd.f32 %v1621_v62, %v1075_v26  ;;  %v1078_v29 = vpop.f32.mrf.mxu1  ;;  %9096 = vst [vmem:[#allocation39_spill] sm:$0xff] %v7548_v52 }
 0x207   : > { %v7541_v16 = vadd.f32 %v2109_v35, %v1413_v53  ;;  %v5717_v53 = vld [vmem:[%s6049_s11 + $0x168] sm:$0xff] }
 0x208   : > { %5021 = vmatmul.msk.f32.gmra.mxu1 %vm642_vm1, %v9095_v58  ;;  %v1846_v58 = vrot.slane %v5717_v53, 2 }
 0x209   : > { %9094 = vst [vmem:[#allocation116_spill] sm:$0xff] %v7541_v16  ;;  %5085 = vmatmul.msk.f32.gmra.mxu2 %vm642_vm1, %v5715_v0  ;;  %5149 = vmatmul.msk.f32.gmra.mxu3 %vm642_vm1, %v5715_v0  ;;  %v2112_v10 = vpop.f32.mrf.mxu0  ;;  %v9098_v0 = vld [vmem:[#allocation43_spill] sm:$0xff] }
 0x20c   : > { %v1415_v54 = vpop.f32.mrf.mxu2  ;;  %v1624_v26 = vpop.f32.mrf.mxu3  ;;  %5233 = vmatmul.msk.f32.gmra.mxu0 %vm642_vm1, %v7548_v52  ;;  %v7563_v52 = vsel %vm1756_vm2, %v1844_v43, %v1846_v58 }
 0x20d   : > { %v1416_v31 = vadd.f32 %v1415_v54, %v6943_v19  ;;  %v7553_v35 = vadd.f32 %v1624_v26, %v1078_v29  ;;  %v1081_v62 = vpop.f32.mrf.mxu1  ;;  %9099 = vst [vmem:[#allocation43_spill] sm:$0xff] %v7563_v52 }
 0x20f   : > { %v7556_v16 = vadd.f32 %v2112_v10, %v1416_v31  ;;  %v5718_v31 = vld [vmem:[%s6049_s11 + $0x170] sm:$0xff] }
 0x210   : > { %5022 = vmatmul.msk.f32.gmra.mxu1 %vm642_vm1, %v9098_v0  ;;  %v1848_v0 = vrot.slane %v5718_v31, 2 }
 0x211   : > { %9097 = vst [vmem:[#allocation117_spill] sm:$0xff] %v7556_v16  ;;  %5086 = vmatmul.msk.f32.gmra.mxu2 %vm642_vm1, %v5716_v39  ;;  %5150 = vmatmul.msk.f32.gmra.mxu3 %vm642_vm1, %v5716_v39  ;;  %v2115_v6 = vpop.f32.mrf.mxu0  ;;  %v9101_v39 = vld [vmem:[#allocation47_spill] sm:$0xff] }
 0x214   : > { %v1418_v19 = vpop.f32.mrf.mxu2  ;;  %v1627_v29 = vpop.f32.mrf.mxu3  ;;  %5234 = vmatmul.msk.f32.gmra.mxu0 %vm642_vm1, %v7563_v52  ;;  %v7578_v52 = vsel %vm1756_vm2, %v1846_v58, %v1848_v0 }
 0x215   : > { %v1419_v54 = vadd.f32 %v1418_v19, %v6963_v45  ;;  %v7568_v10 = vadd.f32 %v1627_v29, %v1081_v62  ;;  %v1084_v26 = vpop.f32.mrf.mxu1  ;;  %9102 = vst [vmem:[#allocation47_spill] sm:$0xff] %v7578_v52  ;;  %v3584_v45 = vld [vmem:[%s8839_s4 + $0x38] sm:$0xff] }
 0x216   : > { %3601 = vmatpush.msra.mxu0 %v3584_v45 }
 0x217   : > { %v7571_v16 = vadd.f32 %v2115_v6, %v1419_v54  ;;  %v5719_v54 = vld [vmem:[%s6049_s11 + $0x178] sm:$0xff] }
 0x218   : > { %5023 = vmatmul.msk.f32.gmra.mxu1 %vm642_vm1, %v9101_v39  ;;  %v1850_v39 = vrot.slane %v5719_v54, 2 }
 0x219   : > { %9100 = vst [vmem:[#allocation118_spill] sm:$0xff] %v7571_v16  ;;  %5087 = vmatmul.msk.f32.gmra.mxu2 %vm642_vm1, %v5717_v53  ;;  %5151 = vmatmul.msk.f32.gmra.mxu3 %vm642_vm1, %v5717_v53  ;;  %v2118_v43 = vpop.f32.mrf.mxu0  ;;  %v9105_v16 = vld [vmem:[#allocation50_spill] sm:$0xff] }
 0x21c   : > { %v1421_v62 = vpop.f32.mrf.mxu2  ;;  %v1630_v19 = vpop.f32.mrf.mxu3  ;;  %5235 = vmatmul.msk.f32.gmra.mxu0 %vm642_vm1, %v7578_v52  ;;  %v7596_v52 = vsel %vm1756_vm2, %v1848_v0, %v1850_v39 }
 0x21d   : > { %v1422_v6 = vadd.f32 %v1421_v62, %v6983_v15  ;;  %v7586_v29 = vadd.f32 %v1630_v19, %v1084_v26  ;;  %v1087_v53 = vpop.f32.mrf.mxu1  ;;  %9106 = vst [vmem:[#allocation50_spill] sm:$0xff] %v7596_v52 }
 0x21f   : > { %9103 = vst [vmem:[#allocation119_spill] sm:$0xff] %v7586_v29  ;;  %v7589_v58 = vadd.f32 %v2118_v43, %v1422_v6  ;;  %v5720_v6 = vld [vmem:[%s6049_s11 + $0x180] sm:$0xff]  ;;  %v9109_v29 = vld [vmem:[#allocation52_spill] sm:$0xff] }
 0x220   : > { %5024 = vmatmul.msk.f32.gmra.mxu1 %vm642_vm1, %v9105_v16  ;;  %v1852_v16 = vrot.slane %v5720_v6, 2 }
 0x221   : > { %9104 = vst [vmem:[#allocation120_spill] sm:$0xff] %v7589_v58  ;;  %5088 = vmatmul.msk.f32.gmra.mxu2 %vm642_vm1, %v5718_v31  ;;  %5152 = vmatmul.msk.f32.gmra.mxu3 %vm642_vm1, %v5718_v31  ;;  %v2121_v45 = vpop.f32.mrf.mxu0 }
 0x222   : > { %v7611_v0 = vsel %vm1756_vm2, %v1850_v39, %v1852_v16 }
 0x223   : > { %9110 = vst [vmem:[#allocation52_spill] sm:$0xff] %v7611_v0 }
 0x224   : > { %v1424_v15 = vpop.f32.mrf.mxu2  ;;  %v1633_v26 = vpop.f32.mrf.mxu3  ;;  %5236 = vmatmul.msk.f32.gmra.mxu0 %vm642_vm1, %v7596_v52 }
 0x225   : > { %v1425_v62 = vadd.f32 %v1424_v15, %v7006_v17  ;;  %v7601_v43 = vadd.f32 %v1633_v26, %v1087_v53  ;;  %v1090_v19 = vpop.f32.mrf.mxu1  ;;  %v5320_v17 = vld [vmem:[%s8838_s3 + $0x1f0] sm:$0xff]  ;;  %v5321_v53 = vld [vmem:[%s8838_s3 + $0x1f8] sm:$0xff] }
 0x226   : > { %2853 = vmatpush.msra.mxu2 %v5320_v17  ;;  %3062 = vmatpush.msra.mxu3 %v5321_v53  ;;  %v5173_v17 = vld [vmem:[%s8838_s3 + $0x158] sm:$0xff]  ;;  %v9114_v53 = vld [vmem:[#allocation12_spill] sm:$0xff] }
 0x227   : > { %9107 = vst [vmem:[#allocation121_spill] sm:$0xff] %v7601_v43  ;;  %v7604_v58 = vadd.f32 %v2121_v45, %v1425_v62  ;;  %v5721_v62 = vld [vmem:[%s6049_s11 + $0x188] sm:$0xff]  ;;  %2237 = vmatpush.msra.mxu1 %v5173_v17 }
 0x228   : > { %5025 = vmatmul.msk.f32.gmra.mxu1 %vm642_vm1, %v9109_v29 }
 0x229   : > { %9108 = vst [vmem:[#allocation122_spill] sm:$0xff] %v7604_v58  ;;  %5089 = vmatmul.msk.f32.gmra.mxu2 %vm642_vm1, %v5719_v54  ;;  %5153 = vmatmul.msk.f32.gmra.mxu3 %vm642_vm1, %v5719_v54  ;;  %v2124_v31 = vpop.f32.mrf.mxu0  ;;  %v9111_v54 = vld [vmem:[#allocation99_spill] sm:$0xff]  ;;  %v1854_v58 = vrot.slane %v5721_v62, 2 }
 0x22c   : > { %v1427_v45 = vpop.f32.mrf.mxu2  ;;  %v1636_v29 = vpop.f32.mrf.mxu3  ;;  %5237 = vmatmul.msk.f32.gmra.mxu0 %vm642_vm1, %v7611_v0 }
 0x22d   : > { %v1428_v15 = vadd.f32 %v1427_v45, %v9111_v54  ;;  %v7622_v26 = vadd.f32 %v1636_v29, %v1090_v19  ;;  %v1093_v39 = vpop.f32.mrf.mxu1  ;;  %v7635_v19 = vsel %vm1756_vm2, %v1852_v16, %v1854_v58 }
 0x22e   : > { %9115 = vst [vmem:[#allocation12_spill] sm:$0xff] %v7635_v19 }
 0x22f   : > { %9112 = vst [vmem:[#allocation99_spill] sm:$0xff] %v7622_v26  ;;  %v7625_v43 = vadd.f32 %v2124_v31, %v1428_v15  ;;  %v9116_v31 = vld [vmem:[#allocation55_spill] sm:$0xff] }
 0x230   : > { %5026 = vmatmul.msk.f32.gmra.mxu1 %vm642_vm1, %v9114_v53  ;;  %v5722_v53 = vld [vmem:[%s6049_s11 + $0x190] sm:$0xff] }
 0x231   : > { %9113 = vst [vmem:[#allocation123_spill] sm:$0xff] %v7625_v43  ;;  %5090 = vmatmul.msk.f32.gmra.mxu2 %vm642_vm1, %v5720_v6  ;;  %5154 = vmatmul.msk.f32.gmra.mxu3 %vm642_vm1, %v5720_v6  ;;  %v2127_v45 = vpop.f32.mrf.mxu0  ;;  %v1856_v0 = vrot.slane %v5722_v53, 2  ;;  %v9119_v6 = vld [vmem:[#allocation14_spill] sm:$0xff] }
 0x233   : > { %v7650_v17 = vsel %vm1756_vm2, %v1854_v58, %v1856_v0 }
 0x234   : > { %v1430_v29 = vpop.f32.mrf.mxu2  ;;  %v1639_v54 = vpop.f32.mrf.mxu3  ;;  %5238 = vmatmul.msk.f32.gmra.mxu0 %vm642_vm1, %v7635_v19  ;;  %9120 = vst [vmem:[#allocation14_spill] sm:$0xff] %v7650_v17  ;;  %v9144_v19 = vld [vmem:[#allocation24_spill] sm:$0xff] }
 0x235   : > { %v1431_v15 = vadd.f32 %v1430_v29, %v9116_v31  ;;  %v7640_v43 = vadd.f32 %v1639_v54, %v1093_v39  ;;  %v1096_v26 = vpop.f32.mrf.mxu1  ;;  %v3583_v39 = vld [vmem:[%s8839_s4 + $0x30] sm:$0xff] }
 0x236   : > { %3602 = vmatpush.msra.mxu0 %v3583_v39 }
 0x237   : > { %9117 = vst [vmem:[#allocation55_spill] sm:$0xff] %v7640_v43  ;;  %v7643_v52 = vadd.f32 %v2127_v45, %v1431_v15  ;;  %v9121_v45 = vld [vmem:[#allocation58_spill] sm:$0xff]  ;;  %v9124_v43 = vld [vmem:[#allocation16_spill] sm:$0xff] }
 0x238   : > { %5027 = vmatmul.msk.f32.gmra.mxu1 %vm642_vm1, %v9119_v6  ;;  %v5723_v6 = vld [vmem:[%s6049_s11 + $0x198] sm:$0xff] }
 0x239   : > { %9118 = vst [vmem:[#allocation124_spill] sm:$0xff] %v7643_v52  ;;  %5091 = vmatmul.msk.f32.gmra.mxu2 %vm642_vm1, %v5721_v62  ;;  %5155 = vmatmul.msk.f32.gmra.mxu3 %vm642_vm1, %v5721_v62  ;;  %v2130_v16 = vpop.f32.mrf.mxu0  ;;  %v1858_v52 = vrot.slane %v5723_v6, 2 }
 0x23c   : > { %v1433_v29 = vpop.f32.mrf.mxu2  ;;  %v1642_v54 = vpop.f32.mrf.mxu3  ;;  %5239 = vmatmul.msk.f32.gmra.mxu0 %vm642_vm1, %v7650_v17  ;;  %v7668_v17 = vsel %vm1756_vm2, %v1856_v0, %v1858_v52 }
 0x23d   : > { %v1434_v31 = vadd.f32 %v1433_v29, %v9121_v45  ;;  %v7658_v15 = vadd.f32 %v1642_v54, %v1096_v26  ;;  %v1099_v62 = vpop.f32.mrf.mxu1  ;;  %9125 = vst [vmem:[#allocation16_spill] sm:$0xff] %v7668_v17  ;;  %v9126_v54 = vld [vmem:[#allocation61_spill] sm:$0xff] }
 0x23f   : > { %9122 = vst [vmem:[#allocation58_spill] sm:$0xff] %v7658_v15  ;;  %v7661_v58 = vadd.f32 %v2130_v16, %v1434_v31 }
 0x240   : > { %5028 = vmatmul.msk.f32.gmra.mxu1 %vm642_vm1, %v9124_v43  ;;  %v5724_v43 = vld [vmem:[%s6049_s11 + $0x1a0] sm:$0xff] }
 0x241   : > { %9123 = vst [vmem:[#allocation125_spill] sm:$0xff] %v7661_v58  ;;  %5092 = vmatmul.msk.f32.gmra.mxu2 %vm642_vm1, %v5722_v53  ;;  %5156 = vmatmul.msk.f32.gmra.mxu3 %vm642_vm1, %v5722_v53  ;;  %v2133_v39 = vpop.f32.mrf.mxu0  ;;  %v1860_v58 = vrot.slane %v5724_v43, 2  ;;  %v9129_v53 = vld [vmem:[#allocation18_spill] sm:$0xff] }
 0x244   : > { %v1436_v29 = vpop.f32.mrf.mxu2  ;;  %v1645_v26 = vpop.f32.mrf.mxu3  ;;  %5240 = vmatmul.msk.f32.gmra.mxu0 %vm642_vm1, %v7668_v17  ;;  %v7683_v17 = vsel %vm1756_vm2, %v1858_v52, %v1860_v58 }
 0x245   : > { %v1437_v45 = vadd.f32 %v1436_v29, %v9126_v54  ;;  %v7673_v16 = vadd.f32 %v1645_v26, %v1099_v62  ;;  %v1102_v31 = vpop.f32.mrf.mxu1  ;;  %9130 = vst [vmem:[#allocation18_spill] sm:$0xff] %v7683_v17  ;;  %v9131_v26 = vld [vmem:[#allocation64_spill] sm:$0xff] }
 0x247   : > { %9127 = vst [vmem:[#allocation61_spill] sm:$0xff] %v7673_v16  ;;  %v7676_v15 = vadd.f32 %v2133_v39, %v1437_v45 }
 0x248   : > { %5029 = vmatmul.msk.f32.gmra.mxu1 %vm642_vm1, %v9129_v53  ;;  %v5725_v53 = vld [vmem:[%s6049_s11 + $0x1a8] sm:$0xff] }
 0x249   : > { %9128 = vst [vmem:[#allocation126_spill] sm:$0xff] %v7676_v15  ;;  %5093 = vmatmul.msk.f32.gmra.mxu2 %vm642_vm1, %v5723_v6  ;;  %5157 = vmatmul.msk.f32.gmra.mxu3 %vm642_vm1, %v5723_v6  ;;  %v2136_v0 = vpop.f32.mrf.mxu0  ;;  %v1862_v15 = vrot.slane %v5725_v53, 2  ;;  %v9134_v6 = vld [vmem:[#allocation20_spill] sm:$0xff] }
 0x24c   : > { %v1439_v29 = vpop.f32.mrf.mxu2  ;;  %v1648_v62 = vpop.f32.mrf.mxu3  ;;  %5241 = vmatmul.msk.f32.gmra.mxu0 %vm642_vm1, %v7683_v17  ;;  %v7698_v17 = vsel %vm1756_vm2, %v1860_v58, %v1862_v15 }
 0x24d   : > { %v1440_v54 = vadd.f32 %v1439_v29, %v9131_v26  ;;  %v7688_v39 = vadd.f32 %v1648_v62, %v1102_v31  ;;  %v1105_v45 = vpop.f32.mrf.mxu1  ;;  %9135 = vst [vmem:[#allocation20_spill] sm:$0xff] %v7698_v17  ;;  %v9136_v62 = vld [vmem:[#allocation67_spill] sm:$0xff] }
 0x24f   : > { %9132 = vst [vmem:[#allocation64_spill] sm:$0xff] %v7688_v39  ;;  %v7691_v16 = vadd.f32 %v2136_v0, %v1440_v54 }
 0x250   : > { %5030 = vmatmul.msk.f32.gmra.mxu1 %vm642_vm1, %v9134_v6 }
 0x251   : > { %9133 = vst [vmem:[#allocation127_spill] sm:$0xff] %v7691_v16  ;;  %5094 = vmatmul.msk.f32.gmra.mxu2 %vm642_vm1, %v5724_v43  ;;  %5158 = vmatmul.msk.f32.gmra.mxu3 %vm642_vm1, %v5724_v43  ;;  %v2139_v52 = vpop.f32.mrf.mxu0  ;;  %v5726_v16 = vld [vmem:[%s6049_s11 + $0x1b0] sm:$0xff]  ;;  %v9139_v43 = vld [vmem:[#allocation22_spill] sm:$0xff] }
 0x252   : > { %v1864_v6 = vrot.slane %v5726_v16, 2 }
 0x254   : > { %v1442_v29 = vpop.f32.mrf.mxu2  ;;  %v1651_v31 = vpop.f32.mrf.mxu3  ;;  %5242 = vmatmul.msk.f32.gmra.mxu0 %vm642_vm1, %v7698_v17  ;;  %v7713_v17 = vsel %vm1756_vm2, %v1862_v15, %v1864_v6  ;;  %v5318_v15 = vld [vmem:[%s8838_s3 + $0x1e0] sm:$0xff] }
 0x255   : > { %v1443_v26 = vadd.f32 %v1442_v29, %v9136_v62  ;;  %v7703_v0 = vadd.f32 %v1651_v31, %v1105_v45  ;;  %v1108_v54 = vpop.f32.mrf.mxu1  ;;  %9140 = vst [vmem:[#allocation22_spill] sm:$0xff] %v7713_v17  ;;  %v3582_v45 = vld [vmem:[%s8839_s4 + $0x28] sm:$0xff]  ;;  %2854 = vmatpush.msra.mxu2 %v5318_v15 }
 0x256   : > { %3603 = vmatpush.msra.mxu0 %v3582_v45  ;;  %v5319_v45 = vld [vmem:[%s8838_s3 + $0x1e8] sm:$0xff] }
 0x257   : > { %9137 = vst [vmem:[#allocation67_spill] sm:$0xff] %v7703_v0  ;;  %v7706_v39 = vadd.f32 %v2139_v52, %v1443_v26  ;;  %v9141_v52 = vld [vmem:[#allocation70_spill] sm:$0xff]  ;;  %3063 = vmatpush.msra.mxu3 %v5319_v45 }
 0x258   : > { %5031 = vmatmul.msk.f32.gmra.mxu1 %vm642_vm1, %v9139_v43 }
 0x259   : > { %9138 = vst [vmem:[#allocation128_spill] sm:$0xff] %v7706_v39  ;;  %5095 = vmatmul.msk.f32.gmra.mxu2 %vm642_vm1, %v5725_v53  ;;  %5159 = vmatmul.msk.f32.gmra.mxu3 %vm642_vm1, %v5725_v53  ;;  %v2142_v58 = vpop.f32.mrf.mxu0  ;;  %v5727_v53 = vld [vmem:[%s6049_s11 + $0x1b8] sm:$0xff] }
 0x25a   : > { %v1866_v39 = vrot.slane %v5727_v53, 2 }
 0x25c   : > { %v1445_v29 = vpop.f32.mrf.mxu2  ;;  %v1654_v31 = vpop.f32.mrf.mxu3  ;;  %5243 = vmatmul.msk.f32.gmra.mxu0 %vm642_vm1, %v7713_v17  ;;  %v9148_v17 = vld [vmem:[#allocation26_spill] sm:$0xff] }
 0x25d   : > { %v1446_v62 = vadd.f32 %v1445_v29, %v9141_v52  ;;  %v7721_v26 = vadd.f32 %v1654_v31, %v1108_v54  ;;  %v1111_v43 = vpop.f32.mrf.mxu1  ;;  %v5171_v29 = vld [vmem:[%s8838_s3 + $0x148] sm:$0xff] }
 0x25e   : > { %2238 = vmatpush.msra.mxu1 %v5171_v29 }
 0x25f   : > { %9142 = vst [vmem:[#allocation70_spill] sm:$0xff] %v7721_v26  ;;  %v7724_v0 = vadd.f32 %v2142_v58, %v1446_v62  ;;  %v7737_v58 = vsel %vm1756_vm2, %v1864_v6, %v1866_v39 }
 0x260   : > { %5032 = vmatmul.msk.f32.gmra.mxu1 %vm642_vm1, %v9144_v19  ;;  %v9145_v19 = vld [vmem:[#allocation73_spill] sm:$0xff] }
 0x261   : > { %9143 = vst [vmem:[#allocation129_spill] sm:$0xff] %v7724_v0  ;;  %5096 = vmatmul.msk.f32.gmra.mxu2 %vm642_vm1, %v5726_v16  ;;  %5160 = vmatmul.msk.f32.gmra.mxu3 %vm642_vm1, %v5726_v16  ;;  %v2145_v54 = vpop.f32.mrf.mxu0  ;;  %v5728_v0 = vld [vmem:[%s6049_s11 + $0x1c0] sm:$0xff] }
 0x262   : > { %v1868_v6 = vrot.slane %v5728_v0, 2 }
 0x264   : > { %v1448_v31 = vpop.f32.mrf.mxu2  ;;  %v1657_v52 = vpop.f32.mrf.mxu3  ;;  %5244 = vmatmul.msk.f32.gmra.mxu0 %vm642_vm1, %v7737_v58  ;;  %v7755_v45 = vsel %vm1756_vm2, %v1866_v39, %v1868_v6 }
 0x265   : > { %v1449_v62 = vadd.f32 %v1448_v31, %v9145_v19  ;;  %v7745_v15 = vadd.f32 %v1657_v52, %v1111_v43  ;;  %v1114_v16 = vpop.f32.mrf.mxu1  ;;  %9149 = vst [vmem:[#allocation26_spill] sm:$0xff] %v7755_v45  ;;  %v9150_v52 = vld [vmem:[#allocation76_spill] sm:$0xff] }
 0x267   : > { %9146 = vst [vmem:[#allocation24_spill] sm:$0xff] %v7745_v15  ;;  %v7748_v26 = vadd.f32 %v2145_v54, %v1449_v62 }
 0x268   : > { %5033 = vmatmul.msk.f32.gmra.mxu1 %vm642_vm1, %v9148_v17  ;;  %v5729_v17 = vld [vmem:[%s6049_s11 + $0x1c8] sm:$0xff] }
 0x269   : > { %9147 = vst [vmem:[#allocation73_spill] sm:$0xff] %v7748_v26  ;;  %5097 = vmatmul.msk.f32.gmra.mxu2 %vm642_vm1, %v5727_v53  ;;  %5161 = vmatmul.msk.f32.gmra.mxu3 %vm642_vm1, %v5727_v53  ;;  %v2148_v29 = vpop.f32.mrf.mxu0  ;;  %v1870_v26 = vrot.slane %v5729_v17, 2  ;;  %v9151_v53 = vld [vmem:[#allocation28_spill] sm:$0xff] }
 0x26b   : > { %v7770_v39 = vsel %vm1756_vm2, %v1868_v6, %v1870_v26  ;;  %v3581_v6 = vld [vmem:[%s8839_s4 + $0x20] sm:$0xff] }
 0x26c   : > { %v1451_v31 = vpop.f32.mrf.mxu2  ;;  %v1660_v43 = vpop.f32.mrf.mxu3  ;;  %5245 = vmatmul.msk.f32.gmra.mxu0 %vm642_vm1, %v7755_v45  ;;  %9152 = vst [vmem:[#allocation76_spill] sm:$0xff] %v7770_v39 }
 0x26d   : > { %v1452_v54 = vadd.f32 %v1451_v31, %v9150_v52  ;;  %v7760_v19 = vadd.f32 %v1660_v43, %v1114_v16  ;;  %v1117_v62 = vpop.f32.mrf.mxu1  ;;  %v5730_v43 = vld [vmem:[%s6049_s11 + $0x1d0] sm:$0xff]  ;;  %3604 = vmatpush.msra.mxu0 %v3581_v6 }
 0x26e   : > { %v1872_v52 = vrot.slane %v5730_v43, 2 }
 0x26f   : > { %v7763_v15 = vadd.f32 %v2148_v29, %v1452_v54  ;;  %v9155_v54 = vld [vmem:[#allocation32_spill] sm:$0xff] }
 0x270   : > { %5034 = vmatmul.msk.f32.gmra.mxu1 %vm642_vm1, %v9151_v53 }
 0x271   : > { %5098 = vmatmul.msk.f32.gmra.mxu2 %vm642_vm1, %v5728_v0  ;;  %5162 = vmatmul.msk.f32.gmra.mxu3 %vm642_vm1, %v5728_v0  ;;  %v7784_v0 = vsel %vm1756_vm2, %v1870_v26, %v1872_v52 }
 0x272   : > { %9156 = vst [vmem:[#allocation32_spill] sm:$0xff] %v7784_v0 }
 0x274   : > { %v7772_v45 = vpop.f32.mrf.mxu2  ;;  %v1663_v31 = vpop.f32.mrf.mxu3  ;;  %5246 = vmatmul.msk.f32.gmra.mxu0 %vm642_vm1, %v7770_v39  ;;  %v9159_v39 = vld [vmem:[#allocation36_spill] sm:$0xff] }
 0x275   : > { %9153 = vst [vmem:[#allocation28_spill] sm:$0xff] %v7772_v45  ;;  %v7776_v16 = vadd.f32 %v1663_v31, %v1117_v62  ;;  %v1120_v29 = vpop.f32.mrf.mxu1  ;;  %v5738_v45 = vld [vmem:[%s6049_s11 + $0x8] sm:$0xff] }
 0x277   : > { %9154 = vst [vmem:[#allocation130_spill] sm:$0xff] %v7776_v16  ;;  %v5731_v16 = vld [vmem:[%s6049_s11 + $0x1d8] sm:$0xff] }
 0x278   : > { %5035 = vmatmul.msk.f32.gmra.mxu1 %vm642_vm1, %v9155_v54 }
 0x279   : > { %5099 = vmatmul.msk.f32.gmra.mxu2 %vm642_vm1, %v5729_v17  ;;  %5163 = vmatmul.msk.f32.gmra.mxu3 %vm642_vm1, %v5729_v17  ;;  %v1874_v17 = vrot.slane %v5731_v16, 2 }
 0x27b   : > { %v7801_v26 = vsel %vm1756_vm2, %v1872_v52, %v1874_v17 }
 0x27c   : > { %v7789_v62 = vpop.f32.mrf.mxu2  ;;  %v1666_v53 = vpop.f32.mrf.mxu3  ;;  %5247 = vmatmul.msk.f32.gmra.mxu0 %vm642_vm1, %v7784_v0  ;;  %9160 = vst [vmem:[#allocation36_spill] sm:$0xff] %v7801_v26 }
 0x27d   : > { %9157 = vst [vmem:[#allocation131_spill] sm:$0xff] %v7789_v62  ;;  %v7793_v31 = vadd.f32 %v1666_v53, %v1120_v29  ;;  %v1123_v54 = vpop.f32.mrf.mxu1 }
 0x27f   : > { %9158 = vst [vmem:[#allocation132_spill] sm:$0xff] %v7793_v31  ;;  %v5732_v31 = vld [vmem:[%s6049_s11 + $0x1e0] sm:$0xff] }
 0x280   : > { %5036 = vmatmul.msk.f32.gmra.mxu1 %vm642_vm1, %v9159_v39  ;;  %v1876_v0 = vrot.slane %v5732_v31, 2  ;;  %v9163_v39 = vld [vmem:[#allocation40_spill] sm:$0xff] }
 0x281   : > { %5100 = vmatmul.msk.f32.gmra.mxu2 %vm642_vm1, %v5730_v43  ;;  %5164 = vmatmul.msk.f32.gmra.mxu3 %vm642_vm1, %v5730_v43 }
 0x282   : > { %v7815_v43 = vsel %vm1756_vm2, %v1874_v17, %v1876_v0 }
 0x283   : > { %9164 = vst [vmem:[#allocation40_spill] sm:$0xff] %v7815_v43 }
 0x284   : > { %v7803_v6 = vpop.f32.mrf.mxu2  ;;  %v1669_v62 = vpop.f32.mrf.mxu3  ;;  %5248 = vmatmul.msk.f32.gmra.mxu0 %vm642_vm1, %v7801_v26 }
 0x285   : > { %9161 = vst [vmem:[#allocation133_spill] sm:$0xff] %v7803_v6  ;;  %v7807_v29 = vadd.f32 %v1669_v62, %v1123_v54  ;;  %v1126_v53 = vpop.f32.mrf.mxu1 }
 0x287   : > { %9162 = vst [vmem:[#allocation134_spill] sm:$0xff] %v7807_v29  ;;  %v5733_v29 = vld [vmem:[%s6049_s11 + $0x1e8] sm:$0xff] }
 0x288   : > { %5037 = vmatmul.msk.f32.gmra.mxu1 %vm642_vm1, %v9163_v39  ;;  %v1878_v26 = vrot.slane %v5733_v29, 2  ;;  %v9167_v39 = vld [vmem:[#allocation44_spill] sm:$0xff] }
 0x289   : > { %5101 = vmatmul.msk.f32.gmra.mxu2 %vm642_vm1, %v5731_v16  ;;  %5165 = vmatmul.msk.f32.gmra.mxu3 %vm642_vm1, %v5731_v16 }
 0x28a   : > { %v7829_v16 = vsel %vm1756_vm2, %v1876_v0, %v1878_v26 }
 0x28b   : > { %9168 = vst [vmem:[#allocation44_spill] sm:$0xff] %v7829_v16 }
 0x28c   : > { %v7817_v52 = vpop.f32.mrf.mxu2  ;;  %v1672_v6 = vpop.f32.mrf.mxu3  ;;  %5249 = vmatmul.msk.f32.gmra.mxu0 %vm642_vm1, %v7815_v43 }
 0x28d   : > { %9165 = vst [vmem:[#allocation135_spill] sm:$0xff] %v7817_v52  ;;  %v7821_v62 = vadd.f32 %v1672_v6, %v1126_v53  ;;  %v1129_v54 = vpop.f32.mrf.mxu1 }
 0x28f   : > { %9166 = vst [vmem:[#allocation136_spill] sm:$0xff] %v7821_v62  ;;  %v5734_v62 = vld [vmem:[%s6049_s11 + $0x1f0] sm:$0xff] }
 0x290   : > { %5038 = vmatmul.msk.f32.gmra.mxu1 %vm642_vm1, %v9167_v39  ;;  %v1880_v43 = vrot.slane %v5734_v62, 2  ;;  %v9171_v39 = vld [vmem:[#allocation48_spill] sm:$0xff] }
 0x291   : > { %5102 = vmatmul.msk.f32.gmra.mxu2 %vm642_vm1, %v5732_v31  ;;  %5166 = vmatmul.msk.f32.gmra.mxu3 %vm642_vm1, %v5732_v31  ;;  %v3580_v31 = vld [vmem:[%s8839_s4 + $0x18] sm:$0xff] }
 0x292   : > { %v7843_v0 = vsel %vm1756_vm2, %v1878_v26, %v1880_v43  ;;  %3605 = vmatpush.msra.mxu0 %v3580_v31 }
 0x293   : > { %9172 = vst [vmem:[#allocation48_spill] sm:$0xff] %v7843_v0 }
 0x294   : > { %v7831_v17 = vpop.f32.mrf.mxu2  ;;  %v1675_v52 = vpop.f32.mrf.mxu3  ;;  %5250 = vmatmul.msk.f32.gmra.mxu0 %vm642_vm1, %v7829_v16  ;;  %v5735_v16 = vld [vmem:[%s6049_s11 + $0x1f8] sm:$0xff] }
 0x295   : > { %9169 = vst [vmem:[#allocation137_spill] sm:$0xff] %v7831_v17  ;;  %v7835_v6 = vadd.f32 %v1675_v52, %v1129_v54  ;;  %v1132_v53 = vpop.f32.mrf.mxu1  ;;  %v9175_v17 = vld [vmem:[#allocation51_spill] sm:$0xff] }
 0x297   : > { %9170 = vst [vmem:[#allocation138_spill] sm:$0xff] %v7835_v6 }
 0x298   : > { %5039 = vmatmul.msk.f32.gmra.mxu1 %vm642_vm1, %v9171_v39 }
 0x299   : > { %5103 = vmatmul.msk.f32.gmra.mxu2 %vm642_vm1, %v5733_v29  ;;  %5167 = vmatmul.msk.f32.gmra.mxu3 %vm642_vm1, %v5733_v29  ;;  %v1882_v29 = vrot.slane %v5735_v16, 2 }
 0x29b   : > { %v7860_v26 = vsel %vm1756_vm2, %v1880_v43, %v1882_v29 }
 0x29c   : > { %v7848_v52 = vpop.f32.mrf.mxu2  ;;  %v1678_v54 = vpop.f32.mrf.mxu3  ;;  %5251 = vmatmul.msk.f32.gmra.mxu0 %vm642_vm1, %v7843_v0  ;;  %9176 = vst [vmem:[#allocation51_spill] sm:$0xff] %v7860_v26 }
 0x29d   : > { %9173 = vst [vmem:[#allocation139_spill] sm:$0xff] %v7848_v52  ;;  %v7852_v39 = vadd.f32 %v1678_v54, %v1132_v53  ;;  %v1135_v6 = vpop.f32.mrf.mxu1 }
 0x29f   : > { %9174 = vst [vmem:[#allocation140_spill] sm:$0xff] %v7852_v39  ;;  %v5736_v39 = vld [vmem:[%s6654_s17] sm:$0xff] }
 0x2a0   : > { %5040 = vmatmul.msk.f32.gmra.mxu1 %vm642_vm1, %v9175_v17  ;;  %v1884_v52 = vrot.slane %v5736_v39, 2  ;;  %v9179_v17 = vld [vmem:[#allocation53_spill] sm:$0xff] }
 0x2a1   : > { %5104 = vmatmul.msk.f32.gmra.mxu2 %vm642_vm1, %v5734_v62  ;;  %5168 = vmatmul.msk.f32.gmra.mxu3 %vm642_vm1, %v5734_v62  ;;  %v5737_v62 = vld [vmem:[%s6049_s11] sm:$0xff] }
 0x2a2   : > { %v7874_v43 = vsel %vm1756_vm2, %v1882_v29, %v1884_v52 }
 0x2a3   : > { %9180 = vst [vmem:[#allocation53_spill] sm:$0xff] %v7874_v43 }
 0x2a4   : > { %v7862_v31 = vpop.f32.mrf.mxu2  ;;  %v1681_v0 = vpop.f32.mrf.mxu3  ;;  %5252 = vmatmul.msk.f32.gmra.mxu0 %vm642_vm1, %v7860_v26  ;;  %v2583_v26 = vrot.slane %v5738_v45, 3  ;;  %v5739_v45 = vld [vmem:[%s6049_s11 + $0x10] sm:$0xff] }
 0x2a5   : > { %9177 = vst [vmem:[#allocation141_spill] sm:$0xff] %v7862_v31  ;;  %v7866_v53 = vadd.f32 %v1681_v0, %v1135_v6  ;;  %v1138_v54 = vpop.f32.mrf.mxu1  ;;  %v2582_v31 = vrot.slane %v5737_v62, 3  ;;  %v2585_v52 = vrot.slane %v5739_v45, 3 }
 0x2a7   : > { %9178 = vst [vmem:[#allocation142_spill] sm:$0xff] %v7866_v53  ;;  %v9183_v53 = vld [vmem:[#allocation54_spill] sm:$0xff] }
 0x2a8   : > { %5041 = vmatmul.msk.f32.gmra.mxu1 %vm642_vm1, %v9179_v17 }
 0x2a9   : > { %5105 = vmatmul.msk.f32.gmra.mxu2 %vm642_vm1, %v5735_v16  ;;  %5169 = vmatmul.msk.f32.gmra.mxu3 %vm642_vm1, %v5735_v16  ;;  %v2584_v16 = vsel %vm2581_vm3, %v2582_v31, %v2583_v26  ;;  %v3579_v31 = vld [vmem:[%s8839_s4 + $0x10] sm:$0xff] }
 0x2aa   : > { %3606 = vmatpush.msra.mxu0 %v3579_v31 }
 0x2ac   : > { %v7878_v6 = vpop.f32.mrf.mxu2  ;;  %v1684_v0 = vpop.f32.mrf.mxu3  ;;  %5253 = vmatmul.msk.f32.gmra.mxu0 %vm642_vm1, %v7874_v43 }
 0x2ad   : > { %9181 = vst [vmem:[#allocation143_spill] sm:$0xff] %v7878_v6  ;;  %v7882_v39 = vadd.f32 %v1684_v0, %v1138_v54  ;;  %v1141_v17 = vpop.f32.mrf.mxu1  ;;  %v2586_v0 = vsel %vm2581_vm3, %v2583_v26, %v2585_v52 }
 0x2af   : > { %9182 = vst [vmem:[#allocation144_spill] sm:$0xff] %v7882_v39  ;;  %v9186_v39 = vld [vmem:[#allocation57_spill] sm:$0xff] }
 0x2b0   : > { %5254 = vmatmul.msk.f32.vlgmr.msra.gmra.mxu1 %vm642_vm1, %v9183_v53  ;;  %v5740_v53 = vld [vmem:[%s6049_s11 + $0x18] sm:$0xff] }
 0x2b1   : > { %5338 = vmatmul.msk.f32.vlgmr.msra.gmra.mxu2 %vm642_vm1, %v2584_v16  ;;  %5402 = vmatmul.msk.f32.vlgmr.msra.gmra.mxu3 %vm642_vm1, %v2584_v16  ;;  %v2587_v16 = vrot.slane %v5740_v53, 3 }
 0x2b4   : > { %v7890_v29 = vpop.f32.mrf.mxu2  ;;  %v1687_v62 = vpop.f32.mrf.mxu3 }
 0x2b5   : > { %9184 = vst [vmem:[#allocation54_spill] sm:$0xff] %v7890_v29  ;;  %v7892_v6 = vadd.f32 %v1687_v62, %v1141_v17  ;;  %v1144_v54 = vpop.f32.mrf.mxu1 }
 0x2b7   : > { %9185 = vst [vmem:[#allocation145_spill] sm:$0xff] %v7892_v6  ;;  %v9189_v6 = vld [vmem:[#allocation60_spill] sm:$0xff] }
 0x2b8   : > { %5255 = vmatmul.msk.f32.gmra.mxu1 %vm642_vm1, %v9186_v39  ;;  %v2588_v39 = vsel %vm2581_vm3, %v2585_v52, %v2587_v16  ;;  %v7920_v52 = vpop.f32.mrf.mxu0 }
 0x2b9   : > { %5339 = vmatmul.msk.f32.gmra.mxu2 %vm642_vm1, %v2586_v0  ;;  %5403 = vmatmul.msk.f32.gmra.mxu3 %vm642_vm1, %v2586_v0  ;;  %v5741_v0 = vld [vmem:[%s6049_s11 + $0x20] sm:$0xff] }
 0x2ba   : > { %v2589_v29 = vrot.slane %v5741_v0, 3 }
 0x2bc   : > { %v7903_v17 = vpop.f32.mrf.mxu2  ;;  %v1690_v45 = vpop.f32.mrf.mxu3 }
 0x2bd   : > { %9187 = vst [vmem:[#allocation57_spill] sm:$0xff] %v7903_v17  ;;  %v7905_v62 = vadd.f32 %v1690_v45, %v1144_v54  ;;  %v1147_v26 = vpop.f32.mrf.mxu1  ;;  %v2590_v45 = vsel %vm2581_vm3, %v2587_v16, %v2589_v29  ;;  %v9196_v16 = vld [vmem:[#allocation66_spill] sm:$0xff] }
 0x2bf   : > { %9188 = vst [vmem:[#allocation146_spill] sm:$0xff] %v7905_v62  ;;  %v9192_v62 = vld [vmem:[#allocation63_spill] sm:$0xff] }
 0x2c0   : > { %5256 = vmatmul.msk.f32.gmra.mxu1 %vm642_vm1, %v9189_v6  ;;  %9193 = vst [vmem:[#allocation63_spill] sm:$0xff] %v7920_v52  ;;  %v5742_v6 = vld [vmem:[%s6049_s11 + $0x28] sm:$0xff]  ;;  %v7935_v43 = vpop.f32.mrf.mxu0 }
 0x2c1   : > { %5340 = vmatmul.msk.f32.gmra.mxu2 %vm642_vm1, %v2588_v39  ;;  %5404 = vmatmul.msk.f32.gmra.mxu3 %vm642_vm1, %v2588_v39  ;;  %v2591_v39 = vrot.slane %v5742_v6, 3  ;;  %9197 = vst [vmem:[#allocation66_spill] sm:$0xff] %v7935_v43  ;;  %v9204_v43 = vld [vmem:[#allocation72_spill] sm:$0xff] }
 0x2c4   : > { %v7913_v53 = vpop.f32.mrf.mxu2  ;;  %v1693_v31 = vpop.f32.mrf.mxu3 }
 0x2c5   : > { %9190 = vst [vmem:[#allocation60_spill] sm:$0xff] %v7913_v53  ;;  %v7915_v17 = vadd.f32 %v1693_v31, %v1147_v26  ;;  %v1150_v54 = vpop.f32.mrf.mxu1 }
 0x2c7   : > { %9191 = vst [vmem:[#allocation147_spill] sm:$0xff] %v7915_v17  ;;  %v2592_v17 = vsel %vm2581_vm3, %v2589_v29, %v2591_v39 }
 0x2c8   : > { %5257 = vmatmul.msk.f32.gmra.mxu1 %vm642_vm1, %v9192_v62  ;;  %v5743_v62 = vld [vmem:[%s6049_s11 + $0x30] sm:$0xff] }
 0x2c9   : > { %5341 = vmatmul.msk.f32.gmra.mxu2 %vm642_vm1, %v2590_v45  ;;  %5405 = vmatmul.msk.f32.gmra.mxu3 %vm642_vm1, %v2590_v45  ;;  %v2593_v45 = vrot.slane %v5743_v62, 3 }
 0x2cb   : > { %v2594_v29 = vsel %vm2581_vm3, %v2591_v39, %v2593_v45 }
 0x2cc   : > { %v7925_v0 = vpop.f32.mrf.mxu2  ;;  %v1696_v53 = vpop.f32.mrf.mxu3 }
 0x2cd   : > { %9194 = vst [vmem:[#allocation148_spill] sm:$0xff] %v7925_v0  ;;  %v7927_v26 = vadd.f32 %v1696_v53, %v1150_v54  ;;  %v1153_v31 = vpop.f32.mrf.mxu1 }
 0x2cf   : > { %9195 = vst [vmem:[#allocation149_spill] sm:$0xff] %v7927_v26  ;;  %v9200_v26 = vld [vmem:[#allocation69_spill] sm:$0xff] }
 0x2d0   : > { %5258 = vmatmul.msk.f32.gmra.mxu1 %vm642_vm1, %v9196_v16  ;;  %v5744_v16 = vld [vmem:[%s6049_s11 + $0x38] sm:$0xff] }
 0x2d1   : > { %5342 = vmatmul.msk.f32.gmra.mxu2 %vm642_vm1, %v2592_v17  ;;  %5406 = vmatmul.msk.f32.gmra.mxu3 %vm642_vm1, %v2592_v17  ;;  %v3578_v17 = vld [vmem:[%s8839_s4 + $0x8] sm:$0xff]  ;;  %v2595_v62 = vrot.slane %v5744_v16, 3 }
 0x2d2   : > { %3607 = vmatpush.msra.mxu0 %v3578_v17 }
 0x2d4   : > { %v7937_v6 = vpop.f32.mrf.mxu2  ;;  %v1699_v0 = vpop.f32.mrf.mxu3 }
 0x2d5   : > { %9198 = vst [vmem:[#allocation150_spill] sm:$0xff] %v7937_v6  ;;  %v7939_v53 = vadd.f32 %v1699_v0, %v1153_v31  ;;  %v1156_v54 = vpop.f32.mrf.mxu1  ;;  %v2596_v6 = vsel %vm2581_vm3, %v2593_v45, %v2595_v62  ;;  %v9208_v45 = vld [vmem:[#allocation75_spill] sm:$0xff] }
 0x2d7   : > { %9199 = vst [vmem:[#allocation151_spill] sm:$0xff] %v7939_v53  ;;  %v7952_v53 = vpop.f32.mrf.mxu0 }
 0x2d8   : > { %5259 = vmatmul.msk.f32.gmra.mxu1 %vm642_vm1, %v9200_v26  ;;  %9202 = vst [vmem:[#allocation152_spill] sm:$0xff] %v7952_v53 }
 0x2d9   : > { %5343 = vmatmul.msk.f32.gmra.mxu2 %vm642_vm1, %v2594_v29  ;;  %5407 = vmatmul.msk.f32.gmra.mxu3 %vm642_vm1, %v2594_v29  ;;  %v5745_v29 = vld [vmem:[%s6049_s11 + $0x40] sm:$0xff] }
 0x2da   : > { %v2597_v17 = vrot.slane %v5745_v29, 3 }
 0x2dc   : > { %v7950_v0 = vpop.f32.mrf.mxu2  ;;  %v1702_v31 = vpop.f32.mrf.mxu3 }
 0x2dd   : > { %9201 = vst [vmem:[#allocation69_spill] sm:$0xff] %v7950_v0  ;;  %v7954_v39 = vadd.f32 %v1702_v31, %v1156_v54  ;;  %v1159_v26 = vpop.f32.mrf.mxu1  ;;  %v2598_v31 = vsel %vm2581_vm3, %v2595_v62, %v2597_v17 }
 0x2df   : > { %9203 = vst [vmem:[#allocation153_spill] sm:$0xff] %v7954_v39  ;;  %v7967_v39 = vpop.f32.mrf.mxu0 }
 0x2e0   : > { %5260 = vmatmul.msk.f32.gmra.mxu1 %vm642_vm1, %v9204_v43  ;;  %9207 = vst [vmem:[#allocation155_spill] sm:$0xff] %v7967_v39  ;;  %v5746_v43 = vld [vmem:[%s6049_s11 + $0x48] sm:$0xff] }
 0x2e1   : > { %5344 = vmatmul.msk.f32.gmra.mxu2 %vm642_vm1, %v2596_v6  ;;  %5408 = vmatmul.msk.f32.gmra.mxu3 %vm642_vm1, %v2596_v6  ;;  %v2599_v6 = vrot.slane %v5746_v43, 3 }
 0x2e3   : > { %v2600_v62 = vsel %vm2581_vm3, %v2597_v17, %v2599_v6 }
 0x2e4   : > { %v7962_v16 = vpop.f32.mrf.mxu2  ;;  %v1705_v0 = vpop.f32.mrf.mxu3 }
 0x2e5   : > { %9205 = vst [vmem:[#allocation72_spill] sm:$0xff] %v7962_v16  ;;  %v7964_v52 = vadd.f32 %v1705_v0, %v1159_v26  ;;  %v1162_v54 = vpop.f32.mrf.mxu1 }
 0x2e7   : > { %9206 = vst [vmem:[#allocation154_spill] sm:$0xff] %v7964_v52  ;;  %v9211_v52 = vld [vmem:[#allocation78_spill] sm:$0xff]  ;;  %v7981_v39 = vpop.f32.mrf.mxu0 }
 0x2e8   : > { %5261 = vmatmul.msk.f32.gmra.mxu1 %vm642_vm1, %v9208_v45  ;;  %9212 = vst [vmem:[#allocation78_spill] sm:$0xff] %v7981_v39  ;;  %v9219_v39 = vld [vmem:[#allocation84_spill] sm:$0xff] }
 0x2e9   : > { %5345 = vmatmul.msk.f32.gmra.mxu2 %vm642_vm1, %v2598_v31  ;;  %5409 = vmatmul.msk.f32.gmra.mxu3 %vm642_vm1, %v2598_v31  ;;  %v5747_v31 = vld [vmem:[%s6049_s11 + $0x50] sm:$0xff] }
 0x2ea   : > { %v2601_v45 = vrot.slane %v5747_v31, 3 }
 0x2ec   : > { %v7974_v29 = vpop.f32.mrf.mxu2  ;;  %v1708_v16 = vpop.f32.mrf.mxu3  ;;  %v2602_v17 = vsel %vm2581_vm3, %v2599_v6, %v2601_v45 }
 0x2ed   : > { %9209 = vst [vmem:[#allocation75_spill] sm:$0xff] %v7974_v29  ;;  %v7976_v0 = vadd.f32 %v1708_v16, %v1162_v54  ;;  %v1165_v26 = vpop.f32.mrf.mxu1 }
 0x2ef   : > { %9210 = vst [vmem:[#allocation156_spill] sm:$0xff] %v7976_v0  ;;  %v9215_v0 = vld [vmem:[#allocation81_spill] sm:$0xff] }
 0x2f0   : > { %5262 = vmatmul.msk.f32.gmra.mxu1 %vm642_vm1, %v9211_v52  ;;  %v3577_v52 = vld [vmem:[%s8839_s4] sm:$0xff] }
 0x2f1   : > { %5346 = vmatmul.msk.f32.gmra.mxu2 %vm642_vm1, %v2600_v62  ;;  %5410 = vmatmul.msk.f32.gmra.mxu3 %vm642_vm1, %v2600_v62  ;;  %v5748_v62 = vld [vmem:[%s6049_s11 + $0x58] sm:$0xff] }
 0x2f2   : > { %v2603_v31 = vrot.slane %v5748_v62, 3  ;;  %3608 = vmatpush.msra.mxu0 %v3577_v52 }
 0x2f4   : > { %v7986_v43 = vpop.f32.mrf.mxu2  ;;  %v1711_v29 = vpop.f32.mrf.mxu3 }
 0x2f5   : > { %9213 = vst [vmem:[#allocation157_spill] sm:$0xff] %v7986_v43  ;;  %v7988_v16 = vadd.f32 %v1711_v29, %v1165_v26  ;;  %v1168_v54 = vpop.f32.mrf.mxu1  ;;  %v7999_v29 = vpop.f32.mrf.mxu0  ;;  %v2604_v43 = vsel %vm2581_vm3, %v2601_v45, %v2603_v31 }
 0x2f6   : > { %9216 = vst [vmem:[#allocation81_spill] sm:$0xff] %v7999_v29 }
 0x2f7   : > { %9214 = vst [vmem:[#allocation158_spill] sm:$0xff] %v7988_v16 }
 0x2f8   : > { %5263 = vmatmul.msk.f32.gmra.mxu1 %vm642_vm1, %v9215_v0 }
 0x2f9   : > { %5347 = vmatmul.msk.f32.gmra.mxu2 %vm642_vm1, %v2602_v17  ;;  %5411 = vmatmul.msk.f32.gmra.mxu3 %vm642_vm1, %v2602_v17  ;;  %v5749_v17 = vld [vmem:[%s6049_s11 + $0x60] sm:$0xff] }
 0x2fa   : > { %v2605_v52 = vrot.slane %v5749_v17, 3 }
 0x2fc   : > { %v8001_v26 = vpop.f32.mrf.mxu2  ;;  %v1714_v6 = vpop.f32.mrf.mxu3  ;;  %v2606_v45 = vsel %vm2581_vm3, %v2603_v31, %v2605_v52  ;;  %v9227_v31 = vld [vmem:[#allocation90_spill] sm:$0xff] }
 0x2fd   : > { %9217 = vst [vmem:[#allocation159_spill] sm:$0xff] %v8001_v26  ;;  %v8003_v16 = vadd.f32 %v1714_v6, %v1168_v54  ;;  %v1171_v0 = vpop.f32.mrf.mxu1  ;;  %v8013_v26 = vpop.f32.mrf.mxu0 }
 0x2fe   : > { %9221 = vst [vmem:[#allocation161_spill] sm:$0xff] %v8013_v26 }
 0x2ff   : > { %9218 = vst [vmem:[#allocation160_spill] sm:$0xff] %v8003_v16  ;;  %v9223_v16 = vld [vmem:[#allocation87_spill] sm:$0xff] }
 0x300   : > { %5264 = vmatmul.msk.f32.gmra.mxu1 %vm642_vm1, %v9219_v39  ;;  %v5750_v39 = vld [vmem:[%s6049_s11 + $0x68] sm:$0xff] }
 0x301   : > { %5348 = vmatmul.msk.f32.gmra.mxu2 %vm642_vm1, %v2604_v43  ;;  %5412 = vmatmul.msk.f32.gmra.mxu3 %vm642_vm1, %v2604_v43  ;;  %v2607_v43 = vrot.slane %v5750_v39, 3 }
 0x304   : > { %v8011_v62 = vpop.f32.mrf.mxu2  ;;  %v1717_v29 = vpop.f32.mrf.mxu3 }
 0x305   : > { %9220 = vst [vmem:[#allocation84_spill] sm:$0xff] %v8011_v62  ;;  %v8015_v54 = vadd.f32 %v1717_v29, %v1171_v0  ;;  %v1174_v6 = vpop.f32.mrf.mxu1  ;;  %v2608_v0 = vsel %vm2581_vm3, %v2605_v52, %v2607_v43 }
 0x307   : > { %9222 = vst [vmem:[#allocation162_spill] sm:$0xff] %v8015_v54  ;;  %v8028_v54 = vpop.f32.mrf.mxu0 }
 0x308   : > { %5265 = vmatmul.msk.f32.gmra.mxu1 %vm642_vm1, %v9223_v16  ;;  %9226 = vst [vmem:[#allocation164_spill] sm:$0xff] %v8028_v54  ;;  %v5751_v16 = vld [vmem:[%s6049_s11 + $0x70] sm:$0xff] }
 0x309   : > { %5349 = vmatmul.msk.f32.gmra.mxu2 %vm642_vm1, %v2606_v45  ;;  %5413 = vmatmul.msk.f32.gmra.mxu3 %vm642_vm1, %v2606_v45  ;;  %v2609_v45 = vrot.slane %v5751_v16, 3 }
 0x30b   : > { %v2610_v52 = vsel %vm2581_vm3, %v2607_v43, %v2609_v45 }
 0x30c   : > { %v8023_v17 = vpop.f32.mrf.mxu2  ;;  %v1720_v62 = vpop.f32.mrf.mxu3 }
 0x30d   : > { %9224 = vst [vmem:[#allocation87_spill] sm:$0xff] %v8023_v17  ;;  %v8025_v53 = vadd.f32 %v1720_v62, %v1174_v6  ;;  %v1177_v29 = vpop.f32.mrf.mxu1 }
 0x30f   : > { %9225 = vst [vmem:[#allocation163_spill] sm:$0xff] %v8025_v53  ;;  %v9230_v53 = vld [vmem:[#allocation93_spill] sm:$0xff]  ;;  %v8042_v54 = vpop.f32.mrf.mxu0 }
 0x310   : > { %5266 = vmatmul.msk.f32.gmra.mxu1 %vm642_vm1, %v9227_v31  ;;  %9231 = vst [vmem:[#allocation93_spill] sm:$0xff] %v8042_v54 }
 0x311   : > { %5350 = vmatmul.msk.f32.gmra.mxu2 %vm642_vm1, %v2608_v0  ;;  %5414 = vmatmul.msk.f32.gmra.mxu3 %vm642_vm1, %v2608_v0  ;;  %v5752_v0 = vld [vmem:[%s6049_s11 + $0x78] sm:$0xff] }
 0x312   : > { %v2611_v31 = vrot.slane %v5752_v0, 3 }
 0x314   : > { %v8035_v39 = vpop.f32.mrf.mxu2  ;;  %v1723_v17 = vpop.f32.mrf.mxu3  ;;  %v2612_v43 = vsel %vm2581_vm3, %v2609_v45, %v2611_v31 }
 0x315   : > { %9228 = vst [vmem:[#allocation90_spill] sm:$0xff] %v8035_v39  ;;  %v8037_v62 = vadd.f32 %v1723_v17, %v1177_v29  ;;  %v1180_v6 = vpop.f32.mrf.mxu1 }
 0x317   : > { %9229 = vst [vmem:[#allocation165_spill] sm:$0xff] %v8037_v62  ;;  %v9234_v62 = vld [vmem:[#allocation96_spill] sm:$0xff]  ;;  %v8057_v54 = vpop.f32.mrf.mxu0 }
 0x318   : > { %5267 = vmatmul.msk.f32.gmra.mxu1 %vm642_vm1, %v9230_v53  ;;  %v5753_v53 = vld [vmem:[%s6049_s11 + $0x80] sm:$0xff]  ;;  %9235 = vst [vmem:[#allocation96_spill] sm:$0xff] %v8057_v54 }
 0x319   : > { %5351 = vmatmul.msk.f32.gmra.mxu2 %vm642_vm1, %v2610_v52  ;;  %5415 = vmatmul.msk.f32.gmra.mxu3 %vm642_vm1, %v2610_v52  ;;  %v2613_v52 = vrot.slane %v5753_v53, 3 }
 0x31b   : > { %v2614_v45 = vsel %vm2581_vm3, %v2611_v31, %v2613_v52  ;;  %v5755_v31 = vld [vmem:[%s6049_s11 + $0x90] sm:$0xff] }
 0x31c   : > { %v8047_v16 = vpop.f32.mrf.mxu2  ;;  %v1726_v39 = vpop.f32.mrf.mxu3 }
 0x31d   : > { %9232 = vst [vmem:[#allocation166_spill] sm:$0xff] %v8047_v16  ;;  %v8049_v17 = vadd.f32 %v1726_v39, %v1180_v6  ;;  %v1183_v29 = vpop.f32.mrf.mxu1 }
 0x31f   : > { %9233 = vst [vmem:[#allocation167_spill] sm:$0xff] %v8049_v17  ;;  %v9238_v17 = vld [vmem:[#allocation100_spill] sm:$0xff] }
 0x320   : > { %5268 = vmatmul.msk.f32.gmra.mxu1 %vm642_vm1, %v9234_v62  ;;  %v5754_v62 = vld [vmem:[%s6049_s11 + $0x88] sm:$0xff] }
 0x321   : > { %5352 = vmatmul.msk.f32.gmra.mxu2 %vm642_vm1, %v2612_v43  ;;  %5416 = vmatmul.msk.f32.gmra.mxu3 %vm642_vm1, %v2612_v43  ;;  %v2615_v43 = vrot.slane %v5754_v62, 3 }
 0x324   : > { %v8059_v0 = vpop.f32.mrf.mxu2  ;;  %v1729_v16 = vpop.f32.mrf.mxu3 }
 0x325   : > { %9236 = vst [vmem:[#allocation168_spill] sm:$0xff] %v8059_v0  ;;  %v8061_v39 = vadd.f32 %v1729_v16, %v1183_v29  ;;  %v1186_v6 = vpop.f32.mrf.mxu1  ;;  %v8071_v0 = vpop.f32.mrf.mxu0 }
 0x326   : > { %9240 = vst [vmem:[#allocation170_spill] sm:$0xff] %v8071_v0 }
 0x327   : > { %9237 = vst [vmem:[#allocation169_spill] sm:$0xff] %v8061_v39  ;;  %v2616_v39 = vsel %vm2581_vm3, %v2613_v52, %v2615_v43 }
 0x328   : > { %5269 = vmatmul.msk.f32.gmra.mxu1 %vm642_vm1, %v9238_v17  ;;  %v2617_v17 = vrot.slane %v5755_v31, 3 }
 0x329   : > { %5353 = vmatmul.msk.f32.gmra.mxu2 %vm642_vm1, %v2614_v45  ;;  %5417 = vmatmul.msk.f32.gmra.mxu3 %vm642_vm1, %v2614_v45 }
 0x32a   : > { %v2618_v52 = vsel %vm2581_vm3, %v2615_v43, %v2617_v17 }
 0x32c   : > { %v8069_v53 = vpop.f32.mrf.mxu2  ;;  %v1732_v54 = vpop.f32.mrf.mxu3 }
 0x32d   : > { %9239 = vst [vmem:[#allocation100_spill] sm:$0xff] %v8069_v53  ;;  %v8073_v16 = vadd.f32 %v1732_v54, %v1186_v6  ;;  %v2240_v29 = vpop.f32.mrf.mxu1  ;;  %v8084_v0 = vpop.f32.mrf.mxu0 }
 0x32e   : > { %v2433_v45 = vadd.f32 %v2240_v29, %v7066_v25  ;;  %v5756_v25 = vld [vmem:[%s6049_s11 + $0x98] sm:$0xff] }
 0x32f   : > { %9241 = vst [vmem:[#allocation171_spill] sm:$0xff] %v8073_v16  ;;  %v2619_v29 = vrot.slane %v5756_v25, 3 }
 0x330   : > { %5270 = vmatmul.msk.f32.gmra.mxu1 %vm642_vm1, %v7061_v27 }
 0x331   : > { %5354 = vmatmul.msk.f32.gmra.mxu2 %vm642_vm1, %v2616_v39  ;;  %5418 = vmatmul.msk.f32.gmra.mxu3 %vm642_vm1, %v2616_v39 }
 0x334   : > { %v2856_v62 = vpop.f32.mrf.mxu2  ;;  %v3065_v53 = vpop.f32.mrf.mxu3 }
 0x335   : > { %v3257_v54 = vadd.f32 %v2856_v62, %v7069_v20  ;;  %v3258_v6 = vadd.f32 %v3065_v53, %v2433_v45  ;;  %v2243_v16 = vpop.f32.mrf.mxu1 }
 0x336   : > { %v2435_v20 = vadd.f32 %v2243_v16, %v7084_v32  ;;  %v5757_v16 = vld [vmem:[%s6049_s11 + $0xa0] sm:$0xff] }
 0x337   : > { %v3385_v27 = vmul.f32 %v3257_v54, %v3257_v54  ;;  %v3449_v26 = vmul.f32 %v3258_v6, %v3258_v6  ;;  %v2620_v54 = vsel %vm2581_vm3, %v2617_v17, %v2619_v29  ;;  %v8096_v6 = vpop.f32.mrf.mxu0 }
 0x338   : > { %5271 = vmatmul.msk.f32.gmra.mxu1 %vm642_vm1, %v7076_v60 }
 0x339   : > { %v3513_v39 = vadd.f32 %v3449_v26, %v3385_v27  ;;  %5355 = vmatmul.msk.f32.gmra.mxu2 %vm642_vm1, %v2618_v52  ;;  %5419 = vmatmul.msk.f32.gmra.mxu3 %vm642_vm1, %v2618_v52  ;;  %v2621_v52 = vrot.slane %v5757_v16, 3 }
 0x33b   : > { %3609 = vmatmul.f32.vlgmr.msra.gmra.mxu0 %v3513_v39 }
 0x33c   : > { %v2859_v53 = vpop.f32.mrf.mxu2  ;;  %v3068_v43 = vpop.f32.mrf.mxu3 }
 0x33d   : > { %v3259_v31 = vadd.f32 %v2859_v53, %v7087_v4  ;;  %v3260_v45 = vadd.f32 %v3068_v43, %v2435_v20  ;;  %v2246_v62 = vpop.f32.mrf.mxu1 }
 0x33e   : > { %v2437_v4 = vadd.f32 %v2246_v62, %v7099_v9  ;;  %v5758_v9 = vld [vmem:[%s6049_s11 + $0xa8] sm:$0xff] }
 0x33f   : > { %v3386_v60 = vmul.f32 %v3259_v31, %v3259_v31  ;;  %v3450_v26 = vmul.f32 %v3260_v45, %v3260_v45  ;;  %v2623_v45 = vrot.slane %v5758_v9, 3  ;;  %v8109_v62 = vpop.f32.mrf.mxu0  ;;  %v5760_v9 = vld [vmem:[%s6049_s11 + $0xb8] sm:$0xff] }
 0x340   : > { %5272 = vmatmul.msk.f32.gmra.mxu1 %vm642_vm1, %v7094_v41  ;;  %v2622_v41 = vsel %vm2581_vm3, %v2619_v29, %v2621_v52 }
 0x341   : > { %5356 = vmatmul.msk.f32.gmra.mxu2 %vm642_vm1, %v2620_v54  ;;  %5420 = vmatmul.msk.f32.gmra.mxu3 %vm642_vm1, %v2620_v54  ;;  %v3514_v32 = vadd.f32 %v3450_v26, %v3386_v60 }
 0x343   : > { %3612 = vmatmul.f32.gmra.mxu0 %v3514_v32 }
 0x344   : > { %v2862_v27 = vpop.f32.mrf.mxu2  ;;  %v3071_v17 = vpop.f32.mrf.mxu3 }
 0x345   : > { %v3261_v39 = vadd.f32 %v2862_v27, %v7102_v18  ;;  %v3262_v25 = vadd.f32 %v3071_v17, %v2437_v4  ;;  %v2249_v20 = vpop.f32.mrf.mxu1 }
 0x346   : > { %v2439_v18 = vadd.f32 %v2249_v20, %v7115_v63  ;;  %v5759_v63 = vld [vmem:[%s6049_s11 + $0xb0] sm:$0xff] }
 0x347   : > { %v3387_v53 = vmul.f32 %v3261_v39, %v3261_v39  ;;  %v3451_v43 = vmul.f32 %v3262_v25, %v3262_v25  ;;  %v2625_v17 = vrot.slane %v5759_v63, 3  ;;  %v8120_v20 = vpop.f32.mrf.mxu0 }
 0x348   : > { %5273 = vmatmul.msk.f32.gmra.mxu1 %vm642_vm1, %v7110_v42  ;;  %v2624_v42 = vsel %vm2581_vm3, %v2621_v52, %v2623_v45 }
 0x349   : > { %5357 = vmatmul.msk.f32.gmra.mxu2 %vm642_vm1, %v2622_v41  ;;  %5421 = vmatmul.msk.f32.gmra.mxu3 %vm642_vm1, %v2622_v41  ;;  %v3515_v31 = vadd.f32 %v3451_v43, %v3387_v53 }
 0x34b   : > { %3615 = vmatmul.f32.gmra.mxu0 %v3515_v31 }
 0x34c   : > { %v2865_v54 = vpop.f32.mrf.mxu2  ;;  %v3074_v29 = vpop.f32.mrf.mxu3 }
 0x34d   : > { %v3263_v60 = vadd.f32 %v2865_v54, %v7118_v49  ;;  %v3264_v26 = vadd.f32 %v3074_v29, %v2439_v18  ;;  %v2252_v32 = vpop.f32.mrf.mxu1  ;;  %v2627_v18 = vrot.slane %v5760_v9, 3  ;;  %v9242_v9 = vld [vmem:[#allocation103_spill] sm:$0xff] }
 0x34e   : > { %v2441_v39 = vadd.f32 %v2252_v32, %v7132_v47 }
 0x34f   : > { %v3388_v16 = vmul.f32 %v3263_v60, %v3263_v60  ;;  %v3452_v4 = vmul.f32 %v3264_v26, %v3264_v26  ;;  %v2628_v32 = vsel %vm2581_vm3, %v2625_v17, %v2627_v18 }
 0x350   : > { %5274 = vmatmul.msk.f32.gmra.mxu1 %vm642_vm1, %v7127_v51  ;;  %v2626_v51 = vsel %vm2581_vm3, %v2623_v45, %v2625_v17 }
 0x351   : > { %5358 = vmatmul.msk.f32.gmra.mxu2 %vm642_vm1, %v2624_v42  ;;  %5422 = vmatmul.msk.f32.gmra.mxu3 %vm642_vm1, %v2624_v42  ;;  %v3516_v27 = vadd.f32 %v3452_v4, %v3388_v16  ;;  %v5761_v4 = vld [vmem:[%s6049_s11 + $0xc0] sm:$0xff] }
 0x353   : > { %3618 = vmatmul.f32.gmra.mxu0 %v3516_v27  ;;  %v2629_v27 = vrot.slane %v5761_v4, 3  ;;  %v9243_v4 = vld [vmem:[#allocation29_spill] sm:$0xff] }
 0x354   : > { %v2868_v49 = vpop.f32.mrf.mxu2  ;;  %v3077_v25 = vpop.f32.mrf.mxu3 }
 0x355   : > { %v3265_v52 = vadd.f32 %v2868_v49, %v7135_v46  ;;  %v3266_v41 = vadd.f32 %v3077_v25, %v2441_v39  ;;  %v2255_v53 = vpop.f32.mrf.mxu1 }
 0x356   : > { %v2443_v54 = vadd.f32 %v2255_v53, %v7152_v50 }
 0x357   : > { %v3389_v43 = vmul.f32 %v3265_v52, %v3265_v52  ;;  %v3453_v31 = vmul.f32 %v3266_v41, %v3266_v41  ;;  %v2630_v52 = vsel %vm2581_vm3, %v2627_v18, %v2629_v27 }
 0x358   : > { %5275 = vmatmul.msk.f32.gmra.mxu1 %vm642_vm1, %v7144_v61  ;;  %v8132_v61 = vpop.f32.mrf.mxu0 }
 0x359   : > { %5359 = vmatmul.msk.f32.gmra.mxu2 %vm642_vm1, %v2626_v51  ;;  %5423 = vmatmul.msk.f32.gmra.mxu3 %vm642_vm1, %v2626_v51  ;;  %v3517_v47 = vadd.f32 %v3453_v31, %v3389_v43  ;;  %v5762_v51 = vld [vmem:[%s6049_s11 + $0xc8] sm:$0xff] }
 0x35a   : > { %v2631_v43 = vrot.slane %v5762_v51, 3 }
 0x35b   : > { %3621 = vmatmul.f32.gmra.mxu0 %v3517_v47 }
 0x35c   : > { %v2871_v46 = vpop.f32.mrf.mxu2  ;;  %v3080_v29 = vpop.f32.mrf.mxu3 }
 0x35d   : > { %v3267_v45 = vadd.f32 %v2871_v46, %v7155_v7  ;;  %v3268_v60 = vadd.f32 %v3080_v29, %v2443_v54  ;;  %v2258_v26 = vpop.f32.mrf.mxu1 }
 0x35e   : > { %v2445_v7 = vadd.f32 %v2258_v26, %v7178_v21 }
 0x35f   : > { %v3390_v42 = vmul.f32 %v3267_v45, %v3267_v45  ;;  %v3454_v16 = vmul.f32 %v3268_v60, %v3268_v60 }
 0x360   : > { %5276 = vmatmul.msk.f32.gmra.mxu1 %vm642_vm1, %v7170_v36  ;;  %v8144_v53 = vpop.f32.mrf.mxu0 }
 0x361   : > { %5360 = vmatmul.msk.f32.gmra.mxu2 %vm642_vm1, %v2628_v32  ;;  %5424 = vmatmul.msk.f32.gmra.mxu3 %vm642_vm1, %v2628_v32  ;;  %v3518_v50 = vadd.f32 %v3454_v16, %v3390_v42 }
 0x363   : > { %3624 = vmatmul.f32.gmra.mxu0 %v3518_v50 }
 0x364   : > { %v2874_v63 = vpop.f32.mrf.mxu2  ;;  %v3083_v17 = vpop.f32.mrf.mxu3 }
 0x365   : > { %v3269_v39 = vadd.f32 %v2874_v63, %v7181_v22  ;;  %v3270_v49 = vadd.f32 %v3083_v17, %v2445_v7  ;;  %v2261_v25 = vpop.f32.mrf.mxu1 }
 0x366   : > { %v2447_v22 = vadd.f32 %v2261_v25, %v7195_v1  ;;  %v5763_v1 = vld [vmem:[%s6049_s11 + $0xd0] sm:$0xff] }
 0x367   : > { %v3391_v36 = vmul.f32 %v3269_v39, %v3269_v39  ;;  %v3455_v41 = vmul.f32 %v3270_v49, %v3270_v49  ;;  %v2633_v26 = vrot.slane %v5763_v1, 3  ;;  %v9244_v49 = vld [vmem:[#allocation30_spill] sm:$0xff] }
 0x368   : > { %5277 = vmatmul.msk.f32.gmra.mxu1 %vm642_vm1, %v7190_v24  ;;  %v2632_v24 = vsel %vm2581_vm3, %v2629_v27, %v2631_v43  ;;  %v8157_v32 = vpop.f32.mrf.mxu0 }
 0x369   : > { %5361 = vmatmul.msk.f32.gmra.mxu2 %vm642_vm1, %v2630_v52  ;;  %5425 = vmatmul.msk.f32.gmra.mxu3 %vm642_vm1, %v2630_v52  ;;  %v3519_v21 = vadd.f32 %v3455_v41, %v3391_v36  ;;  %v9245_v36 = vld [vmem:[#allocation104_spill] sm:$0xff] }
 0x36b   : > { %3627 = vmatmul.f32.gmra.mxu0 %v3519_v21 }
 0x36c   : > { %v2877_v31 = vpop.f32.mrf.mxu2  ;;  %v3086_v47 = vpop.f32.mrf.mxu3 }
 0x36d   : > { %v3271_v18 = vadd.f32 %v2877_v31, %v9242_v9  ;;  %v3272_v54 = vadd.f32 %v3086_v47, %v2447_v22  ;;  %v2264_v46 = vpop.f32.mrf.mxu1 }
 0x36e   : > { %v2449_v42 = vadd.f32 %v2264_v46, %v7212_v14  ;;  %v5764_v14 = vld [vmem:[%s6049_s11 + $0xd8] sm:$0xff] }
 0x36f   : > { %v3392_v29 = vmul.f32 %v3271_v18, %v3271_v18  ;;  %v3456_v45 = vmul.f32 %v3272_v54, %v3272_v54  ;;  %v2635_v52 = vrot.slane %v5764_v14, 3 }
 0x370   : > { %5278 = vmatmul.msk.f32.gmra.mxu1 %vm642_vm1, %v7207_v23  ;;  %v2634_v23 = vsel %vm2581_vm3, %v2631_v43, %v2633_v26  ;;  %v8168_v22 = vpop.f32.mrf.mxu0  ;;  %v9246_v43 = vld [vmem:[#allocation33_spill] sm:$0xff] }
 0x371   : > { %5362 = vmatmul.msk.f32.gmra.mxu2 %vm642_vm1, %v2632_v24  ;;  %5426 = vmatmul.msk.f32.gmra.mxu3 %vm642_vm1, %v2632_v24  ;;  %v3520_v60 = vadd.f32 %v3456_v45, %v3392_v29  ;;  %v2636_v18 = vsel %vm2581_vm3, %v2633_v26, %v2635_v52  ;;  %v5765_v29 = vld [vmem:[%s6049_s11 + $0xe0] sm:$0xff] }
 0x372   : > { %v2637_v45 = vrot.slane %v5765_v29, 3 }
 0x373   : > { %3630 = vmatmul.f32.gmra.mxu0 %v3520_v60  ;;  %v9247_v60 = vld [vmem:[#allocation34_spill] sm:$0xff] }
 0x374   : > { %v2880_v16 = vpop.f32.mrf.mxu2  ;;  %v3089_v50 = vpop.f32.mrf.mxu3 }
 0x375   : > { %v3273_v27 = vadd.f32 %v2880_v16, %v9243_v4  ;;  %v3274_v7 = vadd.f32 %v3089_v50, %v2449_v42  ;;  %v2267_v63 = vpop.f32.mrf.mxu1  ;;  %v9248_v50 = vld [vmem:[#allocation37_spill] sm:$0xff] }
 0x376   : > { %v2451_v41 = vadd.f32 %v2267_v63, %v9245_v36 }
 0x377   : > { %v3393_v17 = vmul.f32 %v3273_v27, %v3273_v27  ;;  %v3457_v39 = vmul.f32 %v3274_v7, %v3274_v7  ;;  %v2638_v7 = vsel %vm2581_vm3, %v2635_v52, %v2637_v45 }
 0x378   : > { %5279 = vmatmul.msk.f32.gmra.mxu1 %vm642_vm1, %v9244_v49 }
 0x379   : > { %5363 = vmatmul.msk.f32.gmra.mxu2 %vm642_vm1, %v2634_v23  ;;  %5427 = vmatmul.msk.f32.gmra.mxu3 %vm642_vm1, %v2634_v23  ;;  %v3521_v25 = vadd.f32 %v3457_v39, %v3393_v17  ;;  %v5766_v39 = vld [vmem:[%s6049_s11 + $0xe8] sm:$0xff] }
 0x37a   : > { %v2639_v49 = vrot.slane %v5766_v39, 3 }
 0x37b   : > { %3633 = vmatmul.f32.gmra.mxu0 %v3521_v25  ;;  %v9249_v25 = vld [vmem:[#allocation38_spill] sm:$0xff] }
 0x37c   : > { %v2883_v21 = vpop.f32.mrf.mxu2  ;;  %v3092_v51 = vpop.f32.mrf.mxu3 }
 0x37d   : > { %v3275_v31 = vadd.f32 %v2883_v21, %v9246_v43  ;;  %v3276_v47 = vadd.f32 %v3092_v51, %v2451_v41  ;;  %v2270_v9 = vpop.f32.mrf.mxu1  ;;  %v9250_v41 = vld [vmem:[#allocation41_spill] sm:$0xff] }
 0x37e   : > { %v2453_v1 = vadd.f32 %v2270_v9, %v9247_v60 }
 0x37f   : > { %v3394_v54 = vmul.f32 %v3275_v31, %v3275_v31  ;;  %v3458_v46 = vmul.f32 %v3276_v47, %v3276_v47  ;;  %v2640_v31 = vsel %vm2581_vm3, %v2637_v45, %v2639_v49 }
 0x380   : > { %5280 = vmatmul.msk.f32.gmra.mxu1 %vm642_vm1, %v7244_v57  ;;  %v8180_v57 = vpop.f32.mrf.mxu0 }
 0x381   : > { %5364 = vmatmul.msk.f32.gmra.mxu2 %vm642_vm1, %v2636_v18  ;;  %5428 = vmatmul.msk.f32.gmra.mxu3 %vm642_vm1, %v2636_v18  ;;  %v3522_v24 = vadd.f32 %v3458_v46, %v3394_v54  ;;  %v5767_v54 = vld [vmem:[%s6049_s11 + $0xf0] sm:$0xff] }
 0x382   : > { %v2641_v46 = vrot.slane %v5767_v54, 3 }
 0x383   : > { %3636 = vmatmul.f32.gmra.mxu0 %v3522_v24 }
 0x384   : > { %v2886_v42 = vpop.f32.mrf.mxu2  ;;  %v3095_v16 = vpop.f32.mrf.mxu3 }
 0x385   : > { %v3277_v26 = vadd.f32 %v2886_v42, %v9248_v50  ;;  %v3278_v4 = vadd.f32 %v3095_v16, %v2453_v1  ;;  %v2273_v27 = vpop.f32.mrf.mxu1 }
 0x386   : > { %v2455_v14 = vadd.f32 %v2273_v27, %v9249_v25 }
 0x387   : > { %v3395_v63 = vmul.f32 %v3277_v26, %v3277_v26  ;;  %v3459_v23 = vmul.f32 %v3278_v4, %v3278_v4 }
 0x388   : > { %5281 = vmatmul.msk.f32.gmra.mxu1 %vm642_vm1, %v7261_v48  ;;  %v8192_v9 = vpop.f32.mrf.mxu0 }
 0x389   : > { %5365 = vmatmul.msk.f32.gmra.mxu2 %vm642_vm1, %v2638_v7  ;;  %5429 = vmatmul.msk.f32.gmra.mxu3 %vm642_vm1, %v2638_v7  ;;  %v3523_v17 = vadd.f32 %v3459_v23, %v3395_v63 }
 0x38b   : > { %3639 = vmatmul.f32.gmra.mxu0 %v3523_v17  ;;  %v9252_v17 = vld [vmem:[#allocation45_spill] sm:$0xff] }
 0x38c   : > { %v2889_v36 = vpop.f32.mrf.mxu2  ;;  %v3098_v52 = vpop.f32.mrf.mxu3 }
 0x38d   : > { %v3279_v21 = vadd.f32 %v2889_v36, %v9250_v41  ;;  %v3280_v51 = vadd.f32 %v3098_v52, %v2455_v14  ;;  %v2276_v43 = vpop.f32.mrf.mxu1  ;;  %v5769_v41 = vld [vmem:[%s6049_s11 + $0x100] sm:$0xff] }
 0x38e   : > { %v2457_v24 = vadd.f32 %v2276_v43, %v7289_v8  ;;  %v5768_v8 = vld [vmem:[%s6049_s11 + $0xf8] sm:$0xff] }
 0x38f   : > { %v3396_v48 = vmul.f32 %v3279_v21, %v3279_v21  ;;  %v3460_v47 = vmul.f32 %v3280_v51, %v3280_v51  ;;  %v2643_v4 = vrot.slane %v5768_v8, 3  ;;  %v2645_v21 = vrot.slane %v5769_v41, 3 }
 0x390   : > { %5282 = vmatmul.msk.f32.gmra.mxu1 %vm642_vm1, %v7278_v40  ;;  %v2642_v40 = vsel %vm2581_vm3, %v2639_v49, %v2641_v46  ;;  %v8205_v27 = vpop.f32.mrf.mxu0 }
 0x391   : > { %5366 = vmatmul.msk.f32.gmra.mxu2 %vm642_vm1, %v2640_v31  ;;  %5430 = vmatmul.msk.f32.gmra.mxu3 %vm642_vm1, %v2640_v31  ;;  %v3524_v18 = vadd.f32 %v3460_v47, %v3396_v48  ;;  %v9253_v48 = vld [vmem:[#allocation46_spill] sm:$0xff] }
 0x393   : > { %3642 = vmatmul.f32.gmra.mxu0 %v3524_v18 }
 0x394   : > { %v2892_v29 = vpop.f32.mrf.mxu2  ;;  %v3101_v45 = vpop.f32.mrf.mxu3 }
 0x395   : > { %v3281_v60 = vadd.f32 %v2892_v29, %v7295_v44  ;;  %v3282_v1 = vadd.f32 %v3101_v45, %v2457_v24  ;;  %v2279_v42 = vpop.f32.mrf.mxu1  ;;  %v9251_v44 = vld [vmem:[#allocation42_spill] sm:$0xff]  ;;  %v9254_v45 = vld [vmem:[#allocation49_spill] sm:$0xff] }
 0x396   : > { %v2459_v7 = vadd.f32 %v2279_v42, %v9251_v44 }
 0x397   : > { %v3397_v16 = vmul.f32 %v3281_v60, %v3281_v60  ;;  %v3461_v50 = vmul.f32 %v3282_v1, %v3282_v1  ;;  %v5770_v60 = vld [vmem:[%s6049_s11 + $0x108] sm:$0xff] }
 0x398   : > { %5283 = vmatmul.msk.f32.gmra.mxu1 %vm642_vm1, %v7304_v56  ;;  %v2644_v56 = vsel %vm2581_vm3, %v2641_v46, %v2643_v4  ;;  %v8217_v46 = vpop.f32.mrf.mxu0  ;;  %v2647_v1 = vrot.slane %v5770_v60, 3 }
 0x399   : > { %5367 = vmatmul.msk.f32.gmra.mxu2 %vm642_vm1, %v2642_v40  ;;  %5431 = vmatmul.msk.f32.gmra.mxu3 %vm642_vm1, %v2642_v40  ;;  %v3525_v26 = vadd.f32 %v3461_v50, %v3397_v16  ;;  %v9255_v50 = vld [vmem:[#allocation105_spill] sm:$0xff] }
 0x39a   : > { %v2648_v44 = vsel %vm2581_vm3, %v2645_v21, %v2647_v1 }
 0x39b   : > { %3645 = vmatmul.f32.gmra.mxu0 %v3525_v26 }
 0x39c   : > { %v2895_v63 = vpop.f32.mrf.mxu2  ;;  %v3104_v23 = vpop.f32.mrf.mxu3 }
 0x39d   : > { %v3283_v39 = vadd.f32 %v2895_v63, %v9252_v17  ;;  %v3284_v49 = vadd.f32 %v3104_v23, %v2459_v7  ;;  %v2282_v25 = vpop.f32.mrf.mxu1  ;;  %v9256_v17 = vld [vmem:[#allocation11_spill] sm:$0xff] }
 0x39e   : > { %v2461_v51 = vadd.f32 %v2282_v25, %v7329_v12 }
 0x39f   : > { %v3398_v14 = vmul.f32 %v3283_v39, %v3283_v39  ;;  %v3462_v36 = vmul.f32 %v3284_v49, %v3284_v49  ;;  %v5771_v39 = vld [vmem:[%s6049_s11 + $0x110] sm:$0xff] }
 0x3a0   : > { %5284 = vmatmul.msk.f32.gmra.mxu1 %vm642_vm1, %v7324_v38  ;;  %v2646_v38 = vsel %vm2581_vm3, %v2643_v4, %v2645_v21  ;;  %v8228_v23 = vpop.f32.mrf.mxu0  ;;  %v2649_v49 = vrot.slane %v5771_v39, 3 }
 0x3a1   : > { %5368 = vmatmul.msk.f32.gmra.mxu2 %vm642_vm1, %v2644_v56  ;;  %5432 = vmatmul.msk.f32.gmra.mxu3 %vm642_vm1, %v2644_v56  ;;  %v3526_v52 = vadd.f32 %v3462_v36, %v3398_v14  ;;  %v9257_v36 = vld [vmem:[#allocation106_spill] sm:$0xff] }
 0x3a3   : > { %3648 = vmatmul.f32.gmra.mxu0 %v3526_v52 }
 0x3a4   : > { %v2898_v43 = vpop.f32.mrf.mxu2  ;;  %v3107_v31 = vpop.f32.mrf.mxu3 }
 0x3a5   : > { %v3285_v47 = vadd.f32 %v2898_v43, %v9253_v48  ;;  %v3286_v18 = vadd.f32 %v3107_v31, %v2461_v51  ;;  %v2285_v54 = vpop.f32.mrf.mxu1  ;;  %v2650_v51 = vsel %vm2581_vm3, %v2647_v1, %v2649_v49 }
 0x3a6   : > { %v2463_v42 = vadd.f32 %v2285_v54, %v7346_v59  ;;  %v5772_v54 = vld [vmem:[%s6049_s11 + $0x118] sm:$0xff] }
 0x3a7   : > { %v3399_v24 = vmul.f32 %v3285_v47, %v3285_v47  ;;  %v3463_v29 = vmul.f32 %v3286_v18, %v3286_v18  ;;  %v9258_v47 = vld [vmem:[#allocation13_spill] sm:$0xff] }
 0x3a8   : > { %5285 = vmatmul.msk.f32.gmra.mxu1 %vm642_vm1, %v9254_v45 }
 0x3a9   : > { %5369 = vmatmul.msk.f32.gmra.mxu2 %vm642_vm1, %v2646_v38  ;;  %5433 = vmatmul.msk.f32.gmra.mxu3 %vm642_vm1, %v2646_v38  ;;  %v3527_v12 = vadd.f32 %v3463_v29, %v3399_v24  ;;  %v2651_v38 = vrot.slane %v5772_v54, 3 }
 0x3ab   : > { %3651 = vmatmul.f32.gmra.mxu0 %v3527_v12  ;;  %v9259_v12 = vld [vmem:[#allocation107_spill] sm:$0xff] }
 0x3ac   : > { %v2901_v40 = vpop.f32.mrf.mxu2  ;;  %v3110_v16 = vpop.f32.mrf.mxu3 }
 0x3ad   : > { %v3287_v26 = vadd.f32 %v2901_v40, %v9255_v50  ;;  %v3288_v8 = vadd.f32 %v3110_v16, %v2463_v42  ;;  %v2288_v4 = vpop.f32.mrf.mxu1  ;;  %v2652_v40 = vsel %vm2581_vm3, %v2649_v49, %v2651_v38  ;;  %v4123_v16 = vlaneseq }
 0x3ae   : > { %v2465_v25 = vadd.f32 %v2288_v4, %v7361_v30  ;;  %v9260_v4 = vld [vmem:[#allocation15_spill] sm:$0xff] }
 0x3af   : > { %v3400_v7 = vmul.f32 %v3287_v26, %v3287_v26  ;;  %v3464_v63 = vmul.f32 %v3288_v8, %v3288_v8 }
 0x3b0   : > { %5286 = vmatmul.msk.f32.gmra.mxu1 %vm642_vm1, %v9256_v17  ;;  %v8251_v17 = vshrl.u32 %v4123_v16, 7 }
 0x3b1   : > { %5370 = vmatmul.msk.f32.gmra.mxu2 %vm642_vm1, %v2648_v44  ;;  %5434 = vmatmul.msk.f32.gmra.mxu3 %vm642_vm1, %v2648_v44  ;;  %v3528_v59 = vadd.f32 %v3464_v63, %v3400_v7 }
 0x3b2   : > { %v4126_v16 = vadd.s32 16, %v8251_v17 }
 0x3b3   : > { %3654 = vmatmul.f32.gmra.mxu0 %v3528_v59  ;;  %v5773_v59 = vld [vmem:[%s6049_s11 + $0x120] sm:$0xff] }
 0x3b4   : > { %v2904_v56 = vpop.f32.mrf.mxu2  ;;  %v3113_v14 = vpop.f32.mrf.mxu3  ;;  %v2653_v39 = vrot.slane %v5773_v59, 3 }
 0x3b5   : > { %v3289_v52 = vadd.f32 %v2904_v56, %v9257_v36  ;;  %v3290_v41 = vadd.f32 %v3113_v14, %v2465_v25  ;;  %v2291_v21 = vpop.f32.mrf.mxu1  ;;  %v8255_v25 = vstv %s4253_s7  ;;  %v9261_v36 = vld [vmem:[#allocation108_spill] sm:$0xff] }
 0x3b6   : > { %v2467_v24 = vadd.f32 %v2291_v21, %v7379_v3  ;;  %vm4255_vm4 = vcmp.lt.s32.totalorder %v8251_v17, %v8255_v25  ;;  %vm4257_vm6 = vcmp.lt.s32.totalorder %v4126_v16, %v8255_v25 }
 0x3b7   : > { %v3401_v43 = vmul.f32 %v3289_v52, %v3289_v52  ;;  %v3465_v31 = vmul.f32 %v3290_v41, %v3290_v41 }
 0x3b8   : > { %v3610_v48 = vpop.f32.mrf.mxu0  ;;  %5287 = vmatmul.msk.f32.gmra.mxu1 %vm642_vm1, %v9258_v47  ;;  %v9262_v47 = vld [vmem:[#allocation17_spill] sm:$0xff] }
 0x3b9   : > { %v3611_v18 = vadd.f32 5.9604645e-08, %v3610_v48  ;;  %5371 = vmatmul.msk.f32.gmra.mxu2 %vm642_vm1, %v2650_v51  ;;  %5435 = vmatmul.msk.f32.gmra.mxu3 %vm642_vm1, %v2650_v51  ;;  %v3529_v30 = vadd.f32 %v3465_v31, %v3401_v43  ;;  %v4125_v51 = vadd.s32 8, %v8251_v17  ;;  %v2654_v43 = vsel %vm2581_vm3, %v2651_v38, %v2653_v39 }
 0x3bb   : > { %5572 = vlog2.f32 %v3611_v18  ;;  %3657 = vmatmul.f32.gmra.mxu0 %v3529_v30  ;;  %vm4256_vm5 = vcmp.lt.s32.totalorder %v4125_v51, %v8255_v25 }
 0x3bc   : > { %v2907_v29 = vpop.f32.mrf.mxu2  ;;  %v3116_v45 = vpop.f32.mrf.mxu3 }
 0x3bd   : > { %v3291_v60 = vadd.f32 %v2907_v29, %v9259_v12  ;;  %v3292_v1 = vadd.f32 %v3116_v45, %v2467_v24  ;;  %v2294_v42 = vpop.f32.mrf.mxu1  ;;  %v5774_v45 = vld [vmem:[%s6049_s11 + $0x128] sm:$0xff] }
 0x3be   : > { %v2469_v49 = vadd.f32 %v2294_v42, %v7394_v37  ;;  %v2655_v12 = vrot.slane %v5774_v45, 3 }
 0x3bf   : > { %v3402_v50 = vmul.f32 %v3291_v60, %v3291_v60  ;;  %v3466_v26 = vmul.f32 %v3292_v1, %v3292_v1 }
 0x3c0   : > { %v3613_v8 = vpop.f32.mrf.mxu0  ;;  %5288 = vmatmul.msk.f32.gmra.mxu1 %vm642_vm1, %v9260_v4 }
 0x3c1   : > { %v5573_v3 = vpop.eup %5572  ;;  %v3614_v44 = vadd.f32 5.9604645e-08, %v3613_v8  ;;  %5372 = vmatmul.msk.f32.gmra.mxu2 %vm642_vm1, %v2652_v40  ;;  %5436 = vmatmul.msk.f32.gmra.mxu3 %vm642_vm1, %v2652_v40  ;;  %v3530_v7 = vadd.f32 %v3466_v26, %v3402_v50  ;;  %v9263_v50 = vld [vmem:[#allocation109_spill] sm:$0xff] }
 0x3c2   : > { %v3803_v63 = vmul.f32 0.6931472, %v5573_v3 }
 0x3c3   : > { %5574 = vlog2.f32 %v3614_v44  ;;  %3660 = vmatmul.f32.gmra.mxu0 %v3530_v7  ;;  %v2656_v7 = vsel %vm2581_vm3, %v2653_v39, %v2655_v12 }
 0x3c4   : > { %v2910_v56 = vpop.f32.mrf.mxu2  ;;  %v3119_v14 = vpop.f32.mrf.mxu3  ;;  %3930 = vxpose.xlu0.b32.start [1/16] %v3803_v63, 128  ;;  %v4447_v30 = vsel %vm4255_vm4, %v3803_v63, 0.0 }
 0x3c5   : > { %v3293_v52 = vadd.f32 %v2910_v56, %v9261_v36  ;;  %v3294_v41 = vadd.f32 %v3119_v14, %v2469_v49  ;;  %v2297_v21 = vpop.f32.mrf.mxu1  ;;  %v4580_v60 = vmul.f32 %v4447_v30, %v4447_v30  ;;  %v9264_v56 = vld [vmem:[#allocation19_spill] sm:$0xff] }
 0x3c6   : > { %v2471_v38 = vadd.f32 %v2297_v21, %v7418_v11  ;;  %v5775_v21 = vld [vmem:[%s6049_s11 + $0x130] sm:$0xff] }
 0x3c7   : > { %v3403_v37 = vmul.f32 %v3293_v52, %v3293_v52  ;;  %v3467_v31 = vmul.f32 %v3294_v41, %v3294_v41  ;;  %v2657_v51 = vrot.slane %v5775_v21, 3 }
 0x3c8   : > { %v3616_v48 = vpop.f32.mrf.mxu0  ;;  %5289 = vmatmul.msk.f32.gmra.mxu1 %vm642_vm1, %v9262_v47  ;;  %v9265_v47 = vld [vmem:[#allocation110_spill] sm:$0xff] }
 0x3c9   : > { %v5575_v18 = vpop.eup %5574  ;;  %v3617_v54 = vadd.f32 5.9604645e-08, %v3616_v48  ;;  %5373 = vmatmul.msk.f32.gmra.mxu2 %vm642_vm1, %v2654_v43  ;;  %5437 = vmatmul.msk.f32.gmra.mxu3 %vm642_vm1, %v2654_v43  ;;  %v3531_v24 = vadd.f32 %v3467_v31, %v3403_v37  ;;  %v4127_v48 = vadd.s32 24, %v8251_v17  ;;  %v2658_v45 = vsel %vm2581_vm3, %v2655_v12, %v2657_v51 }
 0x3ca   : > { %v3805_v29 = vmul.f32 0.6931472, %v5575_v18 }
 0x3cb   : > { %5576 = vlog2.f32 %v3617_v54  ;;  %3663 = vmatmul.f32.gmra.mxu0 %v3531_v24  ;;  %vm4258_vm7 = vcmp.lt.s32.totalorder %v4127_v48, %v8255_v25 }
 0x3cc   : > { %v2913_v1 = vpop.f32.mrf.mxu2  ;;  %v3122_v42 = vpop.f32.mrf.mxu3  ;;  %v4448_v40 = vsel %vm4256_vm5, %v3805_v29, 0.0  ;;  %3931 = vxpose.xlu0.b32.cont [2/16] %v3805_v29, 128 }
 0x3cd   : > { %v3295_v26 = vadd.f32 %v2913_v1, %v9263_v50  ;;  %v3296_v8 = vadd.f32 %v3122_v42, %v2471_v38  ;;  %v4581_v4 = vmul.f32 %v4448_v40, %v4448_v40  ;;  %v4511_v3 = vadd.f32 %v4448_v40, %v4447_v30  ;;  %v2300_v44 = vpop.f32.mrf.mxu1  ;;  %v9266_v42 = vld [vmem:[#allocation21_spill] sm:$0xff] }
 0x3ce   : > { %v2473_v39 = vadd.f32 %v2300_v44, %v7433_v33 }
 0x3cf   : > { %v3404_v63 = vmul.f32 %v3295_v26, %v3295_v26  ;;  %v3468_v11 = vmul.f32 %v3296_v8, %v3296_v8  ;;  %v4644_v59 = vadd.f32 %v4581_v4, %v4580_v60  ;;  %v5776_v8 = vld [vmem:[%s6049_s11 + $0x138] sm:$0xff] }
 0x3d0   : > { %v3619_v49 = vpop.f32.mrf.mxu0  ;;  %5290 = vmatmul.msk.f32.gmra.mxu1 %vm642_vm1, %v9264_v56  ;;  %v2659_v4 = vrot.slane %v5776_v8, 3 }
 0x3d1   : > { %v5577_v14 = vpop.eup %5576  ;;  %v3620_v36 = vadd.f32 5.9604645e-08, %v3619_v49  ;;  %5374 = vmatmul.msk.f32.gmra.mxu2 %vm642_vm1, %v2656_v7  ;;  %5438 = vmatmul.msk.f32.gmra.mxu3 %vm642_vm1, %v2656_v7  ;;  %v3532_v52 = vadd.f32 %v3468_v11, %v3404_v63  ;;  %v4128_v63 = vadd.s32 32, %v8251_v17  ;;  %v9267_v11 = vld [vmem:[#allocation111_spill] sm:$0xff] }
 0x3d2   : > { %v3807_v41 = vmul.f32 0.6931472, %v5577_v14 }
 0x3d3   : > { %5578 = vlog2.f32 %v3620_v36  ;;  %3666 = vmatmul.f32.gmra.mxu0 %v3532_v52  ;;  %v2660_v52 = vsel %vm2581_vm3, %v2657_v51, %v2659_v4  ;;  %vm4259_vm8 = vcmp.lt.s32.totalorder %v4128_v63, %v8255_v25 }
 0x3d4   : > { %v2916_v43 = vpop.f32.mrf.mxu2  ;;  %v3125_v37 = vpop.f32.mrf.mxu3  ;;  %v4449_v31 = vsel %vm4257_vm6, %v3807_v41, 0.0  ;;  %3932 = vxpose.xlu0.b32.cont [3/16] %v3807_v41, 128 }
 0x3d5   : > { %v3297_v18 = vadd.f32 %v2916_v43, %v9265_v47  ;;  %v3298_v30 = vadd.f32 %v3125_v37, %v2473_v39  ;;  %v4582_v54 = vmul.f32 %v4449_v31, %v4449_v31  ;;  %v4512_v24 = vadd.f32 %v4511_v3, %v4449_v31  ;;  %v2303_v29 = vpop.f32.mrf.mxu1  ;;  %v9268_v43 = vld [vmem:[#allocation23_spill] sm:$0xff] }
 0x3d6   : > { %v2475_v12 = vadd.f32 %v2303_v29, %v7451_v28 }
 0x3d7   : > { %v3405_v38 = vmul.f32 %v3297_v18, %v3297_v18  ;;  %v3469_v60 = vmul.f32 %v3298_v30, %v3298_v30  ;;  %v4645_v33 = vadd.f32 %v4644_v59, %v4582_v54  ;;  %v5777_v18 = vld [vmem:[%s6049_s11 + $0x140] sm:$0xff] }
 0x3d8   : > { %v3622_v1 = vpop.f32.mrf.mxu0  ;;  %5291 = vmatmul.msk.f32.gmra.mxu1 %vm642_vm1, %v9266_v42  ;;  %v2661_v30 = vrot.slane %v5777_v18, 3 }
 0x3d9   : > { %v5579_v40 = vpop.eup %5578  ;;  %v3623_v16 = vadd.f32 5.9604645e-08, %v3622_v1  ;;  %5375 = vmatmul.msk.f32.gmra.mxu2 %vm642_vm1, %v2658_v45  ;;  %5439 = vmatmul.msk.f32.gmra.mxu3 %vm642_vm1, %v2658_v45  ;;  %v3533_v50 = vadd.f32 %v3469_v60, %v3405_v38  ;;  %v4129_v45 = vadd.s32 40, %v8251_v17  ;;  %v9269_v38 = vld [vmem:[#allocation112_spill] sm:$0xff] }
 0x3da   : > { %v3809_v26 = vmul.f32 0.6931472, %v5579_v40 }
 0x3db   : > { %5580 = vlog2.f32 %v3623_v16  ;;  %3669 = vmatmul.f32.gmra.mxu0 %v3533_v50  ;;  %v2662_v16 = vsel %vm2581_vm3, %v2659_v4, %v2661_v30  ;;  %vm4260_vm9 = vcmp.lt.s32.totalorder %v4129_v45, %v8255_v25  ;;  %v9271_v4 = vld [vmem:[#allocation113_spill] sm:$0xff] }
 0x3dc   : > { %v2919_v3 = vpop.f32.mrf.mxu2  ;;  %v3128_v44 = vpop.f32.mrf.mxu3  ;;  %v4450_v7 = vsel %vm4258_vm7, %v3809_v26, 0.0  ;;  %3933 = vxpose.xlu0.b32.cont [4/16] %v3809_v26, 128 }
 0x3dd   : > { %v3299_v59 = vadd.f32 %v2919_v3, %v9267_v11  ;;  %v3300_v49 = vadd.f32 %v3128_v44, %v2475_v12  ;;  %v4583_v56 = vmul.f32 %v4450_v7, %v4450_v7  ;;  %v4513_v14 = vadd.f32 %v4512_v24, %v4450_v7  ;;  %v2306_v36 = vpop.f32.mrf.mxu1  ;;  %v9270_v12 = vld [vmem:[#allocation25_spill] sm:$0xff]  ;;  %v5778_v11 = vld [vmem:[%s6049_s11 + $0x148] sm:$0xff] }
 0x3de   : > { %v2477_v51 = vadd.f32 %v2306_v36, %v7466_v34 }
 0x3df   : > { %v3406_v41 = vmul.f32 %v3299_v59, %v3299_v59  ;;  %v3470_v21 = vmul.f32 %v3300_v49, %v3300_v49  ;;  %v4646_v28 = vadd.f32 %v4645_v33, %v4583_v56  ;;  %v2663_v59 = vrot.slane %v5778_v11, 3 }
 0x3e0   : > { %v3625_v39 = vpop.f32.mrf.mxu0  ;;  %5292 = vmatmul.msk.f32.gmra.mxu1 %vm642_vm1, %v9268_v43 }
 0x3e1   : > { %v5581_v37 = vpop.eup %5580  ;;  %v3626_v31 = vadd.f32 5.9604645e-08, %v3625_v39  ;;  %5376 = vmatmul.msk.f32.gmra.mxu2 %vm642_vm1, %v2660_v52  ;;  %5440 = vmatmul.msk.f32.gmra.mxu3 %vm642_vm1, %v2660_v52  ;;  %v3534_v48 = vadd.f32 %v3470_v21, %v3406_v41  ;;  %v4130_v52 = vadd.s32 48, %v8251_v17  ;;  %v9272_v41 = vld [vmem:[#allocation114_spill] sm:$0xff] }
 0x3e2   : > { %v3811_v47 = vmul.f32 0.6931472, %v5581_v37 }
 0x3e3   : > { %5582 = vlog2.f32 %v3626_v31  ;;  %3672 = vmatmul.f32.gmra.mxu0 %v3534_v48  ;;  %v2664_v31 = vsel %vm2581_vm3, %v2661_v30, %v2663_v59  ;;  %vm4261_vm10 = vcmp.lt.s32.totalorder %v4130_v52, %v8255_v25 }
 0x3e4   : > { %v2922_v54 = vpop.f32.mrf.mxu2  ;;  %v3131_v24 = vpop.f32.mrf.mxu3  ;;  %v4451_v29 = vsel %vm4259_vm8, %v3811_v47, 0.0  ;;  %3934 = vxpose.xlu0.b32.cont [5/16] %v3811_v47, 128 }
 0x3e5   : > { %v3301_v60 = vadd.f32 %v2922_v54, %v9269_v38  ;;  %v3302_v33 = vadd.f32 %v3131_v24, %v2477_v51  ;;  %v4584_v1 = vmul.f32 %v4451_v29, %v4451_v29  ;;  %v4514_v42 = vadd.f32 %v4513_v14, %v4451_v29  ;;  %v2309_v40 = vpop.f32.mrf.mxu1  ;;  %v5779_v38 = vld [vmem:[%s6049_s11 + $0x150] sm:$0xff] }
 0x3e6   : > { %v2479_v49 = vadd.f32 %v2309_v40, %v9271_v4  ;;  %v9273_v40 = vld [vmem:[#allocation27_spill] sm:$0xff] }
 0x3e7   : > { %v3407_v50 = vmul.f32 %v3301_v60, %v3301_v60  ;;  %v3471_v26 = vmul.f32 %v3302_v33, %v3302_v33  ;;  %v4647_v34 = vadd.f32 %v4646_v28, %v4584_v1  ;;  %v2665_v60 = vrot.slane %v5779_v38, 3 }
 0x3e8   : > { %v3628_v8 = vpop.f32.mrf.mxu0  ;;  %5293 = vmatmul.msk.f32.gmra.mxu1 %vm642_vm1, %v9270_v12 }
 0x3e9   : > { %v5583_v3 = vpop.eup %5582  ;;  %v3629_v44 = vadd.f32 5.9604645e-08, %v3628_v8  ;;  %5377 = vmatmul.msk.f32.gmra.mxu2 %vm642_vm1, %v2662_v16  ;;  %5441 = vmatmul.msk.f32.gmra.mxu3 %vm642_vm1, %v2662_v16  ;;  %v3535_v7 = vadd.f32 %v3471_v26, %v3407_v50  ;;  %v2666_v12 = vsel %vm2581_vm3, %v2663_v59, %v2665_v60  ;;  %v9274_v59 = vld [vmem:[#allocation31_spill] sm:$0xff] }
 0x3ea   : > { %v3813_v63 = vmul.f32 0.6931472, %v5583_v3 }
 0x3eb   : > { %5584 = vlog2.f32 %v3629_v44  ;;  %3675 = vmatmul.f32.gmra.mxu0 %v3535_v7 }
 0x3ec   : > { %v2925_v56 = vpop.f32.mrf.mxu2  ;;  %v3134_v14 = vpop.f32.mrf.mxu3  ;;  %v4452_v36 = vsel %vm4260_vm9, %v3813_v63, 0.0  ;;  %3935 = vxpose.xlu0.b32.cont [6/16] %v3813_v63, 128 }
 0x3ed   : > { %v3303_v21 = vadd.f32 %v2925_v56, %v9272_v41  ;;  %v3304_v28 = vadd.f32 %v3134_v14, %v2479_v49  ;;  %v4585_v39 = vmul.f32 %v4452_v36, %v4452_v36  ;;  %v4515_v43 = vadd.f32 %v4514_v42, %v4452_v36  ;;  %v2312_v37 = vpop.f32.mrf.mxu1  ;;  %v5780_v56 = vld [vmem:[%s6049_s11 + $0x158] sm:$0xff] }
 0x3ee   : > { %v2481_v30 = vadd.f32 %v2312_v37, %v7496_v5  ;;  %v2667_v14 = vrot.slane %v5780_v56, 3 }
 0x3ef   : > { %v3408_v48 = vmul.f32 %v3303_v21, %v3303_v21  ;;  %v3472_v47 = vmul.f32 %v3304_v28, %v3304_v28  ;;  %v4648_v18 = vadd.f32 %v4647_v34, %v4585_v39  ;;  %v9275_v28 = vld [vmem:[#allocation115_spill] sm:$0xff] }
 0x3f0   : > { %v3631_v51 = vpop.f32.mrf.mxu0  ;;  %5294 = vmatmul.msk.f32.gmra.mxu1 %vm642_vm1, %v7491_v13  ;;  %v4131_v13 = vadd.s32 56, %v8251_v17 }
 0x3f1   : > { %v5585_v54 = vpop.eup %5584  ;;  %v3632_v24 = vadd.f32 5.9604645e-08, %v3631_v51  ;;  %5378 = vmatmul.msk.f32.gmra.mxu2 %vm642_vm1, %v2664_v31  ;;  %5442 = vmatmul.msk.f32.gmra.mxu3 %vm642_vm1, %v2664_v31  ;;  %v3536_v29 = vadd.f32 %v3472_v47, %v3408_v48  ;;  %v2668_v47 = vsel %vm2581_vm3, %v2665_v60, %v2667_v14 }
 0x3f2   : > { %v3815_v45 = vmul.f32 0.6931472, %v5585_v54  ;;  %vm4262_vm11 = vcmp.lt.s32.totalorder %v4131_v13, %v8255_v25 }
 0x3f3   : > { %5586 = vlog2.f32 %v3632_v24  ;;  %3678 = vmatmul.f32.gmra.mxu0 %v3536_v29  ;;  %v9276_v29 = vld [vmem:[#allocation35_spill] sm:$0xff] }
 0x3f4   : > { %v2928_v33 = vpop.f32.mrf.mxu2  ;;  %v3137_v1 = vpop.f32.mrf.mxu3  ;;  %v4453_v42 = vsel %vm4261_vm10, %v3815_v45, 0.0  ;;  %3936 = vxpose.xlu0.b32.cont [7/16] %v3815_v45, 128 }
 0x3f5   : > { %v3305_v16 = vadd.f32 %v2928_v33, %v9273_v40  ;;  %v3306_v50 = vadd.f32 %v3137_v1, %v2481_v30  ;;  %v4586_v26 = vmul.f32 %v4453_v42, %v4453_v42  ;;  %v4516_v34 = vadd.f32 %v4515_v43, %v4453_v42  ;;  %v2315_v8 = vpop.f32.mrf.mxu1  ;;  %v5781_v1 = vld [vmem:[%s6049_s11 + $0x160] sm:$0xff] }
 0x3f6   : > { %v2483_v36 = vadd.f32 %v2315_v8, %v9274_v59  ;;  %v2669_v42 = vrot.slane %v5781_v1, 3 }
 0x3f7   : > { %v3409_v3 = vmul.f32 %v3305_v16, %v3305_v16  ;;  %v3473_v44 = vmul.f32 %v3306_v50, %v3306_v50  ;;  %v4649_v5 = vadd.f32 %v4648_v18, %v4586_v26  ;;  %v4133_v50 = vadd.s32 72, %v8251_v17  ;;  %v9277_v26 = vld [vmem:[#allocation116_spill] sm:$0xff] }
 0x3f8   : > { %v3634_v7 = vpop.f32.mrf.mxu0  ;;  %5295 = vmatmul.msk.f32.gmra.mxu1 %vm642_vm1, %v7512_v2  ;;  %v4132_v2 = vadd.s32 64, %v8251_v17 }
 0x3f9   : > { %v5587_v63 = vpop.eup %5586  ;;  %v3635_v11 = vadd.f32 5.9604645e-08, %v3634_v7  ;;  %5379 = vmatmul.msk.f32.gmra.mxu2 %vm642_vm1, %v2666_v12  ;;  %5443 = vmatmul.msk.f32.gmra.mxu3 %vm642_vm1, %v2666_v12  ;;  %v3537_v4 = vadd.f32 %v3473_v44, %v3409_v3  ;;  %vm4264_vm13 = vcmp.lt.s32.totalorder %v4133_v50, %v8255_v25 }
 0x3fa   : > { %v3817_v49 = vmul.f32 0.6931472, %v5587_v63  ;;  %vm4263_vm12 = vcmp.lt.s32.totalorder %v4132_v2, %v8255_v25 }
 0x3fb   : > { %5588 = vlog2.f32 %v3635_v11  ;;  %3681 = vmatmul.f32.gmra.mxu0 %v3537_v4  ;;  %v9278_v4 = vld [vmem:[#allocation39_spill] sm:$0xff] }
 0x3fc   : > { %v2931_v52 = vpop.f32.mrf.mxu2  ;;  %v3140_v41 = vpop.f32.mrf.mxu3  ;;  %v4454_v21 = vsel %vm4262_vm11, %v3817_v49, 0.0  ;;  %3937 = vxpose.xlu0.b32.cont [8/16] %v3817_v49, 128 }
 0x3fd   : > { %v3307_v39 = vadd.f32 %v2931_v52, %v9275_v28  ;;  %v3308_v43 = vadd.f32 %v3140_v41, %v2483_v36  ;;  %v4587_v37 = vmul.f32 %v4454_v21, %v4454_v21  ;;  %v4517_v31 = vadd.f32 %v4516_v34, %v4454_v21  ;;  %v2318_v48 = vpop.f32.mrf.mxu1  ;;  %v5782_v52 = vld [vmem:[%s6049_s11 + $0x168] sm:$0xff] }
 0x3fe   : > { %v2485_v60 = vadd.f32 %v2318_v48, %v7538_v55  ;;  %v2671_v41 = vrot.slane %v5782_v52, 3  ;;  %v5784_v52 = vld [vmem:[%s6049_s11 + $0x178] sm:$0xff] }
 0x3ff   : > { %v3410_v18 = vmul.f32 %v3307_v39, %v3307_v39  ;;  %v3474_v51 = vmul.f32 %v3308_v43, %v3308_v43  ;;  %v4650_v54 = vadd.f32 %v4649_v5, %v4587_v37  ;;  %v2670_v5 = vsel %vm2581_vm3, %v2667_v14, %v2669_v42  ;;  %v9279_v43 = vld [vmem:[#allocation117_spill] sm:$0xff] }
 0x400   : > { %v3637_v24 = vpop.f32.mrf.mxu0  ;;  %5296 = vmatmul.msk.f32.gmra.mxu1 %vm642_vm1, %v9276_v29  ;;  %v4134_v39 = vadd.s32 80, %v8251_v17 }
 0x401   : > { %v5589_v45 = vpop.eup %5588  ;;  %v3638_v38 = vadd.f32 5.9604645e-08, %v3637_v24  ;;  %5380 = vmatmul.msk.f32.gmra.mxu2 %vm642_vm1, %v2668_v47  ;;  %5444 = vmatmul.msk.f32.gmra.mxu3 %vm642_vm1, %v2668_v47  ;;  %v3538_v30 = vadd.f32 %v3474_v51, %v3410_v18  ;;  %v2672_v51 = vsel %vm2581_vm3, %v2669_v42, %v2671_v41 }
 0x402   : > { %v3819_v33 = vmul.f32 0.6931472, %v5589_v45  ;;  %v9280_v45 = vld [vmem:[#allocation43_spill] sm:$0xff]  ;;  %vm4265_vm14 = vcmp.lt.s32.totalorder %v4134_v39, %v8255_v25 }
 0x403   : > { %5590 = vlog2.f32 %v3638_v38  ;;  %3684 = vmatmul.f32.gmra.mxu0 %v3538_v30 }
 0x404   : > { %v2934_v13 = vpop.f32.mrf.mxu2  ;;  %v3143_v40 = vpop.f32.mrf.mxu3  ;;  %v4455_v16 = vsel %vm4263_vm12, %v3819_v33, 0.0  ;;  %3938 = vxpose.xlu0.b32.cont [9/16] %v3819_v33, 128 }
 0x405   : > { %v3309_v34 = vadd.f32 %v2934_v13, %v9277_v26  ;;  %v3310_v8 = vadd.f32 %v3143_v40, %v2485_v60  ;;  %v4588_v12 = vmul.f32 %v4455_v16, %v4455_v16  ;;  %v4518_v3 = vadd.f32 %v4517_v31, %v4455_v16  ;;  %v2321_v44 = vpop.f32.mrf.mxu1  ;;  %v5783_v60 = vld [vmem:[%s6049_s11 + $0x170] sm:$0xff] }
 0x406   : > { %v2487_v14 = vadd.f32 %v2321_v44, %v7553_v35  ;;  %v2673_v13 = vrot.slane %v5783_v60, 3  ;;  %v4135_v26 = vadd.s32 88, %v8251_v17 }
 0x407   : > { %v3411_v7 = vmul.f32 %v3309_v34, %v3309_v34  ;;  %v3475_v63 = vmul.f32 %v3310_v8, %v3310_v8  ;;  %v4651_v55 = vadd.f32 %v4650_v54, %v4588_v12  ;;  %v9281_v34 = vld [vmem:[#allocation118_spill] sm:$0xff] }
 0x408   : > { %v3640_v11 = vpop.f32.mrf.mxu0  ;;  %5297 = vmatmul.msk.f32.gmra.mxu1 %vm642_vm1, %v9278_v4  ;;  %v9282_v4 = vld [vmem:[#allocation47_spill] sm:$0xff]  ;;  %vm4266_vm15 = vcmp.lt.s32.totalorder %v4135_v26, %v8255_v25 }
 0x409   : > { %v5591_v49 = vpop.eup %5590  ;;  %v3641_v56 = vadd.f32 5.9604645e-08, %v3640_v11  ;;  %5381 = vmatmul.msk.f32.gmra.mxu2 %vm642_vm1, %v2670_v5  ;;  %5445 = vmatmul.msk.f32.gmra.mxu3 %vm642_vm1, %v2670_v5  ;;  %v3539_v59 = vadd.f32 %v3475_v63, %v3411_v7  ;;  %v2674_v7 = vsel %vm2581_vm3, %v2671_v41, %v2673_v13  ;;  %v9283_v41 = vld [vmem:[#allocation119_spill] sm:$0xff] }
 0x40a   : > { %v3821_v36 = vmul.f32 0.6931472, %v5591_v49 }
 0x40b   : > { %5592 = vlog2.f32 %v3641_v56  ;;  %3687 = vmatmul.f32.gmra.mxu0 %v3539_v59 }
 0x40c   : > { %v2937_v21 = vpop.f32.mrf.mxu2  ;;  %v3146_v2 = vpop.f32.mrf.mxu3  ;;  %v4456_v28 = vsel %vm4264_vm13, %v3821_v36, 0.0  ;;  %3939 = vxpose.xlu0.b32.cont [10/16] %v3821_v36, 128 }
 0x40d   : > { %v3311_v37 = vadd.f32 %v2937_v21, %v9279_v43  ;;  %v3312_v31 = vadd.f32 %v3146_v2, %v2487_v14  ;;  %v4589_v48 = vmul.f32 %v4456_v28, %v4456_v28  ;;  %v4519_v47 = vadd.f32 %v4518_v3, %v4456_v28  ;;  %v2324_v18 = vpop.f32.mrf.mxu1 }
 0x40e   : > { %v2489_v42 = vadd.f32 %v2324_v18, %v7568_v10  ;;  %v2675_v14 = vrot.slane %v5784_v52, 3  ;;  %v4136_v43 = vadd.s32 96, %v8251_v17 }
 0x40f   : > { %v3412_v54 = vmul.f32 %v3311_v37, %v3311_v37  ;;  %v3476_v24 = vmul.f32 %v3312_v31, %v3312_v31  ;;  %v4652_v35 = vadd.f32 %v4651_v55, %v4589_v48  ;;  %v9284_v37 = vld [vmem:[#allocation120_spill] sm:$0xff] }
 0x410   : > { %v3643_v29 = vpop.f32.mrf.mxu0  ;;  %5298 = vmatmul.msk.f32.gmra.mxu1 %vm642_vm1, %v9280_v45  ;;  %vm4267_vm0 = vcmp.lt.s32.totalorder %v4136_v43, %v8255_v25 }
 0x411   : > { %v5593_v38 = vpop.eup %5592  ;;  %v3644_v30 = vadd.f32 5.9604645e-08, %v3643_v29  ;;  %5382 = vmatmul.msk.f32.gmra.mxu2 %vm642_vm1, %v2672_v51  ;;  %5446 = vmatmul.msk.f32.gmra.mxu3 %vm642_vm1, %v2672_v51  ;;  %v3540_v33 = vadd.f32 %v3476_v24, %v3412_v54  ;;  %v2676_v54 = vsel %vm2581_vm3, %v2673_v13, %v2675_v14  ;;  %v9286_v13 = vld [vmem:[#allocation121_spill] sm:$0xff] }
 0x412   : > { %v3823_v1 = vmul.f32 0.6931472, %v5593_v38  ;;  %v9285_v38 = vld [vmem:[#allocation50_spill] sm:$0xff] }
 0x413   : > { %5594 = vlog2.f32 %v3644_v30  ;;  %3690 = vmatmul.f32.gmra.mxu0 %v3540_v33 }
 0x414   : > { %v2940_v40 = vpop.f32.mrf.mxu2  ;;  %v3149_v16 = vpop.f32.mrf.mxu3  ;;  %v4457_v50 = vsel %vm4265_vm14, %v3823_v1, 0.0  ;;  %3940 = vxpose.xlu0.b32.cont [11/16] %v3823_v1, 128 }
 0x415   : > { %v3313_v8 = vadd.f32 %v2940_v40, %v9281_v34  ;;  %v3314_v12 = vadd.f32 %v3149_v16, %v2489_v42  ;;  %v4590_v3 = vmul.f32 %v4457_v50, %v4457_v50  ;;  %v4520_v44 = vadd.f32 %v4519_v47, %v4457_v50  ;;  %v2327_v5 = vpop.f32.mrf.mxu1  ;;  %v5785_v42 = vld [vmem:[%s6049_s11 + $0x180] sm:$0xff] }
 0x416   : > { %v2491_v21 = vadd.f32 %v2327_v5, %v9283_v41  ;;  %v2677_v40 = vrot.slane %v5785_v42, 3 }
 0x417   : > { %v3413_v63 = vmul.f32 %v3313_v8, %v3313_v8  ;;  %v3477_v55 = vmul.f32 %v3314_v12, %v3314_v12  ;;  %v4653_v10 = vadd.f32 %v4652_v35, %v4590_v3  ;;  %v4137_v8 = vadd.s32 104, %v8251_v17  ;;  %v9287_v12 = vld [vmem:[#allocation122_spill] sm:$0xff] }
 0x418   : > { %v3646_v11 = vpop.f32.mrf.mxu0  ;;  %5299 = vmatmul.msk.f32.gmra.mxu1 %vm642_vm1, %v9282_v4 }
 0x419   : > { %v5595_v49 = vpop.eup %5594  ;;  %v3647_v56 = vadd.f32 5.9604645e-08, %v3646_v11  ;;  %5383 = vmatmul.msk.f32.gmra.mxu2 %vm642_vm1, %v2674_v7  ;;  %5447 = vmatmul.msk.f32.gmra.mxu3 %vm642_vm1, %v2674_v7  ;;  %v3541_v59 = vadd.f32 %v3477_v55, %v3413_v63  ;;  %v2678_v55 = vsel %vm2581_vm3, %v2675_v14, %v2677_v40  ;;  %vm4268_vm2 = vcmp.lt.s32.totalorder %v4137_v8, %v8255_v25  ;;  %v9289_v14 = vld [vmem:[#allocation99_spill] sm:$0xff] }
 0x41a   : > { %v3825_v36 = vmul.f32 0.6931472, %v5595_v49 }
 0x41b   : > { %5596 = vlog2.f32 %v3647_v56  ;;  %3693 = vmatmul.f32.gmra.mxu0 %v3541_v59  ;;  %v9288_v56 = vld [vmem:[#allocation52_spill] sm:$0xff] }
 0x41c   : > { %v2943_v2 = vpop.f32.mrf.mxu2  ;;  %v3152_v28 = vpop.f32.mrf.mxu3  ;;  %v4458_v39 = vsel %vm4266_vm15, %v3825_v36, 0.0  ;;  %3941 = vxpose.xlu0.b32.cont [12/16] %v3825_v36, 128 }
 0x41d   : > { %v3315_v31 = vadd.f32 %v2943_v2, %v9284_v37  ;;  %v3316_v48 = vadd.f32 %v3152_v28, %v2491_v21  ;;  %v4591_v47 = vmul.f32 %v4458_v39, %v4458_v39  ;;  %v4521_v18 = vadd.f32 %v4520_v44, %v4458_v39  ;;  %v2330_v51 = vpop.f32.mrf.mxu1  ;;  %v5786_v21 = vld [vmem:[%s6049_s11 + $0x188] sm:$0xff] }
 0x41e   : > { %v2493_v16 = vadd.f32 %v2330_v51, %v9286_v13  ;;  %v2679_v2 = vrot.slane %v5786_v21, 3 }
 0x41f   : > { %v3414_v24 = vmul.f32 %v3315_v31, %v3315_v31  ;;  %v3478_v35 = vmul.f32 %v3316_v48, %v3316_v48  ;;  %v4654_v29 = vadd.f32 %v4653_v10, %v4591_v47  ;;  %v4138_v31 = vadd.s32 112, %v8251_v17  ;;  %v9290_v48 = vld [vmem:[#allocation123_spill] sm:$0xff] }
 0x420   : > { %v3649_v45 = vpop.f32.mrf.mxu0  ;;  %5300 = vmatmul.msk.f32.gmra.mxu1 %vm642_vm1, %v9285_v38 }
 0x421   : > { %v5597_v30 = vpop.eup %5596  ;;  %v3650_v33 = vadd.f32 5.9604645e-08, %v3649_v45  ;;  %5384 = vmatmul.msk.f32.gmra.mxu2 %vm642_vm1, %v2676_v54  ;;  %5448 = vmatmul.msk.f32.gmra.mxu3 %vm642_vm1, %v2676_v54  ;;  %v3542_v1 = vadd.f32 %v3478_v35, %v3414_v24  ;;  %v2680_v35 = vsel %vm2581_vm3, %v2677_v40, %v2679_v2  ;;  %vm4269_vm4 = vcmp.lt.s32.totalorder %v4138_v31, %v8255_v25  ;;  %v9292_v40 = vld [vmem:[#allocation55_spill] sm:$0xff] }
 0x422   : > { %v3827_v60 = vmul.f32 0.6931472, %v5597_v30 }
 0x423   : > { %5598 = vlog2.f32 %v3650_v33  ;;  %3696 = vmatmul.f32.gmra.mxu0 %v3542_v1  ;;  %v9291_v33 = vld [vmem:[#allocation12_spill] sm:$0xff] }
 0x424   : > { %v2946_v50 = vpop.f32.mrf.mxu2  ;;  %v3155_v26 = vpop.f32.mrf.mxu3  ;;  %v4459_v34 = vsel %vm4267_vm0, %v3827_v60, 0.0  ;;  %3942 = vxpose.xlu0.b32.cont [13/16] %v3827_v60, 128 }
 0x425   : > { %v3317_v3 = vadd.f32 %v2946_v50, %v9287_v12  ;;  %v3318_v44 = vadd.f32 %v3155_v26, %v2493_v16  ;;  %v4592_v5 = vmul.f32 %v4459_v34, %v4459_v34  ;;  %v4522_v7 = vadd.f32 %v4521_v18, %v4459_v34  ;;  %v2333_v63 = vpop.f32.mrf.mxu1  ;;  %v5787_v16 = vld [vmem:[%s6049_s11 + $0x190] sm:$0xff] }
 0x426   : > { %v2495_v28 = vadd.f32 %v2333_v63, %v9289_v14  ;;  %v2681_v50 = vrot.slane %v5787_v16, 3 }
 0x427   : > { %v3415_v10 = vmul.f32 %v3317_v3, %v3317_v3  ;;  %v3479_v11 = vmul.f32 %v3318_v44, %v3318_v44  ;;  %v4655_v4 = vadd.f32 %v4654_v29, %v4592_v5  ;;  %v4139_v3 = vadd.s32 120, %v8251_v17  ;;  %v9293_v44 = vld [vmem:[#allocation124_spill] sm:$0xff] }
 0x428   : > { %v3652_v49 = vpop.f32.mrf.mxu0  ;;  %5301 = vmatmul.msk.f32.gmra.mxu1 %vm642_vm1, %v9288_v56 }
 0x429   : > { %v5599_v59 = vpop.eup %5598  ;;  %v3653_v36 = vadd.f32 5.9604645e-08, %v3652_v49  ;;  %5385 = vmatmul.msk.f32.gmra.mxu2 %vm642_vm1, %v2678_v55  ;;  %5449 = vmatmul.msk.f32.gmra.mxu3 %vm642_vm1, %v2678_v55  ;;  %v3543_v52 = vadd.f32 %v3479_v11, %v3415_v10  ;;  %v2682_v11 = vsel %vm2581_vm3, %v2679_v2, %v2681_v50  ;;  %vm4270_vm5 = vcmp.lt.s32.totalorder %v4139_v3, %v8255_v25  ;;  %v9295_v2 = vld [vmem:[#allocation58_spill] sm:$0xff] }
 0x42a   : > { %v3829_v41 = vmul.f32 0.6931472, %v5599_v59 }
 0x42b   : > { %5600 = vlog2.f32 %v3653_v36  ;;  %3699 = vmatmul.f32.gmra.mxu0 %v3543_v52  ;;  %v9294_v36 = vld [vmem:[#allocation14_spill] sm:$0xff] }
 0x42c   : > { %v2949_v39 = vpop.f32.mrf.mxu2  ;;  %v3158_v43 = vpop.f32.mrf.mxu3  ;;  %v4460_v37 = vsel %vm4268_vm2, %v3829_v41, 0.0  ;;  %3943 = vxpose.xlu0.b32.cont [14/16] %v3829_v41, 128 }
 0x42d   : > { %v3319_v47 = vadd.f32 %v2949_v39, %v9290_v48  ;;  %v3320_v18 = vadd.f32 %v3158_v43, %v2495_v28  ;;  %v4593_v51 = vmul.f32 %v4460_v37, %v4460_v37  ;;  %v4523_v54 = vadd.f32 %v4522_v7, %v4460_v37  ;;  %v2336_v24 = vpop.f32.mrf.mxu1  ;;  %v5788_v28 = vld [vmem:[%s6049_s11 + $0x198] sm:$0xff] }
 0x42e   : > { %v2497_v26 = vadd.f32 %v2336_v24, %v9292_v40  ;;  %v2683_v39 = vrot.slane %v5788_v28, 3 }
 0x42f   : > { %v3416_v29 = vmul.f32 %v3319_v47, %v3319_v47  ;;  %v3480_v45 = vmul.f32 %v3320_v18, %v3320_v18  ;;  %v4656_v38 = vadd.f32 %v4655_v4, %v4593_v51  ;;  %v4140_v47 = vadd.s32 128, %v8251_v17  ;;  %v9296_v18 = vld [vmem:[#allocation125_spill] sm:$0xff] }
 0x430   : > { %v3655_v30 = vpop.f32.mrf.mxu0  ;;  %5302 = vmatmul.msk.f32.gmra.mxu1 %vm642_vm1, %v9291_v33 }
 0x431   : > { %v5601_v1 = vpop.eup %5600  ;;  %v3656_v60 = vadd.f32 5.9604645e-08, %v3655_v30  ;;  %5386 = vmatmul.msk.f32.gmra.mxu2 %vm642_vm1, %v2680_v35  ;;  %5450 = vmatmul.msk.f32.gmra.mxu3 %vm642_vm1, %v2680_v35  ;;  %v3544_v42 = vadd.f32 %v3480_v45, %v3416_v29  ;;  %v2684_v45 = vsel %vm2581_vm3, %v2681_v50, %v2683_v39  ;;  %vm4271_vm6 = vcmp.lt.s32.totalorder %v4140_v47, %v8255_v25  ;;  %v9298_v50 = vld [vmem:[#allocation61_spill] sm:$0xff] }
 0x432   : > { %v3831_v13 = vmul.f32 0.6931472, %v5601_v1 }
 0x433   : > { %5602 = vlog2.f32 %v3656_v60  ;;  %3702 = vmatmul.f32.gmra.mxu0 %v3544_v42  ;;  %v9297_v60 = vld [vmem:[#allocation16_spill] sm:$0xff] }
 0x434   : > { %v2952_v34 = vpop.f32.mrf.mxu2  ;;  %v3161_v8 = vpop.f32.mrf.mxu3  ;;  %v4461_v12 = vsel %vm4269_vm4, %v3831_v13, 0.0  ;;  %3944 = vxpose.xlu0.b32.cont [15/16] %v3831_v13, 128 }
 0x435   : > { %v3321_v5 = vadd.f32 %v2952_v34, %v9293_v44  ;;  %v3322_v7 = vadd.f32 %v3161_v8, %v2497_v26  ;;  %v4594_v63 = vmul.f32 %v4461_v12, %v4461_v12  ;;  %v4524_v55 = vadd.f32 %v4523_v54, %v4461_v12  ;;  %v2339_v10 = vpop.f32.mrf.mxu1  ;;  %v5789_v26 = vld [vmem:[%s6049_s11 + $0x1a0] sm:$0xff] }
 0x436   : > { %v2499_v43 = vadd.f32 %v2339_v10, %v9295_v2  ;;  %v2685_v34 = vrot.slane %v5789_v26, 3 }
 0x437   : > { %v3417_v4 = vmul.f32 %v3321_v5, %v3321_v5  ;;  %v3481_v49 = vmul.f32 %v3322_v7, %v3322_v7  ;;  %v4657_v56 = vadd.f32 %v4656_v38, %v4594_v63  ;;  %v4141_v5 = vadd.s32 136, %v8251_v17  ;;  %v9299_v7 = vld [vmem:[#allocation126_spill] sm:$0xff] }
 0x438   : > { %v3658_v59 = vpop.f32.mrf.mxu0  ;;  %5303 = vmatmul.msk.f32.gmra.mxu1 %vm642_vm1, %v9294_v36 }
 0x439   : > { %v5603_v52 = vpop.eup %5602  ;;  %v3659_v41 = vadd.f32 5.9604645e-08, %v3658_v59  ;;  %5387 = vmatmul.msk.f32.gmra.mxu2 %vm642_vm1, %v2682_v11  ;;  %5451 = vmatmul.msk.f32.gmra.mxu3 %vm642_vm1, %v2682_v11  ;;  %v3545_v21 = vadd.f32 %v3481_v49, %v3417_v4  ;;  %v2686_v49 = vsel %vm2581_vm3, %v2683_v39, %v2685_v34  ;;  %vm4272_vm7 = vcmp.lt.s32.totalorder %v4141_v5, %v8255_v25  ;;  %v9301_v39 = vld [vmem:[#allocation64_spill] sm:$0xff] }
 0x43a   : > { %v3833_v14 = vmul.f32 0.6931472, %v5603_v52 }
 0x43b   : > { %5604 = vlog2.f32 %v3659_v41  ;;  %3705 = vmatmul.f32.gmra.mxu0 %v3545_v21  ;;  %v9300_v41 = vld [vmem:[#allocation18_spill] sm:$0xff] }
 0x43c   : > { %v2955_v37 = vpop.f32.mrf.mxu2  ;;  %v3164_v31 = vpop.f32.mrf.mxu3  ;;  %3945 = vxpose.xlu0.b32.end [16/16] %v3833_v14, 128  ;;  %v4462_v48 = vsel %vm4270_vm5, %v3833_v14, 0.0 }
 0x43d   : > { %v3323_v51 = vadd.f32 %v2955_v37, %v9296_v18  ;;  %v3324_v54 = vadd.f32 %v3164_v31, %v2499_v43  ;;  %v4525_v24 = vadd.f32 %v4524_v55, %v4462_v48  ;;  %v4595_v35 = vmul.f32 %v4462_v48, %v4462_v48  ;;  %v2342_v29 = vpop.f32.mrf.mxu1  ;;  %v5790_v43 = vld [vmem:[%s6049_s11 + $0x1a8] sm:$0xff] }
 0x43e   : > { %v2501_v8 = vadd.f32 %v2342_v29, %v9298_v50  ;;  %v2687_v37 = vrot.slane %v5790_v43, 3 }
 0x43f   : > { %v3418_v38 = vmul.f32 %v3323_v51, %v3323_v51  ;;  %v3482_v30 = vmul.f32 %v3324_v54, %v3324_v54  ;;  %v4658_v33 = vadd.f32 %v4657_v56, %v4595_v35  ;;  %v4142_v51 = vadd.s32 144, %v8251_v17  ;;  %v9302_v54 = vld [vmem:[#allocation127_spill] sm:$0xff] }
 0x440   : > { %v3661_v1 = vpop.f32.mrf.mxu0  ;;  %5304 = vmatmul.msk.f32.gmra.mxu1 %vm642_vm1, %v9297_v60 }
 0x441   : > { %v5605_v42 = vpop.eup %5604  ;;  %v3662_v13 = vadd.f32 5.9604645e-08, %v3661_v1  ;;  %5388 = vmatmul.msk.f32.gmra.mxu2 %vm642_vm1, %v2684_v45  ;;  %5452 = vmatmul.msk.f32.gmra.mxu3 %vm642_vm1, %v2684_v45  ;;  %v3546_v16 = vadd.f32 %v3482_v30, %v3418_v38  ;;  %v2688_v30 = vsel %vm2581_vm3, %v2685_v34, %v2687_v37  ;;  %vm4273_vm8 = vcmp.lt.s32.totalorder %v4142_v51, %v8255_v25  ;;  %v9304_v34 = vld [vmem:[#allocation67_spill] sm:$0xff] }
 0x442   : > { %v3835_v40 = vmul.f32 0.6931472, %v5605_v42 }
 0x443   : > { %5606 = vlog2.f32 %v3662_v13  ;;  %3708 = vmatmul.f32.gmra.mxu0 %v3546_v16  ;;  %v9303_v13 = vld [vmem:[#allocation20_spill] sm:$0xff] }
 0x444   : > { %v2958_v12 = vpop.f32.mrf.mxu2  ;;  %v3167_v3 = vpop.f32.mrf.mxu3  ;;  %3962 = vxpose.xlu1.b32.start [1/16] %v3835_v40, 128  ;;  %v4463_v44 = vsel %vm4271_vm6, %v3835_v40, 0.0 }
 0x445   : > { %v3325_v63 = vadd.f32 %v2958_v12, %v9299_v7  ;;  %v3326_v55 = vadd.f32 %v3167_v3, %v2501_v8  ;;  %v4526_v10 = vadd.f32 %v4525_v24, %v4463_v44  ;;  %v4596_v11 = vmul.f32 %v4463_v44, %v4463_v44  ;;  %v2345_v4 = vpop.f32.mrf.mxu1  ;;  %v5791_v8 = vld [vmem:[%s6049_s11 + $0x1b0] sm:$0xff] }
 0x446   : > { %v2503_v31 = vadd.f32 %v2345_v4, %v9301_v39  ;;  %v2689_v12 = vrot.slane %v5791_v8, 3 }
 0x447   : > { %v3419_v56 = vmul.f32 %v3325_v63, %v3325_v63  ;;  %v3483_v59 = vmul.f32 %v3326_v55, %v3326_v55  ;;  %v4659_v36 = vadd.f32 %v4658_v33, %v4596_v11  ;;  %v4143_v63 = vadd.s32 152, %v8251_v17  ;;  %v9305_v55 = vld [vmem:[#allocation128_spill] sm:$0xff] }
 0x448   : > { %v3664_v52 = vpop.f32.mrf.mxu0  ;;  %5305 = vmatmul.msk.f32.gmra.mxu1 %vm642_vm1, %v9300_v41 }
 0x449   : > { %v5607_v21 = vpop.eup %5606  ;;  %v3665_v14 = vadd.f32 5.9604645e-08, %v3664_v52  ;;  %5389 = vmatmul.msk.f32.gmra.mxu2 %vm642_vm1, %v2686_v49  ;;  %5453 = vmatmul.msk.f32.gmra.mxu3 %vm642_vm1, %v2686_v49  ;;  %v3547_v28 = vadd.f32 %v3483_v59, %v3419_v56  ;;  %v2690_v59 = vsel %vm2581_vm3, %v2687_v37, %v2689_v12  ;;  %vm4274_vm9 = vcmp.lt.s32.totalorder %v4143_v63, %v8255_v25  ;;  %v9307_v37 = vld [vmem:[#allocation70_spill] sm:$0xff] }
 0x44a   : > { %v3837_v2 = vmul.f32 0.6931472, %v5607_v21 }
 0x44b   : > { %5608 = vlog2.f32 %v3665_v14  ;;  %3711 = vmatmul.f32.gmra.mxu0 %v3547_v28  ;;  %v9306_v14 = vld [vmem:[#allocation22_spill] sm:$0xff] }
 0x44c   : > { %v2961_v48 = vpop.f32.mrf.mxu2  ;;  %v3170_v47 = vpop.f32.mrf.mxu3  ;;  %v4464_v18 = vsel %vm4272_vm7, %v3837_v2, 0.0  ;;  %3963 = vxpose.xlu1.b32.cont [2/16] %v3837_v2, 128 }
 0x44d   : > { %v3327_v24 = vadd.f32 %v2961_v48, %v9302_v54  ;;  %v3328_v35 = vadd.f32 %v3170_v47, %v2503_v31  ;;  %v4597_v29 = vmul.f32 %v4464_v18, %v4464_v18  ;;  %v4527_v45 = vadd.f32 %v4526_v10, %v4464_v18  ;;  %v2348_v38 = vpop.f32.mrf.mxu1  ;;  %v5792_v31 = vld [vmem:[%s6049_s11 + $0x1b8] sm:$0xff] }
 0x44e   : > { %v2505_v3 = vadd.f32 %v2348_v38, %v9304_v34  ;;  %v2691_v48 = vrot.slane %v5792_v31, 3  ;;  %v5793_v34 = vld [vmem:[%s6049_s11 + $0x1c0] sm:$0xff]  ;;  %v5794_v31 = vld [vmem:[%s6049_s11 + $0x1c8] sm:$0xff] }
 0x44f   : > { %v3420_v33 = vmul.f32 %v3327_v24, %v3327_v24  ;;  %v3484_v1 = vmul.f32 %v3328_v35, %v3328_v35  ;;  %v4660_v60 = vadd.f32 %v4659_v36, %v4597_v29  ;;  %v4144_v24 = vadd.s32 160, %v8251_v17  ;;  %v9308_v35 = vld [vmem:[#allocation129_spill] sm:$0xff] }
 0x450   : > { %v3667_v42 = vpop.f32.mrf.mxu0  ;;  %5306 = vmatmul.msk.f32.gmra.mxu1 %vm642_vm1, %v9303_v13 }
 0x451   : > { %v5609_v16 = vpop.eup %5608  ;;  %v3668_v40 = vadd.f32 5.9604645e-08, %v3667_v42  ;;  %5390 = vmatmul.msk.f32.gmra.mxu2 %vm642_vm1, %v2688_v30  ;;  %5454 = vmatmul.msk.f32.gmra.mxu3 %vm642_vm1, %v2688_v30  ;;  %v3548_v26 = vadd.f32 %v3484_v1, %v3420_v33  ;;  %v2692_v1 = vsel %vm2581_vm3, %v2689_v12, %v2691_v48  ;;  %vm4275_vm10 = vcmp.lt.s32.totalorder %v4144_v24, %v8255_v25  ;;  %v9309_v12 = vld [vmem:[#allocation24_spill] sm:$0xff] }
 0x452   : > { %v3839_v50 = vmul.f32 0.6931472, %v5609_v16 }
 0x453   : > { %5610 = vlog2.f32 %v3668_v40  ;;  %3714 = vmatmul.f32.gmra.mxu0 %v3548_v26 }
 0x454   : > { %v2964_v44 = vpop.f32.mrf.mxu2  ;;  %v3173_v5 = vpop.f32.mrf.mxu3  ;;  %v4465_v7 = vsel %vm4273_vm8, %v3839_v50, 0.0  ;;  %3964 = vxpose.xlu1.b32.cont [3/16] %v3839_v50, 128 }
 0x455   : > { %v3329_v10 = vadd.f32 %v2964_v44, %v9305_v55  ;;  %v3330_v11 = vadd.f32 %v3173_v5, %v2505_v3  ;;  %v4598_v4 = vmul.f32 %v4465_v7, %v4465_v7  ;;  %v4528_v49 = vadd.f32 %v4527_v45, %v4465_v7  ;;  %v2351_v56 = vpop.f32.mrf.mxu1  ;;  %v9310_v55 = vld [vmem:[#allocation73_spill] sm:$0xff] }
 0x456   : > { %v2507_v47 = vadd.f32 %v2351_v56, %v9307_v37  ;;  %v2693_v3 = vrot.slane %v5793_v34, 3  ;;  %v2695_v37 = vrot.slane %v5794_v31, 3  ;;  %v5795_v34 = vld [vmem:[%s6049_s11 + $0x1d0] sm:$0xff] }
 0x457   : > { %v3421_v36 = vmul.f32 %v3329_v10, %v3329_v10  ;;  %v3485_v52 = vmul.f32 %v3330_v11, %v3330_v11  ;;  %v4661_v41 = vadd.f32 %v4660_v60, %v4598_v4 }
 0x458   : > { %v3670_v21 = vpop.f32.mrf.mxu0  ;;  %5307 = vmatmul.msk.f32.gmra.mxu1 %vm642_vm1, %v9306_v14  ;;  %v9311_v14 = vld [vmem:[#allocation26_spill] sm:$0xff] }
 0x459   : > { %v5611_v28 = vpop.eup %5610  ;;  %v3671_v2 = vadd.f32 5.9604645e-08, %v3670_v21  ;;  %5391 = vmatmul.msk.f32.gmra.mxu2 %vm642_vm1, %v2690_v59  ;;  %5455 = vmatmul.msk.f32.gmra.mxu3 %vm642_vm1, %v2690_v59  ;;  %v3549_v43 = vadd.f32 %v3485_v52, %v3421_v36  ;;  %v2694_v59 = vsel %vm2581_vm3, %v2691_v48, %v2693_v3 }
 0x45a   : > { %v3841_v39 = vmul.f32 0.6931472, %v5611_v28 }
 0x45b   : > { %5612 = vlog2.f32 %v3671_v2  ;;  %3717 = vmatmul.f32.gmra.mxu0 %v3549_v43 }
 0x45c   : > { %v2967_v18 = vpop.f32.mrf.mxu2  ;;  %v3176_v51 = vpop.f32.mrf.mxu3  ;;  %v4466_v54 = vsel %vm4274_vm9, %v3841_v39, 0.0  ;;  %3965 = vxpose.xlu1.b32.cont [4/16] %v3841_v39, 128 }
 0x45d   : > { %v3331_v29 = vadd.f32 %v2967_v18, %v9308_v35  ;;  %v3332_v45 = vadd.f32 %v3176_v51, %v2507_v47  ;;  %v4599_v38 = vmul.f32 %v4466_v54, %v4466_v54  ;;  %v4529_v30 = vadd.f32 %v4528_v49, %v4466_v54  ;;  %v2354_v33 = vpop.f32.mrf.mxu1 }
 0x45e   : > { %v2509_v44 = vadd.f32 %v2354_v33, %v9309_v12  ;;  %v4146_v54 = vadd.s32 176, %v8251_v17  ;;  %v9312_v33 = vld [vmem:[#allocation79_spill] sm:$0xff] }
 0x45f   : > { %v3422_v60 = vmul.f32 %v3331_v29, %v3331_v29  ;;  %v3486_v42 = vmul.f32 %v3332_v45, %v3332_v45  ;;  %v4662_v13 = vadd.f32 %v4661_v41, %v4599_v38  ;;  %v9315_v12 = vld [vmem:[#allocation63_spill] sm:$0xff] }
 0x460   : > { %v3673_v16 = vpop.f32.mrf.mxu0  ;;  %5308 = vmatmul.msk.f32.gmra.mxu1 %vm642_vm1, %v7737_v58  ;;  %v4145_v58 = vadd.s32 168, %v8251_v17  ;;  %vm4277_vm12 = vcmp.lt.s32.totalorder %v4146_v54, %v8255_v25  ;;  %v9320_v54 = vld [vmem:[#allocation66_spill] sm:$0xff] }
 0x461   : > { %v5613_v40 = vpop.eup %5612  ;;  %v3674_v26 = vadd.f32 5.9604645e-08, %v3673_v16  ;;  %5392 = vmatmul.msk.f32.gmra.mxu2 %vm642_vm1, %v2692_v1  ;;  %5456 = vmatmul.msk.f32.gmra.mxu3 %vm642_vm1, %v2692_v1  ;;  %v3550_v50 = vadd.f32 %v3486_v42, %v3422_v60  ;;  %v9313_v1 = vld [vmem:[#allocation28_spill] sm:$0xff] }
 0x462   : > { %v3843_v8 = vmul.f32 0.6931472, %v5613_v40  ;;  %vm4276_vm11 = vcmp.lt.s32.totalorder %v4145_v58, %v8255_v25  ;;  %v9314_v40 = vld [vmem:[#allocation76_spill] sm:$0xff] }
 0x463   : > { %5614 = vlog2.f32 %v3674_v26  ;;  %3720 = vmatmul.f32.gmra.mxu0 %v3550_v50 }
 0x464   : > { %v2970_v5 = vpop.f32.mrf.mxu2  ;;  %v3179_v7 = vpop.f32.mrf.mxu3  ;;  %v4467_v63 = vsel %vm4275_vm10, %v3843_v8, 0.0  ;;  %3966 = vxpose.xlu1.b32.cont [5/16] %v3843_v8, 128 }
 0x465   : > { %v3333_v10 = vadd.f32 %v2970_v5, %v9310_v55  ;;  %v3334_v11 = vadd.f32 %v3179_v7, %v2509_v44  ;;  %v4600_v4 = vmul.f32 %v4467_v63, %v4467_v63  ;;  %v4530_v49 = vadd.f32 %v4529_v30, %v4467_v63  ;;  %v2357_v56 = vpop.f32.mrf.mxu1  ;;  %v9316_v5 = vld [vmem:[#allocation130_spill] sm:$0xff] }
 0x466   : > { %v2511_v48 = vadd.f32 %v2357_v56, %v7760_v19  ;;  %v2696_v30 = vsel %vm2581_vm3, %v2693_v3, %v2695_v37  ;;  %v1455_v19 = vadd.f32 %v9313_v1, %v9312_v33  ;;  %v2697_v3 = vrot.slane %v5795_v34, 3 }
 0x467   : > { %v3423_v36 = vmul.f32 %v3333_v10, %v3333_v10  ;;  %v3487_v52 = vmul.f32 %v3334_v11, %v3334_v11  ;;  %v4663_v41 = vadd.f32 %v4662_v13, %v4600_v4  ;;  %v4147_v10 = vadd.s32 184, %v8251_v17 }
 0x468   : > { %v3676_v21 = vpop.f32.mrf.mxu0  ;;  %5309 = vmatmul.msk.f32.gmra.mxu1 %vm642_vm1, %v9311_v14  ;;  %v2512_v44 = vadd.f32 %v9315_v12, %v1455_v19  ;;  %v4148_v33 = vadd.s32 192, %v8251_v17 }
 0x469   : > { %v5615_v28 = vpop.eup %5614  ;;  %v3677_v2 = vadd.f32 5.9604645e-08, %v3676_v21  ;;  %5393 = vmatmul.msk.f32.gmra.mxu2 %vm642_vm1, %v2694_v59  ;;  %5457 = vmatmul.msk.f32.gmra.mxu3 %vm642_vm1, %v2694_v59  ;;  %v3551_v43 = vadd.f32 %v3487_v52, %v3423_v36  ;;  %v2698_v36 = vsel %vm2581_vm3, %v2695_v37, %v2697_v3  ;;  %v9317_v52 = vld [vmem:[#allocation82_spill] sm:$0xff]  ;;  %vm4278_vm13 = vcmp.lt.s32.totalorder %v4147_v10, %v8255_v25  ;;  %v9325_v10 = vld [vmem:[#allocation152_spill] sm:$0xff] }
 0x46a   : > { %v3845_v39 = vmul.f32 0.6931472, %v5615_v28  ;;  %vm4279_vm14 = vcmp.lt.s32.totalorder %v4148_v33, %v8255_v25  ;;  %v9330_v33 = vld [vmem:[#allocation155_spill] sm:$0xff] }
 0x46b   : > { %5616 = vlog2.f32 %v3677_v2  ;;  %3723 = vmatmul.f32.gmra.mxu0 %v3551_v43 }
 0x46c   : > { %v2973_v47 = vpop.f32.mrf.mxu2  ;;  %v3182_v18 = vpop.f32.mrf.mxu3  ;;  %v4468_v51 = vsel %vm4276_vm11, %v3845_v39, 0.0  ;;  %3967 = vxpose.xlu1.b32.cont [6/16] %v3845_v39, 128  ;;  %v9319_v39 = vld [vmem:[#allocation32_spill] sm:$0xff] }
 0x46d   : > { %v3335_v24 = vadd.f32 %v2973_v47, %v7763_v15  ;;  %v3336_v35 = vadd.f32 %v3182_v18, %v2511_v48  ;;  %v4601_v29 = vmul.f32 %v4468_v51, %v4468_v51  ;;  %v4531_v45 = vadd.f32 %v4530_v49, %v4468_v51  ;;  %v2360_v38 = vpop.f32.mrf.mxu1  ;;  %v5796_v18 = vld [vmem:[%s6049_s11 + $0x1d8] sm:$0xff] }
 0x46e   : > { %v2513_v7 = vadd.f32 %v2360_v38, %v9316_v5  ;;  %v2699_v51 = vrot.slane %v5796_v18, 3 }
 0x46f   : > { %v3424_v60 = vmul.f32 %v3335_v24, %v3335_v24  ;;  %v3488_v42 = vmul.f32 %v3336_v35, %v3336_v35  ;;  %v4664_v13 = vadd.f32 %v4663_v41, %v4601_v29  ;;  %v9318_v41 = vld [vmem:[#allocation131_spill] sm:$0xff]  ;;  %v9321_v35 = vld [vmem:[#allocation132_spill] sm:$0xff] }
 0x470   : > { %v3679_v16 = vpop.f32.mrf.mxu0  ;;  %5310 = vmatmul.msk.f32.gmra.mxu1 %vm642_vm1, %v9314_v40  ;;  %v1458_v21 = vadd.f32 %v9318_v41, %v9317_v52  ;;  %v9322_v40 = vld [vmem:[#allocation85_spill] sm:$0xff]  ;;  %v4149_v52 = vadd.s32 200, %v8251_v17 }
 0x471   : > { %v5617_v26 = vpop.eup %5616  ;;  %v3680_v50 = vadd.f32 5.9604645e-08, %v3679_v16  ;;  %5394 = vmatmul.msk.f32.gmra.mxu2 %vm642_vm1, %v2696_v30  ;;  %5458 = vmatmul.msk.f32.gmra.mxu3 %vm642_vm1, %v2696_v30  ;;  %v3552_v15 = vadd.f32 %v3488_v42, %v3424_v60  ;;  %v2700_v16 = vsel %vm2581_vm3, %v2697_v3, %v2699_v51 }
 0x472   : > { %v3847_v8 = vmul.f32 0.6931472, %v5617_v26  ;;  %v2514_v24 = vadd.f32 %v9320_v54, %v1458_v21  ;;  %v9323_v26 = vld [vmem:[#allocation133_spill] sm:$0xff]  ;;  %vm4280_vm15 = vcmp.lt.s32.totalorder %v4149_v52, %v8255_v25  ;;  %v9335_v52 = vld [vmem:[#allocation78_spill] sm:$0xff] }
 0x473   : > { %5618 = vlog2.f32 %v3680_v50  ;;  %3726 = vmatmul.f32.gmra.mxu0 %v3552_v15  ;;  %v1461_v50 = vadd.f32 %v9323_v26, %v9322_v40  ;;  %v4150_v40 = vadd.s32 208, %v8251_v17 }
 0x474   : > { %v2976_v63 = vpop.f32.mrf.mxu2  ;;  %v3185_v58 = vpop.f32.mrf.mxu3  ;;  %v4469_v55 = vsel %vm4277_vm12, %v3847_v8, 0.0  ;;  %3968 = vxpose.xlu1.b32.cont [7/16] %v3847_v8, 128 }
 0x475   : > { %v3337_v11 = vadd.f32 %v2976_v63, %v2512_v44  ;;  %v3338_v4 = vadd.f32 %v3185_v58, %v2513_v7  ;;  %v4602_v49 = vmul.f32 %v4469_v55, %v4469_v55  ;;  %v4532_v56 = vadd.f32 %v4531_v45, %v4469_v55  ;;  %v2363_v59 = vpop.f32.mrf.mxu1  ;;  %v9324_v44 = vld [vmem:[#allocation36_spill] sm:$0xff]  ;;  %v5797_v58 = vld [vmem:[%s6049_s11 + $0x1e0] sm:$0xff] }
 0x476   : > { %v2515_v29 = vadd.f32 %v2363_v59, %v9321_v35  ;;  %v2701_v55 = vrot.slane %v5797_v58, 3  ;;  %vm4281_vm0 = vcmp.lt.s32.totalorder %v4150_v40, %v8255_v25  ;;  %v9340_v40 = vld [vmem:[#allocation81_spill] sm:$0xff] }
 0x477   : > { %v3425_v14 = vmul.f32 %v3337_v11, %v3337_v11  ;;  %v3489_v28 = vmul.f32 %v3338_v4, %v3338_v4  ;;  %v4665_v2 = vadd.f32 %v4664_v13, %v4602_v49  ;;  %v2516_v11 = vadd.f32 %v9325_v10, %v1461_v50  ;;  %v9326_v4 = vld [vmem:[#allocation134_spill] sm:$0xff] }
 0x478   : > { %v3682_v43 = vpop.f32.mrf.mxu0  ;;  %5311 = vmatmul.msk.f32.gmra.mxu1 %vm642_vm1, %v9319_v39  ;;  %v9327_v39 = vld [vmem:[#allocation88_spill] sm:$0xff] }
 0x479   : > { %v5619_v31 = vpop.eup %5618  ;;  %v3553_v48 = vadd.f32 %v3489_v28, %v3425_v14  ;;  %v3683_v47 = vadd.f32 5.9604645e-08, %v3682_v43  ;;  %5395 = vmatmul.msk.f32.gmra.mxu2 %vm642_vm1, %v2698_v36  ;;  %5459 = vmatmul.msk.f32.gmra.mxu3 %vm642_vm1, %v2698_v36  ;;  %v2702_v43 = vsel %vm2581_vm3, %v2699_v51, %v2701_v55 }
 0x47a   : > { %v3849_v37 = vmul.f32 0.6931472, %v5619_v31  ;;  %v9328_v31 = vld [vmem:[#allocation135_spill] sm:$0xff] }
 0x47b   : > { %5620 = vlog2.f32 %v3683_v47  ;;  %3729 = vmatmul.f32.gmra.mxu0 %v3553_v48  ;;  %v1464_v48 = vadd.f32 %v9328_v31, %v9327_v39  ;;  %v4151_v39 = vadd.s32 216, %v8251_v17 }
 0x47c   : > { %v2979_v45 = vpop.f32.mrf.mxu2  ;;  %v3188_v38 = vpop.f32.mrf.mxu3  ;;  %v4470_v30 = vsel %vm4278_vm13, %v3849_v37, 0.0  ;;  %3969 = vxpose.xlu1.b32.cont [8/16] %v3849_v37, 128 }
 0x47d   : > { %v3339_v1 = vadd.f32 %v2979_v45, %v2514_v24  ;;  %v3340_v19 = vadd.f32 %v3188_v38, %v2515_v29  ;;  %v4603_v60 = vmul.f32 %v4470_v30, %v4470_v30  ;;  %v4533_v42 = vadd.f32 %v4532_v56, %v4470_v30  ;;  %v2366_v13 = vpop.f32.mrf.mxu1  ;;  %v9329_v24 = vld [vmem:[#allocation40_spill] sm:$0xff] }
 0x47e   : > { %v2517_v49 = vadd.f32 %v2366_v13, %v9326_v4  ;;  %v5798_v38 = vld [vmem:[%s6049_s11 + $0x1e8] sm:$0xff]  ;;  %vm4282_vm2 = vcmp.lt.s32.totalorder %v4151_v39, %v8255_v25  ;;  %v9345_v39 = vld [vmem:[#allocation161_spill] sm:$0xff] }
 0x47f   : > { %v3426_v15 = vmul.f32 %v3339_v1, %v3339_v1  ;;  %v3490_v8 = vmul.f32 %v3340_v19, %v3340_v19  ;;  %v4666_v34 = vadd.f32 %v4665_v2, %v4603_v60  ;;  %v2703_v30 = vrot.slane %v5798_v38, 3  ;;  %v9331_v19 = vld [vmem:[#allocation136_spill] sm:$0xff] }
 0x480   : > { %v3685_v12 = vpop.f32.mrf.mxu0  ;;  %5312 = vmatmul.msk.f32.gmra.mxu1 %vm642_vm1, %v9324_v44  ;;  %v2518_v1 = vadd.f32 %v9330_v33, %v1464_v48  ;;  %v9332_v44 = vld [vmem:[#allocation91_spill] sm:$0xff] }
 0x481   : > { %v5621_v5 = vpop.eup %5620  ;;  %v3554_v7 = vadd.f32 %v3490_v8, %v3426_v15  ;;  %v3686_v63 = vadd.f32 5.9604645e-08, %v3685_v12  ;;  %5396 = vmatmul.msk.f32.gmra.mxu2 %vm642_vm1, %v2700_v16  ;;  %5460 = vmatmul.msk.f32.gmra.mxu3 %vm642_vm1, %v2700_v16  ;;  %v2704_v12 = vsel %vm2581_vm3, %v2701_v55, %v2703_v30 }
 0x482   : > { %v3851_v3 = vmul.f32 0.6931472, %v5621_v5  ;;  %v9333_v5 = vld [vmem:[#allocation137_spill] sm:$0xff] }
 0x483   : > { %5622 = vlog2.f32 %v3686_v63  ;;  %3732 = vmatmul.f32.gmra.mxu0 %v3554_v7  ;;  %v1467_v7 = vadd.f32 %v9333_v5, %v9332_v44  ;;  %v4152_v44 = vadd.s32 224, %v8251_v17 }
 0x484   : > { %v2982_v56 = vpop.f32.mrf.mxu2  ;;  %v3191_v59 = vpop.f32.mrf.mxu3  ;;  %v4471_v36 = vsel %vm4279_vm14, %v3851_v3, 0.0  ;;  %3970 = vxpose.xlu1.b32.cont [9/16] %v3851_v3, 128 }
 0x485   : > { %v3341_v41 = vadd.f32 %v2982_v56, %v2516_v11  ;;  %v3342_v21 = vadd.f32 %v3191_v59, %v2517_v49  ;;  %v4604_v14 = vmul.f32 %v4471_v36, %v4471_v36  ;;  %v4534_v28 = vadd.f32 %v4533_v42, %v4471_v36  ;;  %v2369_v2 = vpop.f32.mrf.mxu1  ;;  %v9334_v11 = vld [vmem:[#allocation44_spill] sm:$0xff] }
 0x486   : > { %v2519_v60 = vadd.f32 %v2369_v2, %v9331_v19  ;;  %v5799_v59 = vld [vmem:[%s6049_s11 + $0x1f0] sm:$0xff]  ;;  %vm4283_vm4 = vcmp.lt.s32.totalorder %v4152_v44, %v8255_v25 }
 0x487   : > { %v3427_v47 = vmul.f32 %v3341_v41, %v3341_v41  ;;  %v3491_v37 = vmul.f32 %v3342_v21, %v3342_v21  ;;  %v4667_v18 = vadd.f32 %v4666_v34, %v4604_v14  ;;  %v2705_v36 = vrot.slane %v5799_v59, 3  ;;  %v9336_v21 = vld [vmem:[#allocation138_spill] sm:$0xff]  ;;  %v9351_v44 = vld [vmem:[#allocation144_spill] sm:$0xff] }
 0x488   : > { %v3688_v54 = vpop.f32.mrf.mxu0  ;;  %5313 = vmatmul.msk.f32.gmra.mxu1 %vm642_vm1, %v9329_v24  ;;  %v2520_v41 = vadd.f32 %v9335_v52, %v1467_v7  ;;  %v9337_v24 = vld [vmem:[#allocation94_spill] sm:$0xff] }
 0x489   : > { %v5623_v35 = vpop.eup %5622  ;;  %v3555_v29 = vadd.f32 %v3491_v37, %v3427_v47  ;;  %v3689_v45 = vadd.f32 5.9604645e-08, %v3688_v54  ;;  %5397 = vmatmul.msk.f32.gmra.mxu2 %vm642_vm1, %v2702_v43  ;;  %5461 = vmatmul.msk.f32.gmra.mxu3 %vm642_vm1, %v2702_v43  ;;  %v2706_v54 = vsel %vm2581_vm3, %v2703_v30, %v2705_v36 }
 0x48a   : > { %v3853_v51 = vmul.f32 0.6931472, %v5623_v35  ;;  %v9338_v35 = vld [vmem:[#allocation139_spill] sm:$0xff] }
 0x48b   : > { %5624 = vlog2.f32 %v3689_v45  ;;  %3735 = vmatmul.f32.gmra.mxu0 %v3555_v29  ;;  %v1470_v29 = vadd.f32 %v9338_v35, %v9337_v24  ;;  %v4153_v24 = vadd.s32 232, %v8251_v17 }
 0x48c   : > { %v2985_v42 = vpop.f32.mrf.mxu2  ;;  %v3194_v13 = vpop.f32.mrf.mxu3  ;;  %v4472_v16 = vsel %vm4280_vm15, %v3853_v51, 0.0  ;;  %3971 = vxpose.xlu1.b32.cont [10/16] %v3853_v51, 128 }
 0x48d   : > { %v3343_v26 = vadd.f32 %v2985_v42, %v2518_v1  ;;  %v3344_v50 = vadd.f32 %v3194_v13, %v2519_v60  ;;  %v4605_v15 = vmul.f32 %v4472_v16, %v4472_v16  ;;  %v4535_v8 = vadd.f32 %v4534_v28, %v4472_v16  ;;  %v2372_v34 = vpop.f32.mrf.mxu1  ;;  %v9339_v1 = vld [vmem:[#allocation48_spill] sm:$0xff]  ;;  %v5800_v13 = vld [vmem:[%s6049_s11 + $0x1f8] sm:$0xff]  ;;  %s8667_s11 = sand.u32 1, %s5910_s26  }
 0x48e   : > { %v2521_v14 = vadd.f32 %v2372_v34, %v9336_v21  ;;  %v2707_v16 = vrot.slane %v5800_v13, 3  ;;  %vm4284_vm5 = vcmp.lt.s32.totalorder %v4153_v24, %v8255_v25  ;;  %s4891_s14 = sshll.u32 %s8667_s11, 1  ;;  %s4722_s22 = scalar_lea.sflag [#allocation7], %s8667_s11 }
 0x48f   : > { %v3428_v63 = vmul.f32 %v3343_v26, %v3343_v26  ;;  %v3492_v3 = vmul.f32 %v3344_v50, %v3344_v50  ;;  %v4668_v58 = vadd.f32 %v4667_v18, %v4605_v15  ;;  %v2522_v26 = vadd.f32 %v9340_v40, %v1470_v29  ;;  %v9341_v50 = vld [vmem:[#allocation140_spill] sm:$0xff]  ;;  %s309_s15 = scalar_lea.vmem [#allocation6], %s4891_s14  ;;  %s5834_s14 = scalar_lea.hbm %s8841_s6, 4 }
 0x490   : > { %v3691_v10 = vpop.f32.mrf.mxu0  ;;  %5314 = vmatmul.msk.f32.gmra.mxu1 %vm642_vm1, %v9334_v11  ;;  %v9342_v11 = vld [vmem:[#allocation97_spill] sm:$0xff]  ;;  %s4754_s19 = sshll.u32 %s309_s15, 4  ;;  %p5836_p2 = scmp.lt.s32.totalorder %s5834_s14, %s5830_s30  ;;  %s4755_s19 = int_to_ptr.vmem [resolvable:$true] %s4754_s19 }
 0x491   : > { %v5625_v4 = vpop.eup %5624  ;;  %v3556_v49 = vadd.f32 %v3492_v3, %v3428_v63  ;;  %v3692_v56 = vadd.f32 5.9604645e-08, %v3691_v10  ;;  %5398 = vmatmul.msk.f32.gmra.mxu2 %vm642_vm1, %v2704_v12  ;;  %5462 = vmatmul.msk.f32.gmra.mxu3 %vm642_vm1, %v2704_v12  ;;  %v2708_v10 = vsel %vm2581_vm3, %v2705_v36, %v2707_v16 }
 0x492   : > { %v3855_v55 = vmul.f32 0.6931472, %v5625_v4  ;;  %v9343_v4 = vld [vmem:[#allocation141_spill] sm:$0xff]  ;;  %p5837_p3 = por %p5836_p2, %p5835_p1 }
 0x493   : > { %5626 = vlog2.f32 %v3692_v56  ;;  %3738 = vmatmul.f32.gmra.mxu0 %v3556_v49  ;;  %v1473_v49 = vadd.f32 %v9343_v4, %v9342_v11 }
 0x494   : > { %v2988_v28 = vpop.f32.mrf.mxu2  ;;  %v3197_v2 = vpop.f32.mrf.mxu3  ;;  %v4473_v43 = vsel %vm4281_vm0, %v3855_v55, 0.0  ;;  %3972 = vxpose.xlu1.b32.cont [11/16] %v3855_v55, 128  ;;  %p5838_p5 = pnand %p5837_p3, %p5833_p0 }
 0x495   : > { %v3345_v31 = vadd.f32 %v2988_v28, %v2520_v41  ;;  %v3346_v48 = vadd.f32 %v3197_v2, %v2521_v14  ;;  %v4606_v47 = vmul.f32 %v4473_v43, %v4473_v43  ;;  %v4536_v37 = vadd.f32 %v4535_v8, %v4473_v43  ;;  %v2375_v18 = vpop.f32.mrf.mxu1  ;;  %v9344_v41 = vld [vmem:[#allocation51_spill] sm:$0xff] }
 0x496   : > { %v2523_v15 = vadd.f32 %v2375_v18, %v9341_v50  ;;  %v5801_v2 = vld [vmem:[%s6654_s17] sm:$0xff]  ;;  %s4890_s17 = sshll.u32 %s8667_s11, 9 }
 0x497   : > { %v3429_v45 = vmul.f32 %v3345_v31, %v3345_v31  ;;  %v3493_v51 = vmul.f32 %v3346_v48, %v3346_v48  ;;  %v4669_v38 = vadd.f32 %v4668_v58, %v4606_v47  ;;  %v2709_v43 = vrot.slane %v5801_v2, 3  ;;  %v9346_v48 = vld [vmem:[#allocation142_spill] sm:$0xff]  ;;  %s8673_s9 = scalar_lea.vmem [#allocation4], %s4890_s17 }
 0x498   : > { %v3694_v33 = vpop.f32.mrf.mxu0  ;;  %5315 = vmatmul.msk.f32.gmra.mxu1 %vm642_vm1, %v9339_v1  ;;  %v2524_v31 = vadd.f32 %v9345_v39, %v1473_v49  ;;  %v9347_v1 = vld [vmem:[#allocation101_spill] sm:$0xff] }
 0x499   : > { %v5627_v19 = vpop.eup %5626  ;;  %v3557_v60 = vadd.f32 %v3493_v51, %v3429_v45  ;;  %v3695_v42 = vadd.f32 5.9604645e-08, %v3694_v33  ;;  %5399 = vmatmul.msk.f32.gmra.mxu2 %vm642_vm1, %v2706_v54  ;;  %5463 = vmatmul.msk.f32.gmra.mxu3 %vm642_vm1, %v2706_v54  ;;  %v2710_v33 = vsel %vm2581_vm3, %v2707_v16, %v2709_v43 }
 0x49a   : > { %v3857_v30 = vmul.f32 0.6931472, %v5627_v19  ;;  %v9348_v19 = vld [vmem:[#allocation143_spill] sm:$0xff] }
 0x49b   : > { %5628 = vlog2.f32 %v3695_v42  ;;  %3741 = vmatmul.f32.gmra.mxu0 %v3557_v60  ;;  %v1476_v60 = vadd.f32 %v9348_v19, %v9347_v1  ;;  %v9356_v1 = vld [vmem:[#allocation59_spill] sm:$0xff]  ;;  %v9357_v19 = vld [vmem:[#allocation57_spill] sm:$0xff] }
 0x49c   : > { %v2991_v8 = vpop.f32.mrf.mxu2  ;;  %v3200_v34 = vpop.f32.mrf.mxu3  ;;  %v4474_v12 = vsel %vm4282_vm2, %v3857_v30, 0.0  ;;  %3973 = vxpose.xlu1.b32.cont [12/16] %v3857_v30, 128 }
 0x49d   : > { %v3347_v5 = vadd.f32 %v2991_v8, %v2522_v26  ;;  %v3348_v7 = vadd.f32 %v3200_v34, %v2523_v15  ;;  %v4607_v63 = vmul.f32 %v4474_v12, %v4474_v12  ;;  %v4537_v3 = vadd.f32 %v4536_v37, %v4474_v12  ;;  %v2378_v58 = vpop.f32.mrf.mxu1  ;;  %v9349_v26 = vld [vmem:[#allocation53_spill] sm:$0xff]  ;;  %v9350_v34 = vld [vmem:[#allocation164_spill] sm:$0xff] }
 0x49e   : > { %v2525_v47 = vadd.f32 %v2378_v58, %v9346_v48  ;;  %v2526_v12 = vadd.f32 %v9350_v34, %v1476_v60  ;;  %v4154_v58 = vadd.s32 240, %v8251_v17  ;;  %v1482_v60 = vadd.f32 %v9357_v19, %v9356_v1  ;;  %v9365_v1 = vld [vmem:[#allocation148_spill] sm:$0xff] }
 0x49f   : > { %v3430_v56 = vmul.f32 %v3347_v5, %v3347_v5  ;;  %v3494_v55 = vmul.f32 %v3348_v7, %v3348_v7  ;;  %v4670_v59 = vadd.f32 %v4669_v38, %v4607_v63 }
 0x4a0   : > { %v3697_v52 = vpop.f32.mrf.mxu0  ;;  %5316 = vmatmul.msk.f32.gmra.mxu1 %vm642_vm1, %v9344_v41 }
 0x4a1   : > { %v5629_v21 = vpop.eup %5628  ;;  %v3558_v14 = vadd.f32 %v3494_v55, %v3430_v56  ;;  %v3698_v28 = vadd.f32 5.9604645e-08, %v3697_v52  ;;  %5400 = vmatmul.msk.f32.gmra.mxu2 %vm642_vm1, %v2708_v10  ;;  %5464 = vmatmul.msk.f32.gmra.mxu3 %vm642_vm1, %v2708_v10  ;;  %v9352_v55 = vld [vmem:[#allocation56_spill] sm:$0xff] }
 0x4a2   : > { %v3859_v36 = vmul.f32 0.6931472, %v5629_v21 }
 0x4a3   : > { %5630 = vlog2.f32 %v3698_v28  ;;  %3744 = vmatmul.f32.gmra.mxu0 %v3558_v14 }
 0x4a4   : > { %v2994_v37 = vpop.f32.mrf.mxu2  ;;  %v3203_v18 = vpop.f32.mrf.mxu3  ;;  %v4475_v54 = vsel %vm4283_vm4, %v3859_v36, 0.0  ;;  %3974 = vxpose.xlu1.b32.cont [13/16] %v3859_v36, 128 }
 0x4a5   : > { %v3349_v35 = vadd.f32 %v2994_v37, %v2524_v31  ;;  %v3350_v29 = vadd.f32 %v3203_v18, %v2525_v47  ;;  %v4608_v45 = vmul.f32 %v4475_v54, %v4475_v54  ;;  %v4538_v51 = vadd.f32 %v4537_v3, %v4475_v54  ;;  %v2381_v38 = vpop.f32.mrf.mxu1  ;;  %v9354_v31 = vld [vmem:[#allocation93_spill] sm:$0xff] }
 0x4a6   : > { %v2527_v5 = vadd.f32 %v2381_v38, %v9351_v44  ;;  %v9355_v47 = vld [vmem:[#allocation145_spill] sm:$0xff] }
 0x4a7   : > { %v3431_v42 = vmul.f32 %v3349_v35, %v3349_v35  ;;  %v3495_v30 = vmul.f32 %v3350_v29, %v3350_v29  ;;  %v4671_v13 = vadd.f32 %v4670_v59, %v4608_v45  ;;  %v9353_v59 = vld [vmem:[#allocation54_spill] sm:$0xff]  ;;  %v4155_v35 = vadd.s32 248, %v8251_v17 }
 0x4a8   : > { %v3700_v40 = vpop.f32.mrf.mxu0  ;;  %5317 = vmatmul.msk.f32.gmra.mxu1 %vm642_vm1, %v9349_v26  ;;  %v1479_v52 = vadd.f32 %v9353_v59, %v9352_v55  ;;  %v9361_v55 = vld [vmem:[#allocation60_spill] sm:$0xff] }
 0x4a9   : > { %v5631_v50 = vpop.eup %5630  ;;  %v3559_v15 = vadd.f32 %v3495_v30, %v3431_v42  ;;  %v3701_v8 = vadd.f32 5.9604645e-08, %v3700_v40  ;;  %5401 = vmatmul.msk.f32.gmra.mxu2 %vm642_vm1, %v2710_v33  ;;  %5465 = vmatmul.msk.f32.gmra.mxu3 %vm642_vm1, %v2710_v33  ;;  %vm4285_vm1 = vcmp.lt.s32.totalorder %v4154_v58, %v8255_v25  ;;  %vm4286_vm3 = vcmp.lt.s32.totalorder %v4155_v35, %v8255_v25 }
 0x4aa   : > { %v3861_v16 = vmul.f32 0.6931472, %v5631_v50  ;;  %v2528_v48 = vadd.f32 %v9354_v31, %v1479_v52 }
 0x4ab   : > { %5632 = vlog2.f32 %v3701_v8  ;;  %3747 = vmatmul.f32.gmra.mxu0 %v3559_v15 }
 0x4ac   : > { %v2997_v7 = vpop.f32.mrf.mxu2  ;;  %v3206_v63 = vpop.f32.mrf.mxu3  ;;  %v4476_v3 = vsel %vm4284_vm5, %v3861_v16, 0.0  ;;  %3975 = vxpose.xlu1.b32.cont [14/16] %v3861_v16, 128  ;;  %v9358_v16 = vld [vmem:[#allocation96_spill] sm:$0xff] }
 0x4ad   : > { %v3351_v10 = vadd.f32 %v2997_v7, %v2526_v12  ;;  %v3352_v11 = vadd.f32 %v3206_v63, %v2527_v5  ;;  %v4609_v4 = vmul.f32 %v4476_v3, %v4476_v3  ;;  %v4539_v49 = vadd.f32 %v4538_v51, %v4476_v3  ;;  %v2384_v56 = vpop.f32.mrf.mxu1  ;;  %v9359_v12 = vld [vmem:[#allocation146_spill] sm:$0xff] }
 0x4ae   : > { %v2529_v37 = vadd.f32 %v2384_v56, %v9355_v47  ;;  %v2530_v34 = vadd.f32 %v9358_v16, %v1482_v60  ;;  %v4156_v3 = vadd.s32 256, %v8251_v17  ;;  %v9360_v56 = vld [vmem:[#allocation62_spill] sm:$0xff]  ;;  %v9366_v16 = vld [vmem:[#allocation149_spill] sm:$0xff] }
 0x4af   : > { %v3432_v41 = vmul.f32 %v3351_v10, %v3351_v10  ;;  %v3496_v21 = vmul.f32 %v3352_v11, %v3352_v11  ;;  %v4672_v14 = vadd.f32 %v4671_v13, %v4609_v4  ;;  %v1485_v59 = vadd.f32 %v9361_v55, %v9360_v56 }
 0x4b0   : > { %v3703_v28 = vpop.f32.mrf.mxu0  ;;  %vm4287_vm6 = vcmp.lt.s32.totalorder %v4156_v3, %v8255_v25 }
 0x4b1   : > { %v5633_v36 = vpop.eup %5632  ;;  %v3560_v2 = vadd.f32 %v3496_v21, %v3432_v41  ;;  %v3704_v43 = vadd.f32 5.9604645e-08, %v3703_v28 }
 0x4b2   : > { %v3863_v39 = vmul.f32 0.6931472, %v5633_v36 }
 0x4b3   : > { %5634 = vlog2.f32 %v3704_v43  ;;  %3750 = vmatmul.f32.gmra.mxu0 %v3560_v2 }
 0x4b4   : > { %v3000_v18 = vpop.f32.mrf.mxu2  ;;  %v3209_v54 = vpop.f32.mrf.mxu3  ;;  %v4477_v24 = vsel %vm4285_vm1, %v3863_v39, 0.0  ;;  %3976 = vxpose.xlu1.b32.cont [15/16] %v3863_v39, 128  ;;  %v9362_v39 = vld [vmem:[#allocation170_spill] sm:$0xff] }
 0x4b5   : > { %v3353_v29 = vadd.f32 %v3000_v18, %v2528_v48  ;;  %v3354_v45 = vadd.f32 %v3209_v54, %v2529_v37  ;;  %v4610_v51 = vmul.f32 %v4477_v24, %v4477_v24  ;;  %v4540_v38 = vadd.f32 %v4539_v49, %v4477_v24  ;;  %v2387_v33 = vpop.f32.mrf.mxu1  ;;  %v9363_v48 = vld [vmem:[#allocation147_spill] sm:$0xff] }
 0x4b6   : > { %v2531_v44 = vadd.f32 %v2387_v33, %v9359_v12  ;;  %v2532_v31 = vadd.f32 %v9362_v39, %v1485_v59  ;;  %v4157_v24 = vadd.s32 264, %v8251_v17  ;;  %v9364_v33 = vld [vmem:[#allocation65_spill] sm:$0xff] }
 0x4b7   : > { %v3433_v42 = vmul.f32 %v3353_v29, %v3353_v29  ;;  %v3497_v30 = vmul.f32 %v3354_v45, %v3354_v45  ;;  %v4673_v13 = vadd.f32 %v4672_v14, %v4610_v51  ;;  %v1488_v19 = vadd.f32 %v9365_v1, %v9364_v33 }
 0x4b8   : > { %v3706_v40 = vpop.f32.mrf.mxu0  ;;  %vm4288_vm7 = vcmp.lt.s32.totalorder %v4157_v24, %v8255_v25 }
 0x4b9   : > { %v5635_v26 = vpop.eup %5634  ;;  %v3561_v50 = vadd.f32 %v3497_v30, %v3433_v42  ;;  %v3707_v15 = vadd.f32 5.9604645e-08, %v3706_v40 }
 0x4ba   : > { %v3865_v8 = vmul.f32 0.6931472, %v5635_v26 }
 0x4bb   : > { %5636 = vlog2.f32 %v3707_v15  ;;  %3753 = vmatmul.f32.gmra.mxu0 %v3561_v50 }
 0x4bc   : > { %v3003_v5 = vpop.f32.mrf.mxu2  ;;  %v3212_v7 = vpop.f32.mrf.mxu3  ;;  %v4478_v63 = vsel %vm4286_vm3, %v3865_v8, 0.0  ;;  %3977 = vxpose.xlu1.b32.end [16/16] %v3865_v8, 128  ;;  %v2534_v8 = vadd.f32 %v8084_v0, %v1488_v19 }
 0x4bd   : > { %v3355_v58 = vadd.f32 %v3003_v5, %v2530_v34  ;;  %v3356_v10 = vadd.f32 %v3212_v7, %v2531_v44  ;;  %v4611_v11 = vmul.f32 %v4478_v63, %v4478_v63  ;;  %v4541_v4 = vadd.f32 %v4540_v38, %v4478_v63  ;;  %v2390_v49 = vpop.f32.mrf.mxu1 }
 0x4be   : > { %v2533_v47 = vadd.f32 %v2390_v49, %v9363_v48  ;;  %v4158_v7 = vadd.s32 272, %v8251_v17  ;;  %v9368_v49 = vld [vmem:[#allocation150_spill] sm:$0xff] }
 0x4bf   : > { %v3434_v52 = vmul.f32 %v3355_v58, %v3355_v58  ;;  %v3498_v41 = vmul.f32 %v3356_v10, %v3356_v10  ;;  %v4674_v21 = vadd.f32 %v4673_v13, %v4611_v11 }
 0x4c0   : > { %v3709_v14 = vpop.f32.mrf.mxu0  ;;  %vm4289_vm8 = vcmp.lt.s32.totalorder %v4158_v7, %v8255_v25 }
 0x4c1   : > { %v5637_v28 = vpop.eup %5636  ;;  %v3562_v36 = vadd.f32 %v3498_v41, %v3434_v52  ;;  %v3710_v2 = vadd.f32 5.9604645e-08, %v3709_v14 }
 0x4c2   : > { %v3867_v43 = vmul.f32 0.6931472, %v5637_v28 }
 0x4c3   : > { %5638 = vlog2.f32 %v3710_v2  ;;  %3756 = vmatmul.f32.gmra.mxu0 %v3562_v36  ;;  %v9369_v2 = vld [vmem:[#allocation151_spill] sm:$0xff] }
 0x4c4   : > { %v3006_v37 = vpop.f32.mrf.mxu2  ;;  %v3215_v18 = vpop.f32.mrf.mxu3  ;;  %3994 = vxpose.xlu2.b32.start [1/16] %v3867_v43, 128  ;;  %v4479_v54 = vsel %vm4287_vm6, %v3867_v43, 0.0 }
 0x4c5   : > { %v3357_v35 = vadd.f32 %v3006_v37, %v2532_v31  ;;  %v3358_v29 = vadd.f32 %v3215_v18, %v2533_v47  ;;  %v4542_v45 = vadd.f32 %v4541_v4, %v4479_v54  ;;  %v4612_v51 = vmul.f32 %v4479_v54, %v4479_v54  ;;  %v2393_v38 = vpop.f32.mrf.mxu1  ;;  %v9367_v4 = vld [vmem:[#allocation68_spill] sm:$0xff] }
 0x4c6   : > { %v2535_v34 = vadd.f32 %v2393_v38, %v9366_v16  ;;  %v1491_v56 = vadd.f32 %v9368_v49, %v9367_v4  ;;  %v4159_v47 = vadd.s32 280, %v8251_v17  ;;  %v4160_v16 = vadd.s32 288, %v8251_v17 }
 0x4c7   : > { %v3435_v60 = vmul.f32 %v3357_v35, %v3357_v35  ;;  %v3499_v42 = vmul.f32 %v3358_v29, %v3358_v29  ;;  %v4675_v30 = vadd.f32 %v4674_v21, %v4612_v51  ;;  %v9370_v29 = vld [vmem:[#allocation71_spill] sm:$0xff] }
 0x4c8   : > { %v3712_v13 = vpop.f32.mrf.mxu0  ;;  %v2536_v36 = vadd.f32 %v8096_v6, %v1491_v56  ;;  %vm4290_vm9 = vcmp.lt.s32.totalorder %v4159_v47, %v8255_v25  ;;  %vm4291_vm10 = vcmp.lt.s32.totalorder %v4160_v16, %v8255_v25  ;;  %v9376_v47 = vld [vmem:[#allocation77_spill] sm:$0xff] }
 0x4c9   : > { %v5639_v40 = vpop.eup %5638  ;;  %v3563_v26 = vadd.f32 %v3499_v42, %v3435_v60  ;;  %v3713_v50 = vadd.f32 5.9604645e-08, %v3712_v13  ;;  %v9380_v16 = vld [vmem:[#allocation157_spill] sm:$0xff] }
 0x4ca   : > { %v3869_v15 = vmul.f32 0.6931472, %v5639_v40  ;;  %v9372_v40 = vld [vmem:[#allocation153_spill] sm:$0xff] }
 0x4cb   : > { %5640 = vlog2.f32 %v3713_v50  ;;  %3759 = vmatmul.f32.gmra.mxu0 %v3563_v26 }
 0x4cc   : > { %v3009_v12 = vpop.f32.mrf.mxu2  ;;  %v3218_v44 = vpop.f32.mrf.mxu3  ;;  %v4480_v5 = vsel %vm4288_vm7, %v3869_v15, 0.0  ;;  %3995 = vxpose.xlu2.b32.cont [2/16] %v3869_v15, 128 }
 0x4cd   : > { %v3359_v63 = vadd.f32 %v3009_v12, %v2534_v8  ;;  %v3360_v3 = vadd.f32 %v3218_v44, %v2535_v34  ;;  %v4613_v58 = vmul.f32 %v4480_v5, %v4480_v5  ;;  %v4543_v10 = vadd.f32 %v4542_v45, %v4480_v5  ;;  %v2396_v11 = vpop.f32.mrf.mxu1  ;;  %v9371_v45 = vld [vmem:[#allocation69_spill] sm:$0xff] }
 0x4ce   : > { %v2537_v43 = vadd.f32 %v2396_v11, %v9369_v2  ;;  %v1494_v51 = vadd.f32 %v9371_v45, %v9370_v29 }
 0x4cf   : > { %v3436_v55 = vmul.f32 %v3359_v63, %v3359_v63  ;;  %v3500_v0 = vmul.f32 %v3360_v3, %v3360_v3  ;;  %v4676_v59 = vadd.f32 %v4675_v30, %v4613_v58  ;;  %v9373_v63 = vld [vmem:[#allocation74_spill] sm:$0xff]  ;;  %v9374_v3 = vld [vmem:[#allocation72_spill] sm:$0xff] }
 0x4d0   : > { %v3715_v52 = vpop.f32.mrf.mxu0  ;;  %v2538_v13 = vadd.f32 %v8109_v62, %v1494_v51  ;;  %v1497_v58 = vadd.f32 %v9374_v3, %v9373_v63 }
 0x4d1   : > { %v5641_v41 = vpop.eup %5640  ;;  %v3564_v21 = vadd.f32 %v3500_v0, %v3436_v55  ;;  %v3716_v14 = vadd.f32 5.9604645e-08, %v3715_v52  ;;  %v9375_v52 = vld [vmem:[#allocation154_spill] sm:$0xff] }
 0x4d2   : > { %v3871_v28 = vmul.f32 0.6931472, %v5641_v41 }
 0x4d3   : > { %5642 = vlog2.f32 %v3716_v14  ;;  %3762 = vmatmul.f32.gmra.mxu0 %v3564_v21 }
 0x4d4   : > { %v3012_v39 = vpop.f32.mrf.mxu2  ;;  %v3221_v31 = vpop.f32.mrf.mxu3  ;;  %v4481_v48 = vsel %vm4289_vm8, %v3871_v28, 0.0  ;;  %3996 = vxpose.xlu2.b32.cont [3/16] %v3871_v28, 128 }
 0x4d5   : > { %v3361_v37 = vadd.f32 %v3012_v39, %v2536_v36  ;;  %v3362_v18 = vadd.f32 %v3221_v31, %v2537_v43  ;;  %v4614_v54 = vmul.f32 %v4481_v48, %v4481_v48  ;;  %v4544_v24 = vadd.f32 %v4543_v10, %v4481_v48  ;;  %v2399_v35 = vpop.f32.mrf.mxu1 }
 0x4d6   : > { %v2539_v26 = vadd.f32 %v2399_v35, %v9372_v40  ;;  %v4161_v36 = vadd.s32 296, %v8251_v17 }
 0x4d7   : > { %v3437_v38 = vmul.f32 %v3361_v37, %v3361_v37  ;;  %v3501_v6 = vmul.f32 %v3362_v18, %v3362_v18  ;;  %v4677_v33 = vadd.f32 %v4676_v59, %v4614_v54  ;;  %v2540_v59 = vadd.f32 %v8120_v20, %v1497_v58  ;;  %v9377_v37 = vld [vmem:[#allocation75_spill] sm:$0xff] }
 0x4d8   : > { %v3718_v1 = vpop.f32.mrf.mxu0  ;;  %v1500_v18 = vadd.f32 %v9377_v37, %v9376_v47  ;;  %vm4292_vm11 = vcmp.lt.s32.totalorder %v4161_v36, %v8255_v25 }
 0x4d9   : > { %v5643_v19 = vpop.eup %5642  ;;  %v3565_v60 = vadd.f32 %v3501_v6, %v3437_v38  ;;  %v3719_v42 = vadd.f32 5.9604645e-08, %v3718_v1 }
 0x4da   : > { %v3873_v30 = vmul.f32 0.6931472, %v5643_v19  ;;  %v2542_v6 = vadd.f32 %v8132_v61, %v1500_v18 }
 0x4db   : > { %5644 = vlog2.f32 %v3719_v42  ;;  %3765 = vmatmul.f32.gmra.mxu0 %v3565_v60 }
 0x4dc   : > { %v3015_v50 = vpop.f32.mrf.mxu2  ;;  %v3224_v15 = vpop.f32.mrf.mxu3  ;;  %v4482_v8 = vsel %vm4290_vm9, %v3873_v30, 0.0  ;;  %3997 = vxpose.xlu2.b32.cont [4/16] %v3873_v30, 128  ;;  %v4162_v30 = vadd.s32 304, %v8251_v17 }
 0x4dd   : > { %v3363_v34 = vadd.f32 %v3015_v50, %v2538_v13  ;;  %v3364_v12 = vadd.f32 %v3224_v15, %v2539_v26  ;;  %v4615_v44 = vmul.f32 %v4482_v8, %v4482_v8  ;;  %v4545_v5 = vadd.f32 %v4544_v24, %v4482_v8  ;;  %v2402_v7 = vpop.f32.mrf.mxu1  ;;  %v9379_v8 = vld [vmem:[#allocation80_spill] sm:$0xff] }
 0x4de   : > { %v2541_v41 = vadd.f32 %v2402_v7, %v9375_v52  ;;  %vm4293_vm12 = vcmp.lt.s32.totalorder %v4162_v30, %v8255_v25 }
 0x4df   : > { %v3438_v10 = vmul.f32 %v3363_v34, %v3363_v34  ;;  %v3502_v62 = vmul.f32 %v3364_v12, %v3364_v12  ;;  %v4678_v11 = vadd.f32 %v4677_v33, %v4615_v44  ;;  %v9378_v33 = vld [vmem:[#allocation156_spill] sm:$0xff]  ;;  %v1503_v34 = vadd.f32 %v9380_v16, %v9379_v8 }
 0x4e0   : > { %v3721_v4 = vpop.f32.mrf.mxu0 }
 0x4e1   : > { %v5645_v49 = vpop.eup %5644  ;;  %v3566_v56 = vadd.f32 %v3502_v62, %v3438_v10  ;;  %v3722_v55 = vadd.f32 5.9604645e-08, %v3721_v4  ;;  %v2544_v10 = vadd.f32 %v8144_v53, %v1503_v34  ;;  %v9381_v62 = vld [vmem:[#allocation158_spill] sm:$0xff] }
 0x4e2   : > { %v3875_v0 = vmul.f32 0.6931472, %v5645_v49  ;;  %v9387_v34 = vld [vmem:[#allocation162_spill] sm:$0xff] }
 0x4e3   : > { %5646 = vlog2.f32 %v3722_v55  ;;  %3768 = vmatmul.f32.gmra.mxu0 %v3566_v56  ;;  %v4163_v55 = vadd.s32 312, %v8251_v17 }
 0x4e4   : > { %v3018_v21 = vpop.f32.mrf.mxu2  ;;  %v3227_v14 = vpop.f32.mrf.mxu3  ;;  %v4483_v28 = vsel %vm4291_vm10, %v3875_v0, 0.0  ;;  %3998 = vxpose.xlu2.b32.cont [5/16] %v3875_v0, 128 }
 0x4e5   : > { %v3365_v2 = vadd.f32 %v3018_v21, %v2540_v59  ;;  %v3366_v43 = vadd.f32 %v3227_v14, %v2541_v41  ;;  %v4616_v39 = vmul.f32 %v4483_v28, %v4483_v28  ;;  %v4546_v31 = vadd.f32 %v4545_v5, %v4483_v28  ;;  %v2405_v48 = vpop.f32.mrf.mxu1  ;;  %v9382_v14 = vld [vmem:[#allocation83_spill] sm:$0xff] }
 0x4e6   : > { %v2543_v1 = vadd.f32 %v2405_v48, %v9378_v33  ;;  %v9383_v28 = vld [vmem:[#allocation159_spill] sm:$0xff]  ;;  %vm4294_vm13 = vcmp.lt.s32.totalorder %v4163_v55, %v8255_v25 }
 0x4e7   : > { %v3439_v54 = vmul.f32 %v3365_v2, %v3365_v2  ;;  %v3503_v20 = vmul.f32 %v3366_v43, %v3366_v43  ;;  %v4679_v24 = vadd.f32 %v4678_v11, %v4616_v39  ;;  %v1506_v36 = vadd.f32 %v9383_v28, %v9382_v14  ;;  %v9390_v28 = vld [vmem:[#allocation163_spill] sm:$0xff] }
 0x4e8   : > { %v3724_v35 = vpop.f32.mrf.mxu0 }
 0x4e9   : > { %v5647_v29 = vpop.eup %5646  ;;  %v3567_v45 = vadd.f32 %v3503_v20, %v3439_v54  ;;  %v3725_v51 = vadd.f32 5.9604645e-08, %v3724_v35  ;;  %v2546_v18 = vadd.f32 %v8157_v32, %v1506_v36  ;;  %v9384_v54 = vld [vmem:[#allocation160_spill] sm:$0xff] }
 0x4ea   : > { %v3877_v38 = vmul.f32 0.6931472, %v5647_v29 }
 0x4eb   : > { %5648 = vlog2.f32 %v3725_v51  ;;  %3771 = vmatmul.f32.gmra.mxu0 %v3567_v45  ;;  %v4164_v45 = vadd.s32 320, %v8251_v17 }
 0x4ec   : > { %v3021_v19 = vpop.f32.mrf.mxu2  ;;  %v3230_v60 = vpop.f32.mrf.mxu3  ;;  %v4484_v42 = vsel %vm4292_vm11, %v3877_v38, 0.0  ;;  %3999 = vxpose.xlu2.b32.cont [6/16] %v3877_v38, 128 }
 0x4ed   : > { %v3367_v13 = vadd.f32 %v3021_v19, %v2542_v6  ;;  %v3368_v40 = vadd.f32 %v3230_v60, %v2543_v1  ;;  %v4617_v26 = vmul.f32 %v4484_v42, %v4484_v42  ;;  %v4547_v50 = vadd.f32 %v4546_v31, %v4484_v42  ;;  %v2408_v15 = vpop.f32.mrf.mxu1  ;;  %v9385_v19 = vld [vmem:[#allocation86_spill] sm:$0xff]  ;;  %v9386_v60 = vld [vmem:[#allocation84_spill] sm:$0xff] }
 0x4ee   : > { %v2545_v11 = vadd.f32 %v2408_v15, %v9381_v62  ;;  %v1509_v42 = vadd.f32 %v9386_v60, %v9385_v19  ;;  %vm4295_vm14 = vcmp.lt.s32.totalorder %v4164_v45, %v8255_v25  ;;  %v9393_v19 = vld [vmem:[#allocation165_spill] sm:$0xff] }
 0x4ef   : > { %v3440_v12 = vmul.f32 %v3367_v13, %v3367_v13  ;;  %v3504_v61 = vmul.f32 %v3368_v40, %v3368_v40  ;;  %v4680_v44 = vadd.f32 %v4679_v24, %v4617_v26 }
 0x4f0   : > { %v3727_v5 = vpop.f32.mrf.mxu0  ;;  %v2548_v16 = vadd.f32 %v8168_v22, %v1509_v42 }
 0x4f1   : > { %v5649_v7 = vpop.eup %5648  ;;  %v3568_v63 = vadd.f32 %v3504_v61, %v3440_v12  ;;  %v3728_v3 = vadd.f32 5.9604645e-08, %v3727_v5 }
 0x4f2   : > { %v3879_v58 = vmul.f32 0.6931472, %v5649_v7  ;;  %v4165_v7 = vadd.s32 328, %v8251_v17 }
 0x4f3   : > { %5650 = vlog2.f32 %v3728_v3  ;;  %3774 = vmatmul.f32.gmra.mxu0 %v3568_v63 }
 0x4f4   : > { %v3024_v4 = vpop.f32.mrf.mxu2  ;;  %v3233_v49 = vpop.f32.mrf.mxu3  ;;  %v4485_v56 = vsel %vm4293_vm12, %v3879_v58, 0.0  ;;  %4000 = vxpose.xlu2.b32.cont [7/16] %v3879_v58, 128  ;;  %vm4296_vm15 = vcmp.lt.s32.totalorder %v4165_v7, %v8255_v25 }
 0x4f5   : > { %v3369_v0 = vadd.f32 %v3024_v4, %v2544_v10  ;;  %v3370_v59 = vadd.f32 %v3233_v49, %v2545_v11  ;;  %v4618_v52 = vmul.f32 %v4485_v56, %v4485_v56  ;;  %v4548_v41 = vadd.f32 %v4547_v50, %v4485_v56  ;;  %v2411_v21 = vpop.f32.mrf.mxu1  ;;  %v9388_v11 = vld [vmem:[#allocation89_spill] sm:$0xff]  ;;  %v9389_v4 = vld [vmem:[#allocation87_spill] sm:$0xff] }
 0x4f6   : > { %v2547_v20 = vadd.f32 %v2411_v21, %v9384_v54  ;;  %v1512_v49 = vadd.f32 %v9389_v4, %v9388_v11  ;;  %v9391_v54 = vld [vmem:[#allocation92_spill] sm:$0xff] }
 0x4f7   : > { %v3441_v2 = vmul.f32 %v3369_v0, %v3369_v0  ;;  %v3505_v53 = vmul.f32 %v3370_v59, %v3370_v59  ;;  %v4681_v43 = vadd.f32 %v4680_v44, %v4618_v52 }
 0x4f8   : > { %v3730_v39 = vpop.f32.mrf.mxu0  ;;  %v2550_v14 = vadd.f32 %v8180_v57, %v1512_v49 }
 0x4f9   : > { %v5651_v31 = vpop.eup %5650  ;;  %v3569_v48 = vadd.f32 %v3505_v53, %v3441_v2  ;;  %v3731_v47 = vadd.f32 5.9604645e-08, %v3730_v39  ;;  %v4166_v39 = vadd.s32 336, %v8251_v17 }
 0x4fa   : > { %v3881_v37 = vmul.f32 0.6931472, %v5651_v31 }
 0x4fb   : > { %5652 = vlog2.f32 %v3731_v47  ;;  %3777 = vmatmul.f32.gmra.mxu0 %v3569_v48  ;;  %vm4297_vm0 = vcmp.lt.s32.totalorder %v4166_v39, %v8255_v25 }
 0x4fc   : > { %v3027_v24 = vpop.f32.mrf.mxu2  ;;  %v3236_v35 = vpop.f32.mrf.mxu3  ;;  %v4486_v29 = vsel %vm4294_vm13, %v3881_v37, 0.0  ;;  %4001 = vxpose.xlu2.b32.cont [8/16] %v3881_v37, 128 }
 0x4fd   : > { %v3371_v51 = vadd.f32 %v3027_v24, %v2546_v18  ;;  %v3372_v38 = vadd.f32 %v3236_v35, %v2547_v20  ;;  %v4619_v6 = vmul.f32 %v4486_v29, %v4486_v29  ;;  %v4549_v33 = vadd.f32 %v4548_v41, %v4486_v29  ;;  %v2414_v1 = vpop.f32.mrf.mxu1  ;;  %v9392_v20 = vld [vmem:[#allocation90_spill] sm:$0xff] }
 0x4fe   : > { %v2549_v12 = vadd.f32 %v2414_v1, %v9387_v34  ;;  %v1515_v24 = vadd.f32 %v9392_v20, %v9391_v54  ;;  %v9395_v34 = vld [vmem:[#allocation166_spill] sm:$0xff] }
 0x4ff   : > { %v3442_v30 = vmul.f32 %v3371_v51, %v3371_v51  ;;  %v3506_v32 = vmul.f32 %v3372_v38, %v3372_v38  ;;  %v4682_v13 = vadd.f32 %v4681_v43, %v4619_v6 }
 0x500   : > { %v3733_v40 = vpop.f32.mrf.mxu0  ;;  %v2552_v1 = vadd.f32 %v8192_v9, %v1515_v24 }
 0x501   : > { %v5653_v26 = vpop.eup %5652  ;;  %v3570_v50 = vadd.f32 %v3506_v32, %v3442_v30  ;;  %v3734_v15 = vadd.f32 5.9604645e-08, %v3733_v40 }
 0x502   : > { %v3883_v8 = vmul.f32 0.6931472, %v5653_v26 }
 0x503   : > { %5654 = vlog2.f32 %v3734_v15  ;;  %3780 = vmatmul.f32.gmra.mxu0 %v3570_v50 }
 0x504   : > { %v3030_v61 = vpop.f32.mrf.mxu2  ;;  %v3239_v44 = vpop.f32.mrf.mxu3  ;;  %v4487_v5 = vsel %vm4295_vm14, %v3883_v8, 0.0  ;;  %4002 = vxpose.xlu2.b32.cont [9/16] %v3883_v8, 128 }
 0x505   : > { %v3373_v63 = vadd.f32 %v3030_v61, %v2548_v16  ;;  %v3374_v3 = vadd.f32 %v3239_v44, %v2549_v12  ;;  %v4620_v58 = vmul.f32 %v4487_v5, %v4487_v5  ;;  %v4550_v10 = vadd.f32 %v4549_v33, %v4487_v5  ;;  %v2417_v62 = vpop.f32.mrf.mxu1  ;;  %v9394_v16 = vld [vmem:[#allocation95_spill] sm:$0xff] }
 0x506   : > { %v2551_v36 = vadd.f32 %v2417_v62, %v9390_v28  ;;  %v1518_v12 = vadd.f32 %v9395_v34, %v9394_v16  ;;  %v9396_v62 = vld [vmem:[#allocation167_spill] sm:$0xff] }
 0x507   : > { %v3443_v56 = vmul.f32 %v3373_v63, %v3373_v63  ;;  %v3507_v22 = vmul.f32 %v3374_v3, %v3374_v3  ;;  %v4683_v55 = vadd.f32 %v4682_v13, %v4620_v58  ;;  %v4167_v13 = vadd.s32 344, %v8251_v17 }
 0x508   : > { %v3736_v0 = vpop.f32.mrf.mxu0 }
 0x509   : > { %v5655_v59 = vpop.eup %5654  ;;  %v3571_v52 = vadd.f32 %v3507_v22, %v3443_v56  ;;  %v3737_v41 = vadd.f32 5.9604645e-08, %v3736_v0  ;;  %vm4298_vm2 = vcmp.lt.s32.totalorder %v4167_v13, %v8255_v25  ;;  %v4168_v22 = vadd.s32 352, %v8251_v17 }
 0x50a   : > { %v3885_v21 = vmul.f32 0.6931472, %v5655_v59 }
 0x50b   : > { %5656 = vlog2.f32 %v3737_v41  ;;  %3783 = vmatmul.f32.gmra.mxu0 %v3571_v52  ;;  %vm4299_vm4 = vcmp.lt.s32.totalorder %v4168_v22, %v8255_v25  ;;  %v4171_v22 = vadd.s32 376, %v8251_v17 }
 0x50c   : > { %v3033_v2 = vpop.f32.mrf.mxu2  ;;  %v3242_v53 = vpop.f32.mrf.mxu3  ;;  %v4488_v43 = vsel %vm4296_vm15, %v3885_v21, 0.0  ;;  %4003 = vxpose.xlu2.b32.cont [10/16] %v3885_v21, 128  ;;  %v9397_v21 = vld [vmem:[#allocation98_spill] sm:$0xff] }
 0x50d   : > { %v3375_v31 = vadd.f32 %v3033_v2, %v2550_v14  ;;  %v3376_v48 = vadd.f32 %v3242_v53, %v2551_v36  ;;  %v4621_v47 = vmul.f32 %v4488_v43, %v4488_v43  ;;  %v4551_v37 = vadd.f32 %v4550_v10, %v4488_v43  ;;  %v2420_v18 = vpop.f32.mrf.mxu1  ;;  %v9398_v14 = vld [vmem:[#allocation168_spill] sm:$0xff] }
 0x50e   : > { %v2553_v60 = vadd.f32 %v2420_v18, %v9393_v19  ;;  %v2554_v10 = vadd.f32 %v8205_v27, %v1518_v12  ;;  %v1521_v28 = vadd.f32 %v9398_v14, %v9397_v21  ;;  %v4170_v12 = vadd.s32 368, %v8251_v17 }
 0x50f   : > { %v3444_v35 = vmul.f32 %v3375_v31, %v3375_v31  ;;  %v3508_v57 = vmul.f32 %v3376_v48, %v3376_v48  ;;  %v4684_v29 = vadd.f32 %v4683_v55, %v4621_v47  ;;  %vm4302_vm3 = vcmp.lt.s32.totalorder %v4171_v22, %v8255_v25 }
 0x510   : > { %v3739_v45 = vpop.f32.mrf.mxu0  ;;  %v2556_v47 = vadd.f32 %v8217_v46, %v1521_v28  ;;  %vm4301_vm1 = vcmp.lt.s32.totalorder %v4170_v12, %v8255_v25 }
 0x511   : > { %v5657_v51 = vpop.eup %5656  ;;  %v3572_v38 = vadd.f32 %v3508_v57, %v3444_v35  ;;  %v3740_v6 = vadd.f32 5.9604645e-08, %v3739_v45  ;;  %v4169_v35 = vadd.s32 360, %v8251_v17 }
 0x512   : > { %v3887_v33 = vmul.f32 0.6931472, %v5657_v51 }
 0x513   : > { %5658 = vlog2.f32 %v3740_v6  ;;  %3786 = vmatmul.f32.gmra.mxu0 %v3572_v38  ;;  %v9400_v38 = vld [vmem:[#allocation102_spill] sm:$0xff]  ;;  %v9401_v6 = vld [vmem:[#allocation100_spill] sm:$0xff]  ;;  %vm4300_vm5 = vcmp.lt.s32.totalorder %v4169_v35, %v8255_v25 }
 0x514   : > { %v3036_v42 = vpop.f32.mrf.mxu2  ;;  %v3245_v30 = vpop.f32.mrf.mxu3  ;;  %v4489_v32 = vsel %vm4297_vm0, %v3887_v33, 0.0  ;;  %4004 = vxpose.xlu2.b32.cont [11/16] %v3887_v33, 128  ;;  %v1524_v33 = vadd.f32 %v9401_v6, %v9400_v38  ;;  %v4174_v38 = vadd.s32 400, %v8251_v17 }
 0x515   : > { %v3377_v40 = vadd.f32 %v3036_v42, %v2552_v1  ;;  %v3378_v26 = vadd.f32 %v3245_v30, %v2553_v60  ;;  %v4622_v50 = vmul.f32 %v4489_v32, %v4489_v32  ;;  %v4552_v15 = vadd.f32 %v4551_v37, %v4489_v32  ;;  %v2423_v8 = vpop.f32.mrf.mxu1  ;;  %v9399_v37 = vld [vmem:[#allocation169_spill] sm:$0xff] }
 0x516   : > { %v2555_v11 = vadd.f32 %v2423_v8, %v9396_v62  ;;  %vm4305_vm8 = vcmp.lt.s32.totalorder %v4174_v38, %v8255_v25 }
 0x517   : > { %v3445_v61 = vmul.f32 %v3377_v40, %v3377_v40  ;;  %v3509_v9 = vmul.f32 %v3378_v26, %v3378_v26  ;;  %v4685_v44 = vadd.f32 %v4684_v29, %v4622_v50  ;;  %v2558_v26 = vadd.f32 %v8228_v23, %v1524_v33  ;;  %v9402_v50 = vld [vmem:[#allocation171_spill] sm:$0xff] }
 0x518   : > { %v3742_v5 = vpop.f32.mrf.mxu0 }
 0x519   : > { %v5659_v7 = vpop.eup %5658  ;;  %v3573_v63 = vadd.f32 %v3509_v9, %v3445_v61  ;;  %v3743_v3 = vadd.f32 5.9604645e-08, %v3742_v5 }
 0x51a   : > { %v3889_v58 = vmul.f32 0.6931472, %v5659_v7 }
 0x51b   : > { %5660 = vlog2.f32 %v3743_v3  ;;  %3789 = vmatmul.f32.gmra.mxu0 %v3573_v63 }
 0x51c   : > { %v3039_v4 = vpop.f32.mrf.mxu2  ;;  %v3248_v49 = vpop.f32.mrf.mxu3  ;;  %v4490_v56 = vsel %vm4298_vm2, %v3889_v58, 0.0  ;;  %4005 = vxpose.xlu2.b32.cont [12/16] %v3889_v58, 128 }
 0x51d   : > { %v3379_v55 = vadd.f32 %v3039_v4, %v2554_v10  ;;  %v3380_v0 = vadd.f32 %v3248_v49, %v2555_v11  ;;  %v4623_v59 = vmul.f32 %v4490_v56, %v4490_v56  ;;  %v4553_v52 = vadd.f32 %v4552_v15, %v4490_v56  ;;  %v2426_v41 = vpop.f32.mrf.mxu1 }
 0x51e   : > { %v2557_v18 = vadd.f32 %v2426_v41, %v9399_v37 }
 0x51f   : > { %v3446_v36 = vmul.f32 %v3379_v55, %v3379_v55  ;;  %v3510_v27 = vmul.f32 %v3380_v0, %v3380_v0  ;;  %v4686_v2 = vadd.f32 %v4685_v44, %v4623_v59 }
 0x520   : > { %v3745_v53 = vpop.f32.mrf.mxu0 }
 0x521   : > { %v5661_v43 = vpop.eup %5660  ;;  %v3574_v39 = vadd.f32 %v3510_v27, %v3446_v36  ;;  %v3746_v31 = vadd.f32 5.9604645e-08, %v3745_v53  ;;  %v4172_v36 = vadd.s32 384, %v8251_v17 }
 0x522   : > { %v3891_v48 = vmul.f32 0.6931472, %v5661_v43 }
 0x523   : > { %5662 = vlog2.f32 %v3746_v31  ;;  %3792 = vmatmul.f32.gmra.mxu0 %v3574_v39  ;;  %vm4303_vm6 = vcmp.lt.s32.totalorder %v4172_v36, %v8255_v25 }
 0x524   : > { %v3042_v54 = vpop.f32.mrf.mxu2  ;;  %v3251_v20 = vpop.f32.mrf.mxu3  ;;  %v4491_v24 = vsel %vm4299_vm4, %v3891_v48, 0.0  ;;  %4006 = vxpose.xlu2.b32.cont [13/16] %v3891_v48, 128  ;;  %v4173_v48 = vadd.s32 392, %v8251_v17 }
 0x525   : > { %v3381_v57 = vadd.f32 %v3042_v54, %v2556_v47  ;;  %v3382_v29 = vadd.f32 %v3251_v20, %v2557_v18  ;;  %v4624_v45 = vmul.f32 %v4491_v24, %v4491_v24  ;;  %v4554_v51 = vadd.f32 %v4553_v52, %v4491_v24  ;;  %v2429_v60 = vpop.f32.mrf.mxu1  ;;  %v3946_v20 = vpop.trf.xlu0 }
 0x526   : > { %v2559_v15 = vadd.f32 %v2429_v60, %v9402_v50  ;;  %vm4304_vm7 = vcmp.lt.s32.totalorder %v4173_v48, %v8255_v25  ;;  %4058 = vst [vmem:[%s8673_s9] sm:$0xff] %v3946_v20 }
 0x527   : > { %v3447_v1 = vmul.f32 %v3381_v57, %v3381_v57  ;;  %v3511_v19 = vmul.f32 %v3382_v29, %v3382_v29  ;;  %v4687_v46 = vadd.f32 %v4686_v2, %v4624_v45 }
 0x528   : > { %v3748_v42 = vpop.f32.mrf.mxu0 }
 0x529   : > { %v5663_v30 = vpop.eup %5662  ;;  %v3575_v32 = vadd.f32 %v3511_v19, %v3447_v1  ;;  %v3749_v13 = vadd.f32 5.9604645e-08, %v3748_v42 }
 0x52a   : > { %v3893_v40 = vmul.f32 0.6931472, %v5663_v30 }
 0x52b   : > { %5664 = vlog2.f32 %v3749_v13  ;;  %3795 = vmatmul.f32.gmra.mxu0 %v3575_v32  ;;  %v4175_v13 = vadd.s32 408, %v8251_v17 }
 0x52c   : > { %v3045_v8 = vpop.f32.mrf.mxu2  ;;  %v3254_v16 = vpop.f32.mrf.mxu3  ;;  %v4492_v34 = vsel %vm4300_vm5, %v3893_v40, 0.0  ;;  %4007 = vxpose.xlu2.b32.cont [14/16] %v3893_v40, 128 }
 0x52d   : > { %v3383_v61 = vadd.f32 %v3045_v8, %v2558_v26  ;;  %v3384_v9 = vadd.f32 %v3254_v16, %v2559_v15  ;;  %v4625_v44 = vmul.f32 %v4492_v34, %v4492_v34  ;;  %v4555_v5 = vadd.f32 %v4554_v51, %v4492_v34  ;;  %v3947_v1 = vpop.trf.xlu0 }
 0x52e   : > { %4062 = vst [vmem:[%s8673_s9 + $0x20] sm:$0xff] %v3947_v1  ;;  %vm4306_vm9 = vcmp.lt.s32.totalorder %v4175_v13, %v8255_v25 }
 0x52f   : > { %v3448_v7 = vmul.f32 %v3383_v61, %v3383_v61  ;;  %v3512_v63 = vmul.f32 %v3384_v9, %v3384_v9  ;;  %v4688_v3 = vadd.f32 %v4687_v46, %v4625_v44  ;;  %v4176_v9 = vadd.s32 416, %v8251_v17 }
 0x530   : > { %v3751_v58 = vpop.f32.mrf.mxu0 }
 0x531   : > { %v5665_v10 = vpop.eup %5664  ;;  %v3576_v23 = vadd.f32 %v3512_v63, %v3448_v7  ;;  %v3752_v62 = vadd.f32 5.9604645e-08, %v3751_v58  ;;  %vm4307_vm10 = vcmp.lt.s32.totalorder %v4176_v9, %v8255_v25 }
 0x532   : > { %v3895_v11 = vmul.f32 0.6931472, %v5665_v10 }
 0x533   : > { %5666 = vlog2.f32 %v3752_v62  ;;  %3798 = vmatmul.f32.gmra.mxu0 %v3576_v23 }
 0x534   : > { %v4493_v4 = vsel %vm4301_vm1, %v3895_v11, 0.0  ;;  %4008 = vxpose.xlu2.b32.cont [15/16] %v3895_v11, 128 }
 0x535   : > { %v4626_v49 = vmul.f32 %v4493_v4, %v4493_v4  ;;  %v4556_v56 = vadd.f32 %v4555_v5, %v4493_v4  ;;  %v3948_v50 = vpop.trf.xlu0 }
 0x536   : > { %4066 = vst [vmem:[%s8673_s9 + $0x40] sm:$0xff] %v3948_v50 }
 0x537   : > { %v4689_v55 = vadd.f32 %v4688_v3, %v4626_v49 }
 0x538   : > { %v3754_v0 = vpop.f32.mrf.mxu0 }
 0x539   : > { %v5667_v59 = vpop.eup %5666  ;;  %v3755_v52 = vadd.f32 5.9604645e-08, %v3754_v0 }
 0x53a   : > { %v3897_v41 = vmul.f32 0.6931472, %v5667_v59 }
 0x53b   : > { %5668 = vlog2.f32 %v3755_v52 }
 0x53c   : > { %v4494_v21 = vsel %vm4302_vm3, %v3897_v41, 0.0  ;;  %4009 = vxpose.xlu2.b32.end [16/16] %v3897_v41, 128 }
 0x53d   : > { %v4627_v14 = vmul.f32 %v4494_v21, %v4494_v21  ;;  %v4557_v28 = vadd.f32 %v4556_v56, %v4494_v21  ;;  %v3949_v7 = vpop.trf.xlu0 }
 0x53e   : > { %4070 = vst [vmem:[%s8673_s9 + $0x60] sm:$0xff] %v3949_v7 }
 0x53f   : > { %v4690_v27 = vadd.f32 %v4689_v55, %v4627_v14 }
 0x540   : > { %v3757_v2 = vpop.f32.mrf.mxu0 }
 0x541   : > { %v5669_v53 = vpop.eup %5668  ;;  %v3758_v43 = vadd.f32 5.9604645e-08, %v3757_v2 }
 0x542   : > { %v3899_v39 = vmul.f32 0.6931472, %v5669_v53 }
 0x543   : > { %5670 = vlog2.f32 %v3758_v43 }
 0x544   : > { %v4495_v31 = vsel %vm4303_vm6, %v3899_v39, 0.0  ;;  %4026 = vxpose.xlu0.b32.start [1/16] %v3899_v39, 128  ;;  %vm4713_vm6 = vcmask 1040384  }
 0x545   : > { %v4628_v47 = vmul.f32 %v4495_v31, %v4495_v31  ;;  %v4558_v37 = vadd.f32 %v4557_v28, %v4495_v31  ;;  %v3950_v49 = vpop.trf.xlu0 }
 0x546   : > { %4074 = vst [vmem:[%s8673_s9 + $0x80] sm:$0xff] %v3950_v49 }
 0x547   : > { %v4691_v18 = vadd.f32 %v4690_v27, %v4628_v47 }
 0x548   : > { %v3760_v54 = vpop.f32.mrf.mxu0 }
 0x549   : > { %v5671_v24 = vpop.eup %5670  ;;  %v3761_v35 = vadd.f32 5.9604645e-08, %v3760_v54 }
 0x54a   : > { %v3901_v57 = vmul.f32 0.6931472, %v5671_v24 }
 0x54b   : > { %5672 = vlog2.f32 %v3761_v35 }
 0x54c   : > { %v4496_v29 = vsel %vm4304_vm7, %v3901_v57, 0.0  ;;  %4027 = vxpose.xlu0.b32.cont [2/16] %v3901_v57, 128 }
 0x54d   : > { %v4629_v45 = vmul.f32 %v4496_v29, %v4496_v29  ;;  %v4559_v51 = vadd.f32 %v4558_v37, %v4496_v29  ;;  %v3951_v59 = vpop.trf.xlu0 }
 0x54e   : > { %4078 = vst [vmem:[%s8673_s9 + $0xa0] sm:$0xff] %v3951_v59 }
 0x54f   : > { %v4692_v6 = vadd.f32 %v4691_v18, %v4629_v45 }
 0x550   : > { %v3763_v33 = vpop.f32.mrf.mxu0 }
 0x551   : > { %v5673_v19 = vpop.eup %5672  ;;  %v3764_v46 = vadd.f32 5.9604645e-08, %v3763_v33 }
 0x552   : > { %v3903_v60 = vmul.f32 0.6931472, %v5673_v19  ;;  %v4177_v19 = vadd.s32 424, %v8251_v17 }
 0x553   : > { %5674 = vlog2.f32 %v3764_v46  ;;  %v4178_v46 = vadd.s32 432, %v8251_v17 }
 0x554   : > { %v4497_v42 = vsel %vm4305_vm8, %v3903_v60, 0.0  ;;  %4028 = vxpose.xlu0.b32.cont [3/16] %v3903_v60, 128  ;;  %vm4308_vm11 = vcmp.lt.s32.totalorder %v4177_v19, %v8255_v25  ;;  %v4179_v60 = vadd.s32 440, %v8251_v17 }
 0x555   : > { %v4560_v30 = vadd.f32 %v4559_v51, %v4497_v42  ;;  %v4630_v32 = vmul.f32 %v4497_v42, %v4497_v42  ;;  %v3952_v28 = vpop.trf.xlu0  ;;  %vm4309_vm12 = vcmp.lt.s32.totalorder %v4178_v46, %v8255_v25 }
 0x556   : > { %4082 = vst [vmem:[%s8673_s9 + $0xc0] sm:$0xff] %v3952_v28  ;;  %vm4310_vm13 = vcmp.lt.s32.totalorder %v4179_v60, %v8255_v25 }
 0x557   : > { %v4693_v40 = vadd.f32 %v4692_v6, %v4630_v32 }
 0x558   : > { %v3766_v26 = vpop.f32.mrf.mxu0 }
 0x559   : > { %v5675_v15 = vpop.eup %5674  ;;  %v3767_v8 = vadd.f32 5.9604645e-08, %v3766_v26 }
 0x55a   : > { %v3905_v16 = vmul.f32 0.6931472, %v5675_v15  ;;  %v4181_v15 = vadd.s32 456, %v8251_v17 }
 0x55b   : > { %5676 = vlog2.f32 %v3767_v8 }
 0x55c   : > { %v4498_v34 = vsel %vm4306_vm9, %v3905_v16, 0.0  ;;  %4029 = vxpose.xlu0.b32.cont [4/16] %v3905_v16, 128  ;;  %vm4312_vm15 = vcmp.lt.s32.totalorder %v4181_v15, %v8255_v25 }
 0x55d   : > { %v4561_v12 = vadd.f32 %v4560_v30, %v4498_v34  ;;  %v4631_v61 = vmul.f32 %v4498_v34, %v4498_v34  ;;  %v3953_v43 = vpop.trf.xlu0  ;;  %v4010_v16 = vpop.trf.xlu2 }
 0x55e   : > { %4086 = vst [vmem:[%s8673_s9 + $0xe0] sm:$0xff] %v3953_v43  ;;  %v3978_v34 = vpop.trf.xlu1 }
 0x55f   : > { %v4694_v44 = vadd.f32 %v4693_v40, %v4631_v61  ;;  %v4180_v40 = vadd.s32 448, %v8251_v17  ;;  %v4182_v61 = vadd.s32 464, %v8251_v17  ;;  %4060 = vst [vmem:[%s8673_s9 + $0x10] sm:$0xff] %v4010_v16 }
 0x560   : > { %v3769_v5 = vpop.f32.mrf.mxu0  ;;  %4059 = vst [vmem:[%s8673_s9 + $0x8] sm:$0xff] %v3978_v34 }
 0x561   : > { %v5677_v63 = vpop.eup %5676  ;;  %v3770_v3 = vadd.f32 5.9604645e-08, %v3769_v5  ;;  %vm4311_vm14 = vcmp.lt.s32.totalorder %v4180_v40, %v8255_v25  ;;  %vm4313_vm0 = vcmp.lt.s32.totalorder %v4182_v61, %v8255_v25 }
 0x562   : > { %v3907_v58 = vmul.f32 0.6931472, %v5677_v63 }
 0x563   : > { %5678 = vlog2.f32 %v3770_v3 }
 0x564   : > { %v4499_v10 = vsel %vm4307_vm10, %v3907_v58, 0.0  ;;  %4030 = vxpose.xlu0.b32.cont [5/16] %v3907_v58, 128 }
 0x565   : > { %v8685_v23 = vadd.f32 %v4561_v12, %v4499_v10  ;;  %v4632_v62 = vmul.f32 %v4499_v10, %v4499_v10  ;;  %v3954_v37 = vpop.trf.xlu0  ;;  %v4183_v10 = vadd.s32 472, %v8251_v17 }
 0x566   : > { %4090 = vst [vmem:[%s8673_s9 + $0x100] sm:$0xff] %v3954_v37 }
 0x567   : > { %v8687_v11 = vadd.f32 %v4694_v44, %v4632_v62  ;;  %vm4314_vm2 = vcmp.lt.s32.totalorder %v4183_v10, %v8255_v25 }
 0x568   : > { %v3772_v4 = vpop.f32.mrf.mxu0 }
 0x569   : > { %v5679_v56 = vpop.eup %5678  ;;  %v3773_v22 = vadd.f32 5.9604645e-08, %v3772_v4 }
 0x56a   : > { %v8690_v55 = vmul.f32 0.6931472, %v5679_v56 }
 0x56b   : > { %5680 = vlog2.f32 %v3773_v22 }
 0x56c   : > { %4031 = vxpose.xlu0.b32.cont [6/16] %v8690_v55, 128  ;;  %v4500_v50 = vsel %vm4308_vm11, %v8690_v55, 0.0 }
 0x56d   : > { %v3955_v35 = vpop.trf.xlu0  ;;  %v4633_v12 = vmul.f32 %v4500_v50, %v4500_v50  ;;  %v4563_v3 = vadd.f32 %v8685_v23, %v4500_v50 }
 0x56e   : > { %4094 = vst [vmem:[%s8673_s9 + $0x120] sm:$0xff] %v3955_v35 }
 0x56f   : > { %v4696_v4 = vadd.f32 %v8687_v11, %v4633_v12 }
 0x570   : > { %v3775_v0 = vpop.f32.mrf.mxu0 }
 0x571   : > { %v5681_v52 = vpop.eup %5680  ;;  %v3776_v41 = vadd.f32 5.9604645e-08, %v3775_v0  ;;  %v4184_v0 = vadd.s32 480, %v8251_v17 }
 0x572   : > { %v3911_v21 = vmul.f32 0.6931472, %v5681_v52 }
 0x573   : > { %5682 = vlog2.f32 %v3776_v41  ;;  %v4185_v41 = vadd.s32 488, %v8251_v17  ;;  %vm4315_vm4 = vcmp.lt.s32.totalorder %v4184_v0, %v8255_v25 }
 0x574   : > { %4032 = vxpose.xlu0.b32.cont [7/16] %v3911_v21, 128  ;;  %v4501_v8 = vsel %vm4309_vm12, %v3911_v21, 0.0 }
 0x575   : > { %v3956_v38 = vpop.trf.xlu0  ;;  %v4634_v44 = vmul.f32 %v4501_v8, %v4501_v8  ;;  %v4564_v22 = vadd.f32 %v4563_v3, %v4501_v8  ;;  %vm4316_vm5 = vcmp.lt.s32.totalorder %v4185_v41, %v8255_v25  ;;  %v4011_v3 = vpop.trf.xlu2 }
 0x576   : > { %4098 = vst [vmem:[%s8673_s9 + $0x140] sm:$0xff] %v3956_v38 }
 0x577   : > { %v4697_v59 = vadd.f32 %v4696_v4, %v4634_v44  ;;  %4064 = vst [vmem:[%s8673_s9 + $0x30] sm:$0xff] %v4011_v3 }
 0x578   : > { %v3778_v14 = vpop.f32.mrf.mxu0 }
 0x579   : > { %v5683_v36 = vpop.eup %5682  ;;  %v3779_v27 = vadd.f32 5.9604645e-08, %v3778_v14 }
 0x57a   : > { %v3913_v2 = vmul.f32 0.6931472, %v5683_v36  ;;  %v4186_v36 = vadd.s32 496, %v8251_v17 }
 0x57b   : > { %5684 = vlog2.f32 %v3779_v27 }
 0x57c   : > { %4033 = vxpose.xlu0.b32.cont [8/16] %v3913_v2, 128  ;;  %v4502_v9 = vsel %vm4310_vm13, %v3913_v2, 0.0  ;;  %vm4317_vm1 = vcmp.lt.s32.totalorder %v4186_v36, %v8255_v25 }
 0x57d   : > { %v3957_v30 = vpop.trf.xlu0  ;;  %v4635_v49 = vmul.f32 %v4502_v9, %v4502_v9  ;;  %v4565_v23 = vadd.f32 %v4564_v22, %v4502_v9 }
 0x57e   : > { %4102 = vst [vmem:[%s8673_s9 + $0x160] sm:$0xff] %v3957_v30 }
 0x57f   : > { %v4698_v21 = vadd.f32 %v4697_v59, %v4635_v49 }
 0x580   : > { %v3781_v53 = vpop.f32.mrf.mxu0 }
 0x581   : > { %v5685_v39 = vpop.eup %5684  ;;  %v3782_v31 = vadd.f32 5.9604645e-08, %v3781_v53 }
 0x582   : > { %v3915_v48 = vmul.f32 0.6931472, %v5685_v39 }
 0x583   : > { %5686 = vlog2.f32 %v3782_v31 }
 0x584   : > { %4034 = vxpose.xlu0.b32.cont [9/16] %v3915_v48, 128  ;;  %v4503_v58 = vsel %vm4311_vm14, %v3915_v48, 0.0 }
 0x585   : > { %v3958_v7 = vpop.trf.xlu0  ;;  %v4636_v52 = vmul.f32 %v4503_v58, %v4503_v58  ;;  %v4566_v28 = vadd.f32 %v4565_v23, %v4503_v58  ;;  %v3979_v58 = vpop.trf.xlu1 }
 0x586   : > { %4106 = vst [vmem:[%s8673_s9 + $0x180] sm:$0xff] %v3958_v7 }
 0x587   : > { %v4699_v27 = vadd.f32 %v4698_v21, %v4636_v52  ;;  %4063 = vst [vmem:[%s8673_s9 + $0x28] sm:$0xff] %v3979_v58 }
 0x588   : > { %v3784_v47 = vpop.f32.mrf.mxu0 }
 0x589   : > { %v5687_v18 = vpop.eup %5686  ;;  %v3785_v54 = vadd.f32 5.9604645e-08, %v3784_v47 }
 0x58a   : > { %v3917_v20 = vmul.f32 0.6931472, %v5687_v18 }
 0x58b   : > { %5688 = vlog2.f32 %v3785_v54 }
 0x58c   : > { %4035 = vxpose.xlu0.b32.cont [10/16] %v3917_v20, 128  ;;  %v4504_v55 = vsel %vm4312_vm15, %v3917_v20, 0.0 }
 0x58d   : > { %v4637_v11 = vmul.f32 %v4504_v55, %v4504_v55  ;;  %v3959_v43 = vpop.trf.xlu0  ;;  %v4567_v31 = vadd.f32 %v4566_v28, %v4504_v55  ;;  %v3980_v22 = vpop.trf.xlu1 }
 0x58e   : > { %4110 = vst [vmem:[%s8673_s9 + $0x1a0] sm:$0xff] %v3959_v43 }
 0x58f   : > { %v4700_v37 = vadd.f32 %v4699_v27, %v4637_v11  ;;  %4067 = vst [vmem:[%s8673_s9 + $0x48] sm:$0xff] %v3980_v22 }
 0x590   : > { %v3787_v24 = vpop.f32.mrf.mxu0 }
 0x591   : > { %v5689_v57 = vpop.eup %5688  ;;  %v3788_v29 = vadd.f32 5.9604645e-08, %v3787_v24 }
 0x592   : > { %v8698_v45 = vmul.f32 0.6931472, %v5689_v57 }
 0x593   : > { %5690 = vlog2.f32 %v3788_v29 }
 0x594   : > { %4036 = vxpose.xlu0.b32.cont [11/16] %v8698_v45, 128  ;;  %v4505_v14 = vsel %vm4313_vm0, %v8698_v45, 0.0 }
 0x595   : > { %v4638_v48 = vmul.f32 %v4505_v14, %v4505_v14  ;;  %v4568_v20 = vadd.f32 %v4567_v31, %v4505_v14  ;;  %v3960_v19 = vpop.trf.xlu0  ;;  %v3981_v0 = vpop.trf.xlu1 }
 0x596   : > { %4114 = vst [vmem:[%s8673_s9 + $0x1c0] sm:$0xff] %v3960_v19 }
 0x597   : > { %v4701_v57 = vadd.f32 %v4700_v37, %v4638_v48  ;;  %4071 = vst [vmem:[%s8673_s9 + $0x68] sm:$0xff] %v3981_v0 }
 0x598   : > { %v3790_v51 = vpop.f32.mrf.mxu0 }
 0x599   : > { %v5691_v6 = vpop.eup %5690  ;;  %v3791_v33 = vadd.f32 5.9604645e-08, %v3790_v51  ;;  %v4187_v51 = vadd.s32 504, %v8251_v17 }
 0x59a   : > { %v3921_v1 = vmul.f32 0.6931472, %v5691_v6 }
 0x59b   : > { %5692 = vlog2.f32 %v3791_v33  ;;  %vm4318_vm3 = vcmp.lt.s32.totalorder %v4187_v51, %v8255_v25 }
 0x59c   : > { %4037 = vxpose.xlu0.b32.cont [12/16] %v3921_v1, 128  ;;  %v4506_v2 = vsel %vm4314_vm2, %v3921_v1, 0.0 }
 0x59d   : > { %v4639_v24 = vmul.f32 %v4506_v2, %v4506_v2  ;;  %v4569_v29 = vadd.f32 %v4568_v20, %v4506_v2  ;;  %v3961_v34 = vpop.trf.xlu0  ;;  %v3982_v52 = vpop.trf.xlu1 }
 0x59e   : > { %4118 = vst [vmem:[%s8673_s9 + $0x1e0] sm:$0xff] %v3961_v34 }
 0x59f   : > { %v4702_v6 = vadd.f32 %v4701_v57, %v4639_v24  ;;  %4075 = vst [vmem:[%s8673_s9 + $0x88] sm:$0xff] %v3982_v52 }
 0x5a0   : > { %v3793_v42 = vpop.f32.mrf.mxu0 }
 0x5a1   : > { %v5693_v32 = vpop.eup %5692  ;;  %v3794_v13 = vadd.f32 5.9604645e-08, %v3793_v42 }
 0x5a2   : > { %v3923_v26 = vmul.f32 0.6931472, %v5693_v32 }
 0x5a3   : > { %5694 = vlog2.f32 %v3794_v13 }
 0x5a4   : > { %4038 = vxpose.xlu0.b32.cont [13/16] %v3923_v26, 128  ;;  %v4507_v18 = vsel %vm4315_vm4, %v3923_v26, 0.0 }
 0x5a5   : > { %v4640_v45 = vmul.f32 %v4507_v18, %v4507_v18  ;;  %v4570_v33 = vadd.f32 %v4569_v29, %v4507_v18 }
 0x5a7   : > { %v4703_v60 = vadd.f32 %v4702_v6, %v4640_v45 }
 0x5a8   : > { %v3796_v5 = vpop.f32.mrf.mxu0 }
 0x5a9   : > { %v5695_v63 = vpop.eup %5694  ;;  %v3797_v62 = vadd.f32 5.9604645e-08, %v3796_v5 }
 0x5aa   : > { %v3925_v56 = vmul.f32 0.6931472, %v5695_v63 }
 0x5ab   : > { %5696 = vlog2.f32 %v3797_v62 }
 0x5ac   : > { %4039 = vxpose.xlu0.b32.cont [14/16] %v3925_v56, 128  ;;  %v4508_v35 = vsel %vm4316_vm5, %v3925_v56, 0.0  ;;  %v4012_v56 = vpop.trf.xlu2 }
 0x5ad   : > { %v4641_v1 = vmul.f32 %v4508_v35, %v4508_v35  ;;  %v4571_v42 = vadd.f32 %v4570_v33, %v4508_v35  ;;  %4068 = vst [vmem:[%s8673_s9 + $0x50] sm:$0xff] %v4012_v56 }
 0x5af   : > { %v4704_v13 = vadd.f32 %v4703_v60, %v4641_v1 }
 0x5b0   : > { %v3799_v53 = vpop.f32.mrf.mxu0 }
 0x5b1   : > { %v5697_v39 = vpop.eup %5696  ;;  %v3800_v47 = vadd.f32 5.9604645e-08, %v3799_v53 }
 0x5b2   : > { %v3927_v54 = vmul.f32 0.6931472, %v5697_v39 }
 0x5b3   : > { %5698 = vlog2.f32 %v3800_v47 }
 0x5b4   : > { %4040 = vxpose.xlu0.b32.cont [15/16] %v3927_v54, 128  ;;  %v4509_v38 = vsel %vm4317_vm1, %v3927_v54, 0.0  ;;  %v4013_v55 = vpop.trf.xlu2 }
 0x5b5   : > { %v4642_v30 = vmul.f32 %v4509_v38, %v4509_v38  ;;  %v4572_v40 = vadd.f32 %v4571_v42, %v4509_v38  ;;  %4072 = vst [vmem:[%s8673_s9 + $0x70] sm:$0xff] %v4013_v55 }
 0x5b7   : > { %v4705_v17 = vadd.f32 %v4704_v13, %v4642_v30 }
 0x5b9   : > { %v5699_v46 = vpop.eup %5698 }
 0x5ba   : > { %v3929_v32 = vmul.f32 0.6931472, %v5699_v46 }
 0x5bc   : > { %v4510_v26 = vsel %vm4318_vm3, %v3929_v32, 0.0  ;;  %4041 = vxpose.xlu0.b32.end [16/16] %v3929_v32, 128  ;;  %v4014_v59 = vpop.trf.xlu2 }
 0x5bd   : > { %v4573_v50 = vadd.f32 %v4572_v40, %v4510_v26  ;;  %v4643_v15 = vmul.f32 %v4510_v26, %v4510_v26  ;;  %4076 = vst [vmem:[%s8673_s9 + $0x90] sm:$0xff] %v4014_v59 }
 0x5bf   : > { %v4574_v8 = vrot.slane %v4573_v50, 4  ;;  %v4706_v16 = vadd.f32 %v4705_v17, %v4643_v15 }
 0x5c1   : > { %v4575_v12 = vadd.f32 %v4574_v8, %v4573_v50  ;;  %v4707_v61 = vrot.slane %v4706_v16, 4 }
 0x5c3   : > { %v4576_v9 = vrot.slane %v4575_v12, 2  ;;  %v4708_v25 = vadd.f32 %v4707_v61, %v4706_v16 }
 0x5c5   : > { %v4577_v44 = vadd.f32 %v4576_v9, %v4575_v12  ;;  %v4709_v5 = vrot.slane %v4708_v25, 2 }
 0x5c7   : > { %v4578_v7 = vrot.slane %v4577_v44, 1  ;;  %v4710_v63 = vadd.f32 %v4709_v5, %v4708_v25 }
 0x5c9   : > { %v4711_v10 = vrot.slane %v4710_v63, 1  ;;  %v4579_v62 = vadd.f32 %v4578_v7, %v4577_v44 }
 0x5cb   : > { %v4712_v4 = vadd.f32 %v4711_v10, %v4710_v63 }
 0x5cd   : > { %v4714_v49 = vsel %vm4713_vm6, %v4579_v62, %v4712_v4 }
 0x5ce   : > { %4715 = vst [vmem:[%s309_s15] sm:$0x3] %v4714_v49 }
 0x5cf   : > { %5841 = shalt.err (!%p5838_p5)
}
 0x5d0   : > { %5509 = dma.vmem_to_hbm [thread:$0]  (%p6009_p4), %s4755_s19, 32, %s4757_s21, %s4722_s22   ;;  %v4015_v41 = vpop.trf.xlu2  ;;  %v3983_v21 = vpop.trf.xlu1 }
 0x5d1   : > { %4080 = vst [vmem:[%s8673_s9 + $0xb0] sm:$0xff] %v4015_v41  ;;  %s5475_s15 = sshll.u32 %s5918_s28, 9  ;;  %s4736_s21 = sshll.u32 %s8673_s9, 4  ;;  %s4737_s21 = int_to_ptr.vmem [resolvable:$true] %s4736_s21 }
 0x5d2   : > { %4079 = vst [vmem:[%s8673_s9 + $0xa8] sm:$0xff] %v3983_v21  ;;  %s4735_s19 = scalar_lea.hbm %s8840_s5, %s5475_s15  ;;  %s4717_s24 = scalar_lea.sflag [#allocation5], %s8667_s11 }
 0x5d3   : > { %s4738_s22 = sshll.u32 %s4735_s19, 4  ;;  %s5862_s14 = scalar_lea.hbm %s8840_s5, 1024  ;;  %s4739_s22 = int_to_ptr.hbm [resolvable:$true] %s4738_s22 }
 0x5d4   : > { %s5856_s30 = sshra.s32 %s4739_s22, 4  ;;  %s5857_s30 = int_to_ptr.hbm [resolvable:$true] %s5856_s30 }
 0x5d5   : > { %s5858_s7 = scalar_lea.hbm %s5857_s30, 512  ;;  %p5863_p10 = scmp.lt.s32.totalorder %s5857_s30, %s8840_s5 }
 0x5d6   : > { %p5859_p6 = scmp.ne.s32.totalorder %s5857_s30, %s5858_s7  ;;  %p5864_p11 = scmp.lt.s32.totalorder %s5862_s14, %s5858_s7 }
 0x5d8   : > { %v4016_v14 = vpop.trf.xlu2  ;;  %v3984_v28 = vpop.trf.xlu1  ;;  %p5860_p7 = pnand %p5859_p6, %p6009_p4  ;;  %p5865_p12 = por %p5864_p11, %p5863_p10 }
 0x5d9   : > { %4084 = vst [vmem:[%s8673_s9 + $0xd0] sm:$0xff] %v4016_v14 }
 0x5da   : > { %4083 = vst [vmem:[%s8673_s9 + $0xc8] sm:$0xff] %v3984_v28  ;;  %p5861_p9 = pneg %p5860_p7 }
 0x5dc   : > { %p5866_p13 = pnand %p5865_p12, %p5861_p9 }
 0x5e0   : > { %v4017_v27 = vpop.trf.xlu2  ;;  %v3985_v2 = vpop.trf.xlu1 }
 0x5e1   : > { %4088 = vst [vmem:[%s8673_s9 + $0xf0] sm:$0xff] %v4017_v27 }
 0x5e2   : > { %4087 = vst [vmem:[%s8673_s9 + $0xe8] sm:$0xff] %v3985_v2 }
 0x5e8   : > { %v4042_v23 = vpop.trf.xlu0  ;;  %v4018_v43 = vpop.trf.xlu2 }
 0x5e9   : > { %4061 = vst [vmem:[%s8673_s9 + $0x18] sm:$0xff] %v4042_v23  ;;  %v3986_v39 = vpop.trf.xlu1 }
 0x5ea   : > { %4092 = vst [vmem:[%s8673_s9 + $0x110] sm:$0xff] %v4018_v43 }
 0x5eb   : > { %4091 = vst [vmem:[%s8673_s9 + $0x108] sm:$0xff] %v3986_v39 }
 0x5f0   : > { %v4043_v11 = vpop.trf.xlu0  ;;  %v4019_v48 = vpop.trf.xlu2 }
 0x5f1   : > { %4065 = vst [vmem:[%s8673_s9 + $0x38] sm:$0xff] %v4043_v11  ;;  %v3987_v47 = vpop.trf.xlu1 }
 0x5f2   : > { %4096 = vst [vmem:[%s8673_s9 + $0x130] sm:$0xff] %v4019_v48 }
 0x5f3   : > { %4095 = vst [vmem:[%s8673_s9 + $0x128] sm:$0xff] %v3987_v47 }
 0x5f8   : > { %v4044_v36 = vpop.trf.xlu0  ;;  %v4020_v18 = vpop.trf.xlu2 }
 0x5f9   : > { %4069 = vst [vmem:[%s8673_s9 + $0x58] sm:$0xff] %v4044_v36  ;;  %v3988_v54 = vpop.trf.xlu1 }
 0x5fa   : > { %4100 = vst [vmem:[%s8673_s9 + $0x150] sm:$0xff] %v4020_v18 }
 0x5fb   : > { %4099 = vst [vmem:[%s8673_s9 + $0x148] sm:$0xff] %v3988_v54 }
 0x600   : > { %v4045_v53 = vpop.trf.xlu0  ;;  %v4021_v24 = vpop.trf.xlu2 }
 0x601   : > { %4073 = vst [vmem:[%s8673_s9 + $0x78] sm:$0xff] %v4045_v53  ;;  %v3989_v35 = vpop.trf.xlu1 }
 0x602   : > { %4104 = vst [vmem:[%s8673_s9 + $0x170] sm:$0xff] %v4021_v24 }
 0x603   : > { %4103 = vst [vmem:[%s8673_s9 + $0x168] sm:$0xff] %v3989_v35 }
 0x608   : > { %v4046_v31 = vpop.trf.xlu0  ;;  %v4022_v29 = vpop.trf.xlu2 }
 0x609   : > { %4077 = vst [vmem:[%s8673_s9 + $0x98] sm:$0xff] %v4046_v31  ;;  %v3990_v45 = vpop.trf.xlu1 }
 0x60a   : > { %4108 = vst [vmem:[%s8673_s9 + $0x190] sm:$0xff] %v4022_v29 }
 0x60b   : > { %4107 = vst [vmem:[%s8673_s9 + $0x188] sm:$0xff] %v3990_v45 }
 0x610   : > { %v4047_v37 = vpop.trf.xlu0  ;;  %v4023_v38 = vpop.trf.xlu2 }
 0x611   : > { %4081 = vst [vmem:[%s8673_s9 + $0xb8] sm:$0xff] %v4047_v37  ;;  %v3991_v6 = vpop.trf.xlu1 }
 0x612   : > { %4112 = vst [vmem:[%s8673_s9 + $0x1b0] sm:$0xff] %v4023_v38 }
 0x613   : > { %4111 = vst [vmem:[%s8673_s9 + $0x1a8] sm:$0xff] %v3991_v6 }
 0x618   : > { %v4048_v20 = vpop.trf.xlu0  ;;  %v4024_v1 = vpop.trf.xlu2 }
 0x619   : > { %4085 = vst [vmem:[%s8673_s9 + $0xd8] sm:$0xff] %v4048_v20  ;;  %v3992_v19 = vpop.trf.xlu1 }
 0x61a   : > { %4116 = vst [vmem:[%s8673_s9 + $0x1d0] sm:$0xff] %v4024_v1 }
 0x61b   : > { %4115 = vst [vmem:[%s8673_s9 + $0x1c8] sm:$0xff] %v3992_v19 }
 0x620   : > { %v4049_v57 = vpop.trf.xlu0  ;;  %v4025_v60 = vpop.trf.xlu2 }
 0x621   : > { %4089 = vst [vmem:[%s8673_s9 + $0xf8] sm:$0xff] %v4049_v57  ;;  %v3993_v42 = vpop.trf.xlu1 }
 0x622   : > { %4120 = vst [vmem:[%s8673_s9 + $0x1f0] sm:$0xff] %v4025_v60 }
 0x623   : > { %4119 = vst [vmem:[%s8673_s9 + $0x1e8] sm:$0xff] %v3993_v42 }
 0x628   : > { %v4050_v51 = vpop.trf.xlu0 }
 0x629   : > { %4093 = vst [vmem:[%s8673_s9 + $0x118] sm:$0xff] %v4050_v51 }
 0x630   : > { %v4051_v33 = vpop.trf.xlu0 }
 0x631   : > { %4097 = vst [vmem:[%s8673_s9 + $0x138] sm:$0xff] %v4051_v33 }
 0x638   : > { %v4052_v46 = vpop.trf.xlu0 }
 0x639   : > { %4101 = vst [vmem:[%s8673_s9 + $0x158] sm:$0xff] %v4052_v46 }
 0x640   : > { %v4053_v30 = vpop.trf.xlu0 }
 0x641   : > { %4105 = vst [vmem:[%s8673_s9 + $0x178] sm:$0xff] %v4053_v30 }
 0x648   : > { %v4054_v32 = vpop.trf.xlu0 }
 0x649   : > { %4109 = vst [vmem:[%s8673_s9 + $0x198] sm:$0xff] %v4054_v32 }
 0x650   : > { %v4055_v13 = vpop.trf.xlu0 }
 0x651   : > { %4113 = vst [vmem:[%s8673_s9 + $0x1b8] sm:$0xff] %v4055_v13 }
 0x658   : > { %v4056_v40 = vpop.trf.xlu0 }
 0x659   : > { %4117 = vst [vmem:[%s8673_s9 + $0x1d8] sm:$0xff] %v4056_v40 }
 0x660   : > { %v4057_v26 = vpop.trf.xlu0 }
 0x661   : > { %4121 = vst [vmem:[%s8673_s9 + $0x1f8] sm:$0xff] %v4057_v26 }
 0x662   : > { %5869 = shalt.err (!%p5866_p13)
}
 0x663   : > { %s5929_s11 = smov 512   ;;  %s5930_s9 = smov 32  }
 0x664   : > { %5508 = dma.vmem_to_hbm [thread:$0]  (%p6009_p4), %s4737_s21, 8192, %s4739_s22, %s4717_s24, %s5929_s11, %s5929_s11, %s5930_s9  }
 0x665 PF: > { %p5520_p0 = scmp.ge.s32.totalorder %s5926_s0, 2  ;;  %s4768_s15 = sand.u32 1, %s5906_s25  }
 0x666   : > { %s4769_s23 = scalar_lea.sflag [#allocation5], %s4768_s15 }
 0x667   : > { %p5513_p1 = pnand %p5520_p0, %p6016_p8 }
 0x669   : > { %p5514_p2 = pneg %p5513_p1 }
 0x66b   : > { %5897 = dma.done.wait (%p5514_p2), %s4769_s23, 8192  }
 0x66c   : > { %5899 = vsyncadd (%p5514_p2), %s4769_s23, 4294959104  ;;  %s4779_s18 = scalar_lea.sflag [#allocation7], %s4768_s15 }
 0x66d   : > { %5901 = dma.done.wait (%p5514_p2), %s4779_s18, 32  }
 0x66e   : > { %5903 = vsyncadd (%p5514_p2), %s4779_s18, 4294967264  ;;  %s31_s0 = sadd.s32 1, %s5926_s0   ;;  %s9403_s25 = smov %s5910_s26 }
 0x66f   : > { %p28_p3 = scmp.ge.s32.totalorder %s31_s0, 4   ;;  %s9404_s26 = smov %s5914_s27 }
 0x670   : > { %s9405_s27 = smov %s6022_s13  ;;  %s9406_s28 = smov %s5922_s29 }
 0x671   : > { %s9407_s29 = smov %s9409_s8  ;;  %30 = sbr.rel (!%p28_p3) target bundleno = 12 (0xc), region = 94 }
 0x676   :  { %4785 = vsyncpa [#allocation5], 1 }
 0x677   :  { %4787 = vsyncpa [#allocation5 + $0x1], 1 }
 0x678   :  { %4788 = vsyncpa [#allocation7], 1 }
 0x679   :  { %4790 = vsyncpa [#allocation7 + $0x1], 1 }

</bundles_post_ra>
